<compile_context>
chip_gen: v7x
topology: tpu7x:2x2x1
jax: 0.10.0
libtpu: 0.0.40
codegen_flags: <defaults>
</compile_context>

<pallas_src>
import jax
import jax.numpy as jnp
from jax import lax
from jax.experimental import pallas as pl
from jax.experimental.pallas import tpu as pltpu

EPS = 1e-5  # nn.BatchNorm2d default eps


def frelu_kernel(x_ref, w_ref, gamma_ref, beta_ref, out_ref, pad_ref):
    # x_ref:          (N, H, W, Cb)   NHWC block, channels on lanes
    # w_ref:          (9, Cb)         depthwise taps, row k = di*3 + dj
    # gamma/beta_ref: (1, Cb)         BN affine params for this channel block
    # pad_ref:        (N, H+2, W+2, Cb) VMEM scratch holding the zero halo
    N, H, W, Cb = x_ref.shape

    x = x_ref[...].astype(jnp.float32)
    taps = w_ref[...].astype(jnp.float32)                       # (9, Cb)

    # Build the zero halo: zero the border every step (cheap; correct even if
    # the grid axis is sharded across cores), overwrite the centre with x.
    pad_ref[:, 0:1, :, :] = jnp.zeros((N, 1, W + 2, Cb), jnp.float32)
    pad_ref[:, H + 1:H + 2, :, :] = jnp.zeros((N, 1, W + 2, Cb), jnp.float32)
    pad_ref[:, :, 0:1, :] = jnp.zeros((N, H + 2, 1, Cb), jnp.float32)
    pad_ref[:, :, W + 1:W + 2, :] = jnp.zeros((N, H + 2, 1, Cb), jnp.float32)
    pad_ref[:, 1:H + 1, 1:W + 1, :] = x

    # Depthwise 3x3 conv (stride 1, pad 1, no bias): read the 3 W-shifted
    # (sublane-axis) column slabs once; H shifts are free untiled-axis slices;
    # each tap is a per-channel lane-broadcast MAC on the VPU.
    cols = [pad_ref[:, :, dj:dj + W, :] for dj in range(3)]     # (N, H+2, W, Cb)
    acc = jnp.zeros((N, H, W, Cb), jnp.float32)
    for di in range(3):
        for dj in range(3):
            acc = acc + cols[dj][:, di:di + H, :, :] * taps[di * 3 + dj]

    # Training-mode BatchNorm: biased per-channel stats over (N, H, W) — a
    # pure sublane reduction keeping the lane (channel) axis.  Single fused
    # pass: sum and sum-of-squares.
    inv_cnt = 1.0 / float(N * H * W)
    s1 = jnp.sum(acc, axis=(0, 1, 2), keepdims=True)            # (1,1,1,Cb)
    s2 = jnp.sum(acc * acc, axis=(0, 1, 2), keepdims=True)
    mean = s1 * inv_cnt
    var = s2 * inv_cnt - mean * mean

    gamma = gamma_ref[...].astype(jnp.float32)                  # (1, Cb)
    beta = beta_ref[...].astype(jnp.float32)
    scale = lax.rsqrt(var + EPS) * gamma                        # rsqrt -> EUP
    bias = beta - mean * scale
    y = acc * scale + bias

    out_ref[...] = jnp.maximum(x, y).astype(out_ref.dtype)


def frelu(x, w, gamma, beta):
    """FReLU forward.

    x: (N, C, H, W); w: (C, 3, 3) depthwise filters; gamma/beta: (C,).
    Returns (N, C, H, W) with the dtype of x.
    """
    N, C, H, W = x.shape
    itemsize = jnp.dtype(x.dtype).itemsize

    # Lane-dense layout plumbing: NHWC with channels on the lane axis.
    x_nhwc = jnp.transpose(x, (0, 2, 3, 1))                     # (N, H, W, C)
    w9 = jnp.transpose(jnp.reshape(w, (C, 9)), (1, 0))          # (9, C)
    gamma2 = jnp.reshape(gamma, (1, C))
    beta2 = jnp.reshape(beta, (1, C))

    # Channel blocking: up to 128 channels (one lane each) per grid step.
    c_blk = 128 if (C % 128 == 0) else C
    grid = (C // c_blk,)

    # VMEM budget: double-buffered in/out blocks + halo scratch + f32 temps.
    # TODO(synk): for very large N*H*W per channel block (e.g. v7x's 64 MiB
    # VMEM) BN stats need a two-pass split so N/H can also be tiled; this
    # kernel keeps the single-pass full-(N,H,W) block per step.
    block_elems = N * H * W * c_blk
    pad_elems = N * (H + 2) * (W + 8) * c_blk
    need = 4 * block_elems * itemsize + 8 * block_elems * 4 + pad_elems * 4
    vmem_limit = int(min(max(need + (2 << 20), 32 << 20), 64 << 20))

    cost = pl.CostEstimate(
        flops=25 * N * C * H * W,                 # 9 MACs + BN + max per elem
        transcendentals=C,                        # one rsqrt per channel
        bytes_accessed=2 * N * C * H * W * itemsize + (9 + 2) * C * 4,
    )

    out_nhwc = pl.pallas_call(
        frelu_kernel,
        out_shape=jax.ShapeDtypeStruct((N, H, W, C), x.dtype),
        grid_spec=pltpu.PrefetchScalarGridSpec(
            num_scalar_prefetch=0,
            grid=grid,
            in_specs=[
                pl.BlockSpec((N, H, W, c_blk), lambda c: (0, 0, 0, c)),
                pl.BlockSpec((9, c_blk), lambda c: (0, c)),
                pl.BlockSpec((1, c_blk), lambda c: (0, c)),
                pl.BlockSpec((1, c_blk), lambda c: (0, c)),
            ],
            out_specs=pl.BlockSpec((N, H, W, c_blk), lambda c: (0, 0, 0, c)),
            scratch_shapes=[pltpu.VMEM((N, H + 2, W + 2, c_blk), jnp.float32)],
        ),
        compiler_params=pltpu.CompilerParams(
            dimension_semantics=("parallel",),
            vmem_limit_bytes=vmem_limit,
        ),
        cost_estimate=cost,
    )(x_nhwc, w9, gamma2, beta2)

    return jnp.transpose(out_nhwc, (0, 3, 1, 2))


def frelu_ref(x, w, gamma, beta):
    """Pure-JAX reference mirroring PyTorch FReLU.forward (training-mode BN)."""
    C = x.shape[1]
    conv = lax.conv_general_dilated(
        x, w[:, None, :, :], window_strides=(1, 1),
        padding=((1, 1), (1, 1)), feature_group_count=C,
        dimension_numbers=("NCHW", "OIHW", "NCHW"))
    mean = conv.mean(axis=(0, 2, 3), keepdims=True)
    var = ((conv - mean) ** 2).mean(axis=(0, 2, 3), keepdims=True)
    y = (conv - mean) / jnp.sqrt(var + EPS)
    y = y * gamma[None, :, None, None] + beta[None, :, None, None]
    return jnp.maximum(x, y)


if __name__ == "__main__":
    N, C, H, W = 2, 4, 16, 16
    key = jax.random.PRNGKey(0)
    kx, kw = jax.random.split(key)
    x = jax.random.normal(kx, (N, C, H, W), jnp.float32)
    # Conv2d default init: U(-1/sqrt(fan_in), +1/sqrt(fan_in)), fan_in = 9
    # (groups=c1, bias=False); BN gamma=1, beta=0 (PyTorch defaults).
    w = jax.random.uniform(kw, (C, 3, 3), jnp.float32, -1.0 / 3.0, 1.0 / 3.0)
    gamma = jnp.ones((C,), jnp.float32)
    beta = jnp.zeros((C,), jnp.float32)

    out = frelu(x, w, gamma, beta)
    jax.block_until_ready(out)

    ref = frelu_ref(x, w, gamma, beta)
    assert out.shape == (N, C, H, W) and out.dtype == jnp.float32
    err = float(jnp.max(jnp.abs(out - ref)))
    assert jnp.allclose(out, ref, atol=1e-4, rtol=1e-4), err
    print("KERNEL_OK")
</pallas_src>

<mosaic_0001>
module attributes {stable_mosaic.version = 11 : i64} {
  func.func @frelu_kernel(%arg0: i32, %arg1: memref<2x16x16x4xf32, #tpu.memory_space<vmem>>, %arg2: memref<9x4xf32, #tpu.memory_space<vmem>>, %arg3: memref<1x4xf32, #tpu.memory_space<vmem>>, %arg4: memref<1x4xf32, #tpu.memory_space<vmem>>, %arg5: memref<2x16x16x4xf32, #tpu.memory_space<vmem>>, %arg6: memref<2x18x18x4xf32, #tpu.memory_space<vmem>>) attributes {dimension_semantics = [#tpu.dimension_semantics<parallel>], iteration_bounds = array<i64: 1>, scalar_prefetch = 0 : i64, scratch_operands = 1 : i64, tpu.core_type = #tpu.core_type<tc>, window_params = [{transform_indices = @transform_0, window_bounds = array<i64: 2, 16, 16, 4>}, {transform_indices = @transform_1, window_bounds = array<i64: 9, 4>}, {transform_indices = @transform_2, window_bounds = array<i64: 1, 4>}, {transform_indices = @transform_3, window_bounds = array<i64: 1, 4>}, {transform_indices = @transform_4, window_bounds = array<i64: 2, 16, 16, 4>}]} {
    %c0 = arith.constant 0 : index
    %c0_0 = arith.constant 0 : index
    %c0_1 = arith.constant 0 : index
    %c0_2 = arith.constant 0 : index
    %0 = vector.load %arg1[%c0, %c0_0, %c0_1, %c0_2] : memref<2x16x16x4xf32, #tpu.memory_space<vmem>>, vector<2x16x16x4xf32>
    %c0_3 = arith.constant 0 : index
    %c0_4 = arith.constant 0 : index
    %1 = vector.load %arg2[%c0_3, %c0_4] : memref<9x4xf32, #tpu.memory_space<vmem>>, vector<9x4xf32>
    %cst = arith.constant 0.000000e+00 : f32
    %2 = vector.broadcast %cst : f32 to vector<2x1x18x4xf32>
    %c0_5 = arith.constant 0 : index
    %c0_6 = arith.constant 0 : index
    %c0_7 = arith.constant 0 : index
    %c0_8 = arith.constant 0 : index
    %3 = vector.load %arg6[%c0_5, %c0_6, %c0_7, %c0_8] : memref<2x18x18x4xf32, #tpu.memory_space<vmem>>, vector<2x1x18x4xf32>
    tpu.vector_store %arg6[%c0_5, %c0_6, %c0_7, %c0_8], %2 {strides = array<i32>} : memref<2x18x18x4xf32, #tpu.memory_space<vmem>>, vector<2x1x18x4xf32>,
    %cst_9 = arith.constant 0.000000e+00 : f32
    %4 = vector.broadcast %cst_9 : f32 to vector<2x1x18x4xf32>
    %c0_10 = arith.constant 0 : index
    %c17 = arith.constant 17 : index
    %c0_11 = arith.constant 0 : index
    %c0_12 = arith.constant 0 : index
    %5 = vector.load %arg6[%c0_10, %c17, %c0_11, %c0_12] : memref<2x18x18x4xf32, #tpu.memory_space<vmem>>, vector<2x1x18x4xf32>
    tpu.vector_store %arg6[%c0_10, %c17, %c0_11, %c0_12], %4 {strides = array<i32>} : memref<2x18x18x4xf32, #tpu.memory_space<vmem>>, vector<2x1x18x4xf32>,
    %cst_13 = arith.constant 0.000000e+00 : f32
    %6 = vector.broadcast %cst_13 : f32 to vector<2x18x1x4xf32>
    %c0_14 = arith.constant 0 : index
    %c0_15 = arith.constant 0 : index
    %c0_16 = arith.constant 0 : index
    %c0_17 = arith.constant 0 : index
    %7 = vector.load %arg6[%c0_14, %c0_15, %c0_16, %c0_17] : memref<2x18x18x4xf32, #tpu.memory_space<vmem>>, vector<2x18x1x4xf32>
    tpu.vector_store %arg6[%c0_14, %c0_15, %c0_16, %c0_17], %6 {strides = array<i32>} : memref<2x18x18x4xf32, #tpu.memory_space<vmem>>, vector<2x18x1x4xf32>,
    %cst_18 = arith.constant 0.000000e+00 : f32
    %8 = vector.broadcast %cst_18 : f32 to vector<2x18x1x4xf32>
    %c0_19 = arith.constant 0 : index
    %c0_20 = arith.constant 0 : index
    %c17_21 = arith.constant 17 : index
    %c0_22 = arith.constant 0 : index
    %9 = vector.load %arg6[%c0_19, %c0_20, %c17_21, %c0_22] : memref<2x18x18x4xf32, #tpu.memory_space<vmem>>, vector<2x18x1x4xf32>
    tpu.vector_store %arg6[%c0_19, %c0_20, %c17_21, %c0_22], %8 {strides = array<i32>} : memref<2x18x18x4xf32, #tpu.memory_space<vmem>>, vector<2x18x1x4xf32>,
    %c0_23 = arith.constant 0 : index
    %c1 = arith.constant 1 : index
    %c1_24 = arith.constant 1 : index
    %c0_25 = arith.constant 0 : index
    %10 = vector.load %arg6[%c0_23, %c1, %c1_24, %c0_25] : memref<2x18x18x4xf32, #tpu.memory_space<vmem>>, vector<2x16x16x4xf32>
    tpu.vector_store %arg6[%c0_23, %c1, %c1_24, %c0_25], %0 {strides = array<i32>} : memref<2x18x18x4xf32, #tpu.memory_space<vmem>>, vector<2x16x16x4xf32>,
    %c0_26 = arith.constant 0 : index
    %c0_27 = arith.constant 0 : index
    %c0_28 = arith.constant 0 : index
    %c0_29 = arith.constant 0 : index
    %11 = vector.load %arg6[%c0_26, %c0_27, %c0_28, %c0_29] : memref<2x18x18x4xf32, #tpu.memory_space<vmem>>, vector<2x18x16x4xf32>
    %c0_30 = arith.constant 0 : index
    %c0_31 = arith.constant 0 : index
    %c1_32 = arith.constant 1 : index
    %c0_33 = arith.constant 0 : index
    %12 = vector.load %arg6[%c0_30, %c0_31, %c1_32, %c0_33] : memref<2x18x18x4xf32, #tpu.memory_space<vmem>>, vector<2x18x16x4xf32>
    %c0_34 = arith.constant 0 : index
    %c0_35 = arith.constant 0 : index
    %c2 = arith.constant 2 : index
    %c0_36 = arith.constant 0 : index
    %13 = vector.load %arg6[%c0_34, %c0_35, %c2, %c0_36] : memref<2x18x18x4xf32, #tpu.memory_space<vmem>>, vector<2x18x16x4xf32>
    %cst_37 = arith.constant 0.000000e+00 : f32
    %14 = vector.broadcast %cst_37 : f32 to vector<2x16x16x4xf32>
    %15 = vector.extract_strided_slice %11 {offsets = [0, 0, 0, 0], sizes = [2, 16, 16, 4], strides = [1, 1, 1, 1]} : vector<2x18x16x4xf32> to vector<2x16x16x4xf32>
    %16 = vector.extract_strided_slice %1 {offsets = [0, 0], sizes = [1, 4], strides = [1, 1]} : vector<9x4xf32> to vector<1x4xf32>
    %17 = vector.shape_cast %16 : vector<1x4xf32> to vector<4xf32>
    %18 = vector.shape_cast %17 : vector<4xf32> to vector<1x1x1x4xf32>
    %19 = vector.broadcast %18 : vector<1x1x1x4xf32> to vector<2x16x16x4xf32>
    %20 = arith.mulf %15, %19 : vector<2x16x16x4xf32>
    %21 = arith.addf %14, %20 : vector<2x16x16x4xf32>
    %22 = vector.extract_strided_slice %12 {offsets = [0, 0, 0, 0], sizes = [2, 16, 16, 4], strides = [1, 1, 1, 1]} : vector<2x18x16x4xf32> to vector<2x16x16x4xf32>
    %23 = vector.extract_strided_slice %1 {offsets = [1, 0], sizes = [1, 4], strides = [1, 1]} : vector<9x4xf32> to vector<1x4xf32>
    %24 = vector.shape_cast %23 : vector<1x4xf32> to vector<4xf32>
    %25 = vector.shape_cast %24 : vector<4xf32> to vector<1x1x1x4xf32>
    %26 = vector.broadcast %25 : vector<1x1x1x4xf32> to vector<2x16x16x4xf32>
    %27 = arith.mulf %22, %26 : vector<2x16x16x4xf32>
    %28 = arith.addf %21, %27 : vector<2x16x16x4xf32>
    %29 = vector.extract_strided_slice %13 {offsets = [0, 0, 0, 0], sizes = [2, 16, 16, 4], strides = [1, 1, 1, 1]} : vector<2x18x16x4xf32> to vector<2x16x16x4xf32>
    %30 = vector.extract_strided_slice %1 {offsets = [2, 0], sizes = [1, 4], strides = [1, 1]} : vector<9x4xf32> to vector<1x4xf32>
    %31 = vector.shape_cast %30 : vector<1x4xf32> to vector<4xf32>
    %32 = vector.shape_cast %31 : vector<4xf32> to vector<1x1x1x4xf32>
    %33 = vector.broadcast %32 : vector<1x1x1x4xf32> to vector<2x16x16x4xf32>
    %34 = arith.mulf %29, %33 : vector<2x16x16x4xf32>
    %35 = arith.addf %28, %34 : vector<2x16x16x4xf32>
    %36 = vector.extract_strided_slice %11 {offsets = [0, 1, 0, 0], sizes = [2, 16, 16, 4], strides = [1, 1, 1, 1]} : vector<2x18x16x4xf32> to vector<2x16x16x4xf32>
    %37 = vector.extract_strided_slice %1 {offsets = [3, 0], sizes = [1, 4], strides = [1, 1]} : vector<9x4xf32> to vector<1x4xf32>
    %38 = vector.shape_cast %37 : vector<1x4xf32> to vector<4xf32>
    %39 = vector.shape_cast %38 : vector<4xf32> to vector<1x1x1x4xf32>
    %40 = vector.broadcast %39 : vector<1x1x1x4xf32> to vector<2x16x16x4xf32>
    %41 = arith.mulf %36, %40 : vector<2x16x16x4xf32>
    %42 = arith.addf %35, %41 : vector<2x16x16x4xf32>
    %43 = vector.extract_strided_slice %12 {offsets = [0, 1, 0, 0], sizes = [2, 16, 16, 4], strides = [1, 1, 1, 1]} : vector<2x18x16x4xf32> to vector<2x16x16x4xf32>
    %44 = vector.extract_strided_slice %1 {offsets = [4, 0], sizes = [1, 4], strides = [1, 1]} : vector<9x4xf32> to vector<1x4xf32>
    %45 = vector.shape_cast %44 : vector<1x4xf32> to vector<4xf32>
    %46 = vector.shape_cast %45 : vector<4xf32> to vector<1x1x1x4xf32>
    %47 = vector.broadcast %46 : vector<1x1x1x4xf32> to vector<2x16x16x4xf32>
    %48 = arith.mulf %43, %47 : vector<2x16x16x4xf32>
    %49 = arith.addf %42, %48 : vector<2x16x16x4xf32>
    %50 = vector.extract_strided_slice %13 {offsets = [0, 1, 0, 0], sizes = [2, 16, 16, 4], strides = [1, 1, 1, 1]} : vector<2x18x16x4xf32> to vector<2x16x16x4xf32>
    %51 = vector.extract_strided_slice %1 {offsets = [5, 0], sizes = [1, 4], strides = [1, 1]} : vector<9x4xf32> to vector<1x4xf32>
    %52 = vector.shape_cast %51 : vector<1x4xf32> to vector<4xf32>
    %53 = vector.shape_cast %52 : vector<4xf32> to vector<1x1x1x4xf32>
    %54 = vector.broadcast %53 : vector<1x1x1x4xf32> to vector<2x16x16x4xf32>
    %55 = arith.mulf %50, %54 : vector<2x16x16x4xf32>
    %56 = arith.addf %49, %55 : vector<2x16x16x4xf32>
    %57 = vector.extract_strided_slice %11 {offsets = [0, 2, 0, 0], sizes = [2, 16, 16, 4], strides = [1, 1, 1, 1]} : vector<2x18x16x4xf32> to vector<2x16x16x4xf32>
    %58 = vector.extract_strided_slice %1 {offsets = [6, 0], sizes = [1, 4], strides = [1, 1]} : vector<9x4xf32> to vector<1x4xf32>
    %59 = vector.shape_cast %58 : vector<1x4xf32> to vector<4xf32>
    %60 = vector.shape_cast %59 : vector<4xf32> to vector<1x1x1x4xf32>
    %61 = vector.broadcast %60 : vector<1x1x1x4xf32> to vector<2x16x16x4xf32>
    %62 = arith.mulf %57, %61 : vector<2x16x16x4xf32>
    %63 = arith.addf %56, %62 : vector<2x16x16x4xf32>
    %64 = vector.extract_strided_slice %12 {offsets = [0, 2, 0, 0], sizes = [2, 16, 16, 4], strides = [1, 1, 1, 1]} : vector<2x18x16x4xf32> to vector<2x16x16x4xf32>
    %65 = vector.extract_strided_slice %1 {offsets = [7, 0], sizes = [1, 4], strides = [1, 1]} : vector<9x4xf32> to vector<1x4xf32>
    %66 = vector.shape_cast %65 : vector<1x4xf32> to vector<4xf32>
    %67 = vector.shape_cast %66 : vector<4xf32> to vector<1x1x1x4xf32>
    %68 = vector.broadcast %67 : vector<1x1x1x4xf32> to vector<2x16x16x4xf32>
    %69 = arith.mulf %64, %68 : vector<2x16x16x4xf32>
    %70 = arith.addf %63, %69 : vector<2x16x16x4xf32>
    %71 = vector.extract_strided_slice %13 {offsets = [0, 2, 0, 0], sizes = [2, 16, 16, 4], strides = [1, 1, 1, 1]} : vector<2x18x16x4xf32> to vector<2x16x16x4xf32>
    %72 = vector.extract_strided_slice %1 {offsets = [8, 0], sizes = [1, 4], strides = [1, 1]} : vector<9x4xf32> to vector<1x4xf32>
    %73 = vector.shape_cast %72 : vector<1x4xf32> to vector<4xf32>
    %74 = vector.shape_cast %73 : vector<4xf32> to vector<1x1x1x4xf32>
    %75 = vector.broadcast %74 : vector<1x1x1x4xf32> to vector<2x16x16x4xf32>
    %76 = arith.mulf %71, %75 : vector<2x16x16x4xf32>
    %77 = arith.addf %70, %76 : vector<2x16x16x4xf32>
    %cst_38 = arith.constant dense<0.000000e+00> : vector<4xf32>
    %78 = vector.multi_reduction <add>, %77, %cst_38 [0, 1, 2] : vector<2x16x16x4xf32> to vector<4xf32>
    %79 = vector.shape_cast %78 : vector<4xf32> to vector<1x1x1x4xf32>
    %80 = arith.mulf %77, %77 : vector<2x16x16x4xf32>
    %cst_39 = arith.constant dense<0.000000e+00> : vector<4xf32>
    %81 = vector.multi_reduction <add>, %80, %cst_39 [0, 1, 2] : vector<2x16x16x4xf32> to vector<4xf32>
    %82 = vector.shape_cast %81 : vector<4xf32> to vector<1x1x1x4xf32>
    %cst_40 = arith.constant 0.001953125 : f32
    %83 = vector.broadcast %cst_40 : f32 to vector<1x1x1x4xf32>
    %84 = arith.mulf %79, %83 : vector<1x1x1x4xf32>
    %cst_41 = arith.constant 0.001953125 : f32
    %85 = vector.broadcast %cst_41 : f32 to vector<1x1x1x4xf32>
    %86 = arith.mulf %82, %85 : vector<1x1x1x4xf32>
    %87 = arith.mulf %84, %84 : vector<1x1x1x4xf32>
    %88 = arith.subf %86, %87 : vector<1x1x1x4xf32>
    %c0_42 = arith.constant 0 : index
    %c0_43 = arith.constant 0 : index
    %89 = vector.load %arg3[%c0_42, %c0_43] : memref<1x4xf32, #tpu.memory_space<vmem>>, vector<1x4xf32>
    %c0_44 = arith.constant 0 : index
    %c0_45 = arith.constant 0 : index
    %90 = vector.load %arg4[%c0_44, %c0_45] : memref<1x4xf32, #tpu.memory_space<vmem>>, vector<1x4xf32>
    %cst_46 = arith.constant 9.99999974E-6 : f32
    %91 = vector.broadcast %cst_46 : f32 to vector<1x1x1x4xf32>
    %92 = arith.addf %88, %91 : vector<1x1x1x4xf32>
    %93 = math.rsqrt %92 : vector<1x1x1x4xf32>
    %94 = vector.shape_cast %89 : vector<1x4xf32> to vector<1x1x1x4xf32>
    %95 = arith.mulf %93, %94 : vector<1x1x1x4xf32>
    %96 = arith.mulf %84, %95 : vector<1x1x1x4xf32>
    %97 = vector.shape_cast %90 : vector<1x4xf32> to vector<1x1x1x4xf32>
    %98 = arith.subf %97, %96 : vector<1x1x1x4xf32>
    %99 = vector.broadcast %95 : vector<1x1x1x4xf32> to vector<2x16x16x4xf32>
    %100 = arith.mulf %77, %99 : vector<2x16x16x4xf32>
    %101 = vector.broadcast %98 : vector<1x1x1x4xf32> to vector<2x16x16x4xf32>
    %102 = arith.addf %100, %101 : vector<2x16x16x4xf32>
    %103 = arith.maximumf %0, %102 : vector<2x16x16x4xf32>
    %c0_47 = arith.constant 0 : index
    %c0_48 = arith.constant 0 : index
    %c0_49 = arith.constant 0 : index
    %c0_50 = arith.constant 0 : index
    %104 = vector.load %arg5[%c0_47, %c0_48, %c0_49, %c0_50] : memref<2x16x16x4xf32, #tpu.memory_space<vmem>>, vector<2x16x16x4xf32>
    tpu.vector_store %arg5[%c0_47, %c0_48, %c0_49, %c0_50], %103 {strides = array<i32>} : memref<2x16x16x4xf32, #tpu.memory_space<vmem>>, vector<2x16x16x4xf32>,
    return
  }
  func.func @transform_0(%arg0: i32) -> (i32, i32, i32, i32) {
    %c0_i32 = arith.constant 0 : i32
    %c0_i32_0 = arith.constant 0 : i32
    %c0_i32_1 = arith.constant 0 : i32
    %c0_i32_2 = arith.constant 0 : i32
    return %c0_i32, %c0_i32_0, %c0_i32_1, %arg0 : i32, i32, i32, i32
  }
  func.func @transform_1(%arg0: i32) -> (i32, i32) {
    %c0_i32 = arith.constant 0 : i32
    %c0_i32_0 = arith.constant 0 : i32
    return %c0_i32, %arg0 : i32, i32
  }
  func.func @transform_2(%arg0: i32) -> (i32, i32) {
    %c0_i32 = arith.constant 0 : i32
    %c0_i32_0 = arith.constant 0 : i32
    return %c0_i32, %arg0 : i32, i32
  }
  func.func @transform_3(%arg0: i32) -> (i32, i32) {
    %c0_i32 = arith.constant 0 : i32
    %c0_i32_0 = arith.constant 0 : i32
    return %c0_i32, %arg0 : i32, i32
  }
  func.func @transform_4(%arg0: i32) -> (i32, i32, i32, i32) {
    %c0_i32 = arith.constant 0 : i32
    %c0_i32_0 = arith.constant 0 : i32
    %c0_i32_1 = arith.constant 0 : i32
    %c0_i32_2 = arith.constant 0 : i32
    return %c0_i32, %c0_i32_0, %c0_i32_1, %arg0 : i32, i32, i32, i32
  }
}

</mosaic_0001>

<bundles_post_ra>
// kernel: tpu_custom_call.1
= control target key start
LH: loop header
LB: loop body
LE: loop exit
PB: predicated region body
PF: predicated region fallthrough
CT: control target
= control target key end

     0   :  { %vm83_vm0 = vcmask 31744   ;;  %vm86_vm1 = vcmask 25600   ;;  %v2267_v0 = vmov 0.0   ;;  %vm98_vm2 = vcmask 24576   ;;  %s5041_s0 = inlined_call_operand.vmem [shape: f32[2,16,16,4], index: 0, kind: input, shape index: {}]   ;;  %s5042_s1 = inlined_call_operand.vmem [shape: f32[9,4], index: 1, kind: input, shape index: {}]   ;;  %s5043_s2 = inlined_call_operand.vmem [shape: f32[1,4], index: 2, kind: input, shape index: {}]   ;;  %s5044_s3 = inlined_call_operand.vmem [shape: f32[1,4], index: 3, kind: input, shape index: {}]   ;;  %s5045_s4 = inlined_call_operand.vmem [shape: f32[2,16,16,4], index: 4, kind: output, shape index: {}]  }
   0x1   :  { %84 = vst.msk [vmem:[#allocation2] sm:$0xff] %vm83_vm0, %v2267_v0  ;;  %85 = vst.msk [vmem:[#allocation2 + $0x8] sm:$0xff] %vm83_vm0, %v2267_v0  ;;  %v2316_v1 = vld [vmem:[%s5041_s0] sm:$0xff]  ;;  %v2321_v2 = vld [vmem:[%s5041_s0 + $0x8] sm:$0xff]  ;;  %v452_v50 = vlaneseq }
   0x2   :  { %88 = vst.msk [vmem:[#allocation2 + $0x1b0] sm:$0xff] %vm83_vm0, %v2267_v0  ;;  %89 = vst.msk [vmem:[#allocation2 + $0x1b8] sm:$0xff] %vm83_vm0, %v2267_v0  ;;  %v2474_v3 = vld [vmem:[%s5041_s0 + $0x10] sm:$0xff]  ;;  %v2479_v4 = vld [vmem:[%s5041_s0 + $0x18] sm:$0xff] }
   0x3   :  { %92 = vst.msk [vmem:[#allocation2 + $0x198] sm:$0xff] %vm83_vm0, %v2267_v0  ;;  %93 = vst.msk [vmem:[#allocation2 + $0x1a0] sm:$0xff] %vm83_vm0, %v2267_v0  ;;  %v2484_v5 = vld [vmem:[%s5041_s0 + $0x20] sm:$0xff]  ;;  %v2495_v6 = vld [vmem:[%s5041_s0 + $0x28] sm:$0xff]  ;;  %v453_v52 = vshrl.u32 %v452_v50, 7 }
   0x4   :  { %95 = vst.msk [vmem:[#allocation2 + $0x348] sm:$0xff] %vm83_vm0, %v2267_v0  ;;  %96 = vst.msk [vmem:[#allocation2 + $0x350] sm:$0xff] %vm83_vm0, %v2267_v0  ;;  %v2500_v7 = vld [vmem:[%s5041_s0 + $0x30] sm:$0xff]  ;;  %v2505_v8 = vld [vmem:[%s5041_s0 + $0x38] sm:$0xff] }
   0x5   :  { %87 = vst.msk [vmem:[#allocation2 + $0x10] sm:$0x3] %vm86_vm1, %v2267_v0  ;;  %90 = vst.msk [vmem:[#allocation2 + $0x1c0] sm:$0x3] %vm86_vm1, %v2267_v0  ;;  %v2516_v9 = vld [vmem:[%s5041_s0 + $0x40] sm:$0xff]  ;;  %v2521_v10 = vld [vmem:[%s5041_s0 + $0x48] sm:$0xff] }
   0x6   :  { %94 = vst.msk [vmem:[#allocation2 + $0x1a8] sm:$0x3] %vm86_vm1, %v2267_v0  ;;  %97 = vst.msk [vmem:[#allocation2 + $0x358] sm:$0x3] %vm86_vm1, %v2267_v0  ;;  %v2530_v11 = vld [vmem:[%s5041_s0 + $0x50] sm:$0xff]  ;;  %v2535_v12 = vld [vmem:[%s5041_s0 + $0x58] sm:$0xff] }
   0x7   :  { %5173 = vst [vmem:[#allocation3_spill] sm:$0xff] %v2316_v1  ;;  %5174 = vst [vmem:[#allocation4_spill] sm:$0xff] %v2321_v2  ;;  %v2540_v13 = vld [vmem:[%s5041_s0 + $0x60] sm:$0xff]  ;;  %v2551_v14 = vld [vmem:[%s5041_s0 + $0x68] sm:$0xff]  ;;  %v2812_v54 = vsub.s32 0, %v453_v52  ;;  %v586_v55 = vsub.s32 1, %v453_v52 }
   0x8   :  { %99 = vst.msk [vmem:[#allocation2] sm:$0x1] %vm98_vm2, %v2267_v0  ;;  %100 = vst.msk [vmem:[#allocation2 + $0x18] sm:$0x1] %vm98_vm2, %v2267_v0  ;;  %v2556_v15 = vld [vmem:[%s5041_s0 + $0x70] sm:$0xff]  ;;  %v2561_v16 = vld [vmem:[%s5041_s0 + $0x78] sm:$0xff] }
   0x9   :  { %101 = vst.msk [vmem:[#allocation2 + $0x30] sm:$0x1] %vm98_vm2, %v2267_v0  ;;  %102 = vst.msk [vmem:[#allocation2 + $0x48] sm:$0x1] %vm98_vm2, %v2267_v0  ;;  %v2572_v17 = vld [vmem:[%s5041_s0 + $0x80] sm:$0xff]  ;;  %v2577_v18 = vld [vmem:[%s5041_s0 + $0x88] sm:$0xff] }
   0xa   :  { %103 = vst.msk [vmem:[#allocation2 + $0x60] sm:$0x1] %vm98_vm2, %v2267_v0  ;;  %104 = vst.msk [vmem:[#allocation2 + $0x78] sm:$0x1] %vm98_vm2, %v2267_v0  ;;  %v2586_v19 = vld [vmem:[%s5041_s0 + $0x90] sm:$0xff]  ;;  %v2591_v20 = vld [vmem:[%s5041_s0 + $0x98] sm:$0xff] }
   0xb   :  { %105 = vst.msk [vmem:[#allocation2 + $0x90] sm:$0x1] %vm98_vm2, %v2267_v0  ;;  %106 = vst.msk [vmem:[#allocation2 + $0xa8] sm:$0x1] %vm98_vm2, %v2267_v0  ;;  %v2596_v21 = vld [vmem:[%s5041_s0 + $0xa0] sm:$0xff]  ;;  %v2607_v22 = vld [vmem:[%s5041_s0 + $0xa8] sm:$0xff] }
   0xc   :  { %107 = vst.msk [vmem:[#allocation2 + $0xc0] sm:$0x1] %vm98_vm2, %v2267_v0  ;;  %108 = vst.msk [vmem:[#allocation2 + $0xd8] sm:$0x1] %vm98_vm2, %v2267_v0  ;;  %v2612_v23 = vld [vmem:[%s5041_s0 + $0xb0] sm:$0xff]  ;;  %v2617_v24 = vld [vmem:[%s5041_s0 + $0xb8] sm:$0xff] }
   0xd   :  { %109 = vst.msk [vmem:[#allocation2 + $0xf0] sm:$0x1] %vm98_vm2, %v2267_v0  ;;  %110 = vst.msk [vmem:[#allocation2 + $0x108] sm:$0x1] %vm98_vm2, %v2267_v0  ;;  %v2628_v25 = vld [vmem:[%s5041_s0 + $0xc0] sm:$0xff]  ;;  %v2633_v26 = vld [vmem:[%s5041_s0 + $0xc8] sm:$0xff] }
   0xe   :  { %111 = vst.msk [vmem:[#allocation2 + $0x120] sm:$0x1] %vm98_vm2, %v2267_v0  ;;  %112 = vst.msk [vmem:[#allocation2 + $0x138] sm:$0x1] %vm98_vm2, %v2267_v0  ;;  %v2638_v27 = vld [vmem:[%s5041_s0 + $0xd0] sm:$0xff]  ;;  %v2649_v28 = vld [vmem:[%s5041_s0 + $0xd8] sm:$0xff] }
   0xf   :  { %113 = vst.msk [vmem:[#allocation2 + $0x150] sm:$0x1] %vm98_vm2, %v2267_v0  ;;  %114 = vst.msk [vmem:[#allocation2 + $0x168] sm:$0x1] %vm98_vm2, %v2267_v0  ;;  %v2654_v29 = vld [vmem:[%s5041_s0 + $0xe0] sm:$0xff]  ;;  %v2659_v30 = vld [vmem:[%s5041_s0 + $0xe8] sm:$0xff] }
  0x10   :  { %115 = vst.msk [vmem:[#allocation2 + $0x180] sm:$0x1] %vm98_vm2, %v2267_v0  ;;  %116 = vst.msk [vmem:[#allocation2 + $0x198] sm:$0x1] %vm98_vm2, %v2267_v0  ;;  %v2670_v31 = vld [vmem:[%s5041_s0 + $0xf0] sm:$0xff]  ;;  %v2675_v32 = vld [vmem:[%s5041_s0 + $0xf8] sm:$0xff] }
  0x11   :  { %117 = vst.msk [vmem:[#allocation2 + $0x1b0] sm:$0x1] %vm98_vm2, %v2267_v0  ;;  %118 = vst.msk [vmem:[#allocation2 + $0x1c8] sm:$0x1] %vm98_vm2, %v2267_v0  ;;  %v2680_v33 = vld [vmem:[%s5041_s0 + $0x100] sm:$0xff]  ;;  %v2691_v34 = vld [vmem:[%s5041_s0 + $0x108] sm:$0xff] }
  0x12   :  { %119 = vst.msk [vmem:[#allocation2 + $0x1e0] sm:$0x1] %vm98_vm2, %v2267_v0  ;;  %120 = vst.msk [vmem:[#allocation2 + $0x1f8] sm:$0x1] %vm98_vm2, %v2267_v0  ;;  %v2696_v35 = vld [vmem:[%s5041_s0 + $0x110] sm:$0xff]  ;;  %v2701_v36 = vld [vmem:[%s5041_s0 + $0x118] sm:$0xff] }
  0x13   :  { %121 = vst.msk [vmem:[#allocation2 + $0x210] sm:$0x1] %vm98_vm2, %v2267_v0  ;;  %122 = vst.msk [vmem:[#allocation2 + $0x228] sm:$0x1] %vm98_vm2, %v2267_v0  ;;  %v2712_v37 = vld [vmem:[%s5041_s0 + $0x120] sm:$0xff]  ;;  %v2717_v38 = vld [vmem:[%s5041_s0 + $0x128] sm:$0xff] }
  0x14   :  { %123 = vst.msk [vmem:[#allocation2 + $0x240] sm:$0x1] %vm98_vm2, %v2267_v0  ;;  %124 = vst.msk [vmem:[#allocation2 + $0x258] sm:$0x1] %vm98_vm2, %v2267_v0  ;;  %v2722_v39 = vld [vmem:[%s5041_s0 + $0x130] sm:$0xff]  ;;  %v2733_v40 = vld [vmem:[%s5041_s0 + $0x138] sm:$0xff] }
  0x15   :  { %125 = vst.msk [vmem:[#allocation2 + $0x270] sm:$0x1] %vm98_vm2, %v2267_v0  ;;  %126 = vst.msk [vmem:[#allocation2 + $0x288] sm:$0x1] %vm98_vm2, %v2267_v0  ;;  %v2740_v41 = vld [vmem:[%s5041_s0 + $0x140] sm:$0xff]  ;;  %v2745_v42 = vld [vmem:[%s5041_s0 + $0x148] sm:$0xff] }
  0x16   :  { %127 = vst.msk [vmem:[#allocation2 + $0x2a0] sm:$0x1] %vm98_vm2, %v2267_v0  ;;  %128 = vst.msk [vmem:[#allocation2 + $0x2b8] sm:$0x1] %vm98_vm2, %v2267_v0  ;;  %v2750_v43 = vld [vmem:[%s5041_s0 + $0x150] sm:$0xff]  ;;  %v2761_v44 = vld [vmem:[%s5041_s0 + $0x158] sm:$0xff] }
  0x17   :  { %129 = vst.msk [vmem:[#allocation2 + $0x2d0] sm:$0x1] %vm98_vm2, %v2267_v0  ;;  %130 = vst.msk [vmem:[#allocation2 + $0x2e8] sm:$0x1] %vm98_vm2, %v2267_v0  ;;  %v2766_v45 = vld [vmem:[%s5041_s0 + $0x160] sm:$0xff]  ;;  %v2775_v46 = vld [vmem:[%s5041_s0 + $0x168] sm:$0xff] }
  0x18   :  { %131 = vst.msk [vmem:[#allocation2 + $0x300] sm:$0x1] %vm98_vm2, %v2267_v0  ;;  %132 = vst.msk [vmem:[#allocation2 + $0x318] sm:$0x1] %vm98_vm2, %v2267_v0  ;;  %v2782_v47 = vld [vmem:[%s5041_s0 + $0x170] sm:$0xff]  ;;  %v2787_v48 = vld [vmem:[%s5041_s0 + $0x178] sm:$0xff] }
  0x19   :  { %133 = vst.msk [vmem:[#allocation2 + $0x330] sm:$0x1] %vm98_vm2, %v2267_v0  ;;  %134 = vst.msk [vmem:[#allocation2 + $0x348] sm:$0x1] %vm98_vm2, %v2267_v0  ;;  %v2796_v49 = vld [vmem:[%s5041_s0 + $0x180] sm:$0xff]  ;;  %v2803_v51 = vld [vmem:[%s5041_s0 + $0x188] sm:$0xff] }
  0x1a   :  { %135 = vst.msk [vmem:[#allocation2 + $0x11] sm:$0x1] %vm98_vm2, %v2267_v0  ;;  %136 = vst.msk [vmem:[#allocation2 + $0x29] sm:$0x1] %vm98_vm2, %v2267_v0  ;;  %v2810_v53 = vld [vmem:[%s5041_s0 + $0x190] sm:$0xff]  ;;  %v81_v56 = vld [vmem:[%s5042_s1] sm:$0xff] }
  0x1b   :  { %137 = vst.msk [vmem:[#allocation2 + $0x41] sm:$0x1] %vm98_vm2, %v2267_v0  ;;  %138 = vst.msk [vmem:[#allocation2 + $0x59] sm:$0x1] %vm98_vm2, %v2267_v0  ;;  %v718_v57 = vsub.s32 2, %v453_v52  ;;  %v237_v58 = vld [vmem:[#allocation2 + $0x8] sm:$0xff]  ;;  %v2820_v50 = vrot.slane %v81_v56, %v2812_v54 }
  0x1c   :  { %139 = vst.msk [vmem:[#allocation2 + $0x71] sm:$0x1] %vm98_vm2, %v2267_v0  ;;  %140 = vst.msk [vmem:[#allocation2 + $0x89] sm:$0x1] %vm98_vm2, %v2267_v0  ;;  %v850_v59 = vsub.s32 3, %v453_v52  ;;  %v982_v60 = vsub.s32 4, %v453_v52 }
  0x1d   :  { %141 = vst.msk [vmem:[#allocation2 + $0xa1] sm:$0x1] %vm98_vm2, %v2267_v0  ;;  %142 = vst.msk [vmem:[#allocation2 + $0xb9] sm:$0x1] %vm98_vm2, %v2267_v0  ;;  %v1246_v61 = vsub.s32 6, %v453_v52  ;;  %v1378_v62 = vsub.s32 7, %v453_v52 }
  0x1e   :  { %143 = vst.msk [vmem:[#allocation2 + $0xd1] sm:$0x1] %vm98_vm2, %v2267_v0  ;;  %144 = vst.msk [vmem:[#allocation2 + $0xe9] sm:$0x1] %vm98_vm2, %v2267_v0  ;;  %v271_v63 = vld [vmem:[#allocation2 + $0x1a0] sm:$0xff] }
  0x1f   :  { %145 = vst.msk [vmem:[#allocation2 + $0x101] sm:$0x1] %vm98_vm2, %v2267_v0  ;;  %146 = vst.msk [vmem:[#allocation2 + $0x119] sm:$0x1] %vm98_vm2, %v2267_v0 }
  0x20   :  { %147 = vst.msk [vmem:[#allocation2 + $0x131] sm:$0x1] %vm98_vm2, %v2267_v0  ;;  %148 = vst.msk [vmem:[#allocation2 + $0x149] sm:$0x1] %vm98_vm2, %v2267_v0 }
  0x21   :  { %149 = vst.msk [vmem:[#allocation2 + $0x161] sm:$0x1] %vm98_vm2, %v2267_v0  ;;  %150 = vst.msk [vmem:[#allocation2 + $0x179] sm:$0x1] %vm98_vm2, %v2267_v0 }
  0x22   :  { %151 = vst.msk [vmem:[#allocation2 + $0x191] sm:$0x1] %vm98_vm2, %v2267_v0  ;;  %152 = vst.msk [vmem:[#allocation2 + $0x1a9] sm:$0x1] %vm98_vm2, %v2267_v0 }
  0x23   :  { %153 = vst.msk [vmem:[#allocation2 + $0x1c1] sm:$0x1] %vm98_vm2, %v2267_v0  ;;  %154 = vst.msk [vmem:[#allocation2 + $0x1d9] sm:$0x1] %vm98_vm2, %v2267_v0 }
  0x24   :  { %155 = vst.msk [vmem:[#allocation2 + $0x1f1] sm:$0x1] %vm98_vm2, %v2267_v0  ;;  %156 = vst.msk [vmem:[#allocation2 + $0x209] sm:$0x1] %vm98_vm2, %v2267_v0 }
  0x25   :  { %157 = vst.msk [vmem:[#allocation2 + $0x221] sm:$0x1] %vm98_vm2, %v2267_v0  ;;  %158 = vst.msk [vmem:[#allocation2 + $0x239] sm:$0x1] %vm98_vm2, %v2267_v0 }
  0x26   :  { %159 = vst.msk [vmem:[#allocation2 + $0x251] sm:$0x1] %vm98_vm2, %v2267_v0  ;;  %160 = vst.msk [vmem:[#allocation2 + $0x269] sm:$0x1] %vm98_vm2, %v2267_v0 }
  0x27   :  { %161 = vst.msk [vmem:[#allocation2 + $0x281] sm:$0x1] %vm98_vm2, %v2267_v0  ;;  %162 = vst.msk [vmem:[#allocation2 + $0x299] sm:$0x1] %vm98_vm2, %v2267_v0 }
  0x28   :  { %163 = vst.msk [vmem:[#allocation2 + $0x2b1] sm:$0x1] %vm98_vm2, %v2267_v0  ;;  %164 = vst.msk [vmem:[#allocation2 + $0x2c9] sm:$0x1] %vm98_vm2, %v2267_v0 }
  0x29   :  { %165 = vst.msk [vmem:[#allocation2 + $0x2e1] sm:$0x1] %vm98_vm2, %v2267_v0  ;;  %166 = vst.msk [vmem:[#allocation2 + $0x2f9] sm:$0x1] %vm98_vm2, %v2267_v0 }
  0x2a   :  { %167 = vst.msk [vmem:[#allocation2 + $0x311] sm:$0x1] %vm98_vm2, %v2267_v0  ;;  %168 = vst.msk [vmem:[#allocation2 + $0x329] sm:$0x1] %vm98_vm2, %v2267_v0 }
  0x2b   :  { %169 = vst.msk [vmem:[#allocation2 + $0x341] sm:$0x1] %vm98_vm2, %v2267_v0  ;;  %170 = vst.msk [vmem:[#allocation2 + $0x359] sm:$0x1] %vm98_vm2, %v2267_v0  ;;  %v273_v0 = vld [vmem:[#allocation2 + $0x1b8] sm:$0xff] }
  0x2c   :  { %172 = vst.msk [vmem:[#allocation2 + $0x19] sm:$0xff] %vm83_vm0, %v2316_v1  ;;  %173 = vst.msk [vmem:[#allocation2 + $0x21] sm:$0xff] %vm83_vm0, %v2321_v2 }
  0x2d   :  { %5175 = vst [vmem:[#allocation5_spill] sm:$0xff] %v2474_v3  ;;  %5176 = vst [vmem:[#allocation6_spill] sm:$0xff] %v2479_v4 }
  0x2e   :  { %5177 = vst [vmem:[#allocation7_spill] sm:$0xff] %v2484_v5  ;;  %174 = vst.msk [vmem:[#allocation2 + $0x31] sm:$0xff] %vm83_vm0, %v2474_v3 }
  0x2f   :  { %175 = vst.msk [vmem:[#allocation2 + $0x39] sm:$0xff] %vm83_vm0, %v2479_v4  ;;  %176 = vst.msk [vmem:[#allocation2 + $0x49] sm:$0xff] %vm83_vm0, %v2484_v5 }
  0x30   :  { %5178 = vst [vmem:[#allocation8_spill] sm:$0xff] %v2495_v6  ;;  %5179 = vst [vmem:[#allocation9_spill] sm:$0xff] %v2500_v7 }
  0x31   :  { %5180 = vst [vmem:[#allocation10_spill] sm:$0xff] %v2505_v8  ;;  %177 = vst.msk [vmem:[#allocation2 + $0x51] sm:$0xff] %vm83_vm0, %v2495_v6 }
  0x32   :  { %178 = vst.msk [vmem:[#allocation2 + $0x61] sm:$0xff] %vm83_vm0, %v2500_v7  ;;  %179 = vst.msk [vmem:[#allocation2 + $0x69] sm:$0xff] %vm83_vm0, %v2505_v8 }
  0x33   :  { %5181 = vst [vmem:[#allocation11_spill] sm:$0xff] %v2516_v9  ;;  %5182 = vst [vmem:[#allocation12_spill] sm:$0xff] %v2521_v10 }
  0x34   :  { %180 = vst.msk [vmem:[#allocation2 + $0x79] sm:$0xff] %vm83_vm0, %v2516_v9  ;;  %181 = vst.msk [vmem:[#allocation2 + $0x81] sm:$0xff] %vm83_vm0, %v2521_v10 }
  0x35   :  { %5183 = vst [vmem:[#allocation13_spill] sm:$0xff] %v2530_v11  ;;  %5184 = vst [vmem:[#allocation14_spill] sm:$0xff] %v2535_v12 }
  0x36   :  { %5185 = vst [vmem:[#allocation15_spill] sm:$0xff] %v2540_v13  ;;  %182 = vst.msk [vmem:[#allocation2 + $0x91] sm:$0xff] %vm83_vm0, %v2530_v11 }
  0x37   :  { %183 = vst.msk [vmem:[#allocation2 + $0x99] sm:$0xff] %vm83_vm0, %v2535_v12  ;;  %184 = vst.msk [vmem:[#allocation2 + $0xa9] sm:$0xff] %vm83_vm0, %v2540_v13  ;;  %v2911_v13 = vld [vmem:[%s5041_s0 + $0x1a8] sm:$0xff] }
  0x38   :  { %5186 = vst [vmem:[#allocation16_spill] sm:$0xff] %v2551_v14  ;;  %5187 = vst [vmem:[#allocation17_spill] sm:$0xff] %v2556_v15 }
  0x39   :  { %5188 = vst [vmem:[#allocation18_spill] sm:$0xff] %v2561_v16  ;;  %185 = vst.msk [vmem:[#allocation2 + $0xb1] sm:$0xff] %vm83_vm0, %v2551_v14  ;;  %v388_v14 = vld [vmem:[#allocation2 + $0x62] sm:$0xff] }
  0x3a   :  { %186 = vst.msk [vmem:[#allocation2 + $0xc1] sm:$0xff] %vm83_vm0, %v2556_v15  ;;  %187 = vst.msk [vmem:[#allocation2 + $0xc9] sm:$0xff] %vm83_vm0, %v2561_v16  ;;  %v2906_v15 = vld [vmem:[#allocation2 + $0x69] sm:$0xff] }
  0x3b   :  { %5189 = vst [vmem:[#allocation19_spill] sm:$0xff] %v2572_v17  ;;  %5190 = vst [vmem:[#allocation20_spill] sm:$0xff] %v2577_v18  ;;  %v2975_v6 = vld [vmem:[#allocation2 + $0x7a] sm:$0xff]  ;;  %v3005_v1 = vld [vmem:[#allocation2 + $0x82] sm:$0xff] }
  0x3c   :  { %188 = vst.msk [vmem:[#allocation2 + $0xd9] sm:$0xff] %vm83_vm0, %v2572_v17  ;;  %189 = vst.msk [vmem:[#allocation2 + $0xe1] sm:$0xff] %vm83_vm0, %v2577_v18  ;;  %v245_v17 = vld [vmem:[#allocation2 + $0x68] sm:$0xff] }
  0x3d   :  { %5191 = vst [vmem:[#allocation21_spill] sm:$0xff] %v2586_v19  ;;  %5192 = vst [vmem:[#allocation22_spill] sm:$0xff] %v2591_v20 }
  0x3e   :  { %5193 = vst [vmem:[#allocation23_spill] sm:$0xff] %v2596_v21  ;;  %190 = vst.msk [vmem:[#allocation2 + $0xf1] sm:$0xff] %vm83_vm0, %v2586_v19  ;;  %v415_v19 = vld [vmem:[#allocation2 + $0x1a2] sm:$0xff] }
  0x3f   :  { %191 = vst.msk [vmem:[#allocation2 + $0xf9] sm:$0xff] %vm83_vm0, %v2591_v20  ;;  %192 = vst.msk [vmem:[#allocation2 + $0x109] sm:$0xff] %vm83_vm0, %v2596_v21 }
  0x40   :  { %5194 = vst [vmem:[#allocation24_spill] sm:$0xff] %v2607_v22  ;;  %5195 = vst [vmem:[#allocation25_spill] sm:$0xff] %v2612_v23 }
  0x41   :  { %5196 = vst [vmem:[#allocation26_spill] sm:$0xff] %v2617_v24  ;;  %193 = vst.msk [vmem:[#allocation2 + $0x111] sm:$0xff] %vm83_vm0, %v2607_v22 }
  0x42   :  { %194 = vst.msk [vmem:[#allocation2 + $0x121] sm:$0xff] %vm83_vm0, %v2612_v23  ;;  %195 = vst.msk [vmem:[#allocation2 + $0x129] sm:$0xff] %vm83_vm0, %v2617_v24  ;;  %v2886_v24 = vld [vmem:[%s5042_s1 + $0x8] ss:$0 sm:$0xff] }
  0x43   :  { %5197 = vst [vmem:[#allocation27_spill] sm:$0xff] %v2628_v25  ;;  %5198 = vst [vmem:[#allocation28_spill] sm:$0xff] %v2633_v26 }
  0x44   :  { %5199 = vst [vmem:[#allocation29_spill] sm:$0xff] %v2638_v27  ;;  %196 = vst.msk [vmem:[#allocation2 + $0x139] sm:$0xff] %vm83_vm0, %v2628_v25 }
  0x45   :  { %197 = vst.msk [vmem:[#allocation2 + $0x141] sm:$0xff] %vm83_vm0, %v2633_v26  ;;  %198 = vst.msk [vmem:[#allocation2 + $0x151] sm:$0xff] %vm83_vm0, %v2638_v27  ;;  %v383_v26 = vld [vmem:[#allocation2 + $0x22] sm:$0xff] }
  0x46   :  { %5200 = vst [vmem:[#allocation30_spill] sm:$0xff] %v2649_v28  ;;  %5201 = vst [vmem:[#allocation31_spill] sm:$0xff] %v2654_v29 }
  0x47   :  { %5202 = vst [vmem:[#allocation32_spill] sm:$0xff] %v2659_v30  ;;  %199 = vst.msk [vmem:[#allocation2 + $0x159] sm:$0xff] %vm83_vm0, %v2649_v28  ;;  %v2871_v28 = vld [vmem:[#allocation2 + $0x61] sm:$0xff] }
  0x48   :  { %200 = vst.msk [vmem:[#allocation2 + $0x169] sm:$0xff] %vm83_vm0, %v2654_v29  ;;  %201 = vst.msk [vmem:[#allocation2 + $0x171] sm:$0xff] %vm83_vm0, %v2659_v30 }
  0x49   :  { %5203 = vst [vmem:[#allocation33_spill] sm:$0xff] %v2670_v31  ;;  %5204 = vst [vmem:[#allocation34_spill] sm:$0xff] %v2675_v32 }
  0x4a   :  { %5205 = vst [vmem:[#allocation35_spill] sm:$0xff] %v2680_v33  ;;  %202 = vst.msk [vmem:[#allocation2 + $0x181] sm:$0xff] %vm83_vm0, %v2670_v31  ;;  %v2846_v31 = vld [vmem:[#allocation2 + $0x51] sm:$0xff] }
  0x4b   :  { %203 = vst.msk [vmem:[#allocation2 + $0x189] sm:$0xff] %vm83_vm0, %v2675_v32  ;;  %204 = vst.msk [vmem:[#allocation2 + $0x1c9] sm:$0xff] %vm83_vm0, %v2680_v33  ;;  %v272_v33 = vld [vmem:[#allocation2 + $0x1b0] sm:$0xff] }
  0x4c   :  { %5206 = vst [vmem:[#allocation36_spill] sm:$0xff] %v2691_v34  ;;  %5207 = vst [vmem:[#allocation37_spill] sm:$0xff] %v2696_v35  ;;  %v2844_v32 = vld [vmem:[#allocation2 + $0x50] sm:$0xff]  ;;  %v488_v27 = vmul.f32 %v2820_v50, %v272_v33 }
  0x4d   :  { %5208 = vst [vmem:[#allocation38_spill] sm:$0xff] %v2701_v36  ;;  %205 = vst.msk [vmem:[#allocation2 + $0x1d1] sm:$0xff] %vm83_vm0, %v2691_v34  ;;  %v489_v34 = vmul.f32 %v2820_v50, %v273_v0  ;;  %v387_v33 = vld [vmem:[#allocation2 + $0x52] sm:$0xff] }
  0x4e   :  { %206 = vst.msk [vmem:[#allocation2 + $0x1e1] sm:$0xff] %vm83_vm0, %v2696_v35  ;;  %207 = vst.msk [vmem:[#allocation2 + $0x1e9] sm:$0xff] %vm83_vm0, %v2701_v36  ;;  %v2837_v36 = vrot.slane %v81_v56, %v1246_v61  ;;  %v2839_v35 = vrot.slane %v81_v56, %v1378_v62  ;;  %v381_v61 = vld [vmem:[#allocation2 + $0xa] sm:$0xff] }
  0x4f   :  { %5209 = vst [vmem:[#allocation39_spill] sm:$0xff] %v2712_v37  ;;  %5210 = vst [vmem:[#allocation40_spill] sm:$0xff] %v2717_v38 }
  0x50   :  { %5211 = vst [vmem:[#allocation41_spill] sm:$0xff] %v2722_v39  ;;  %208 = vst.msk [vmem:[#allocation2 + $0x1f9] sm:$0xff] %vm83_vm0, %v2712_v37  ;;  %v2835_v37 = vrot.slane %v81_v56, %v982_v60  ;;  %v306_v60 = vld [vmem:[#allocation2 + $0x348] sm:$0xff]  ;;  %v2852_v62 = vmul.f32 %v2837_v36, %v271_v63  ;;  %v3001_v2 = vmul.f32 %v2837_v36, %v245_v17 }
  0x51   :  { %209 = vst.msk [vmem:[#allocation2 + $0x201] sm:$0xff] %vm83_vm0, %v2717_v38  ;;  %210 = vst.msk [vmem:[#allocation2 + $0x211] sm:$0xff] %vm83_vm0, %v2722_v39  ;;  %v311_v39 = vld [vmem:[#allocation2 + $0x21] sm:$0xff]  ;;  %v2833_v38 = vrot.slane %v81_v56, %v850_v59  ;;  %v2899_v16 = vmul.f32 %v2837_v36, %v306_v60  ;;  %v241_v60 = vld [vmem:[#allocation2 + $0x38] sm:$0xff] }
  0x52   :  { %5212 = vst [vmem:[#allocation42_spill] sm:$0xff] %v2733_v40  ;;  %211 = vst.msk [vmem:[#allocation2 + $0x219] sm:$0xff] %vm83_vm0, %v2733_v40  ;;  %v345_v40 = vld [vmem:[#allocation2 + $0x1b9] sm:$0xff]  ;;  %v2981_v5 = vmul.f32 %v2835_v37, %v2871_v28 }
  0x53   :  { %5213 = vst [vmem:[#allocation43_spill] sm:$0xff] %v2740_v41  ;;  %5214 = vst [vmem:[#allocation44_spill] sm:$0xff] %v2745_v42  ;;  %v859_v10 = vmul.f32 %v2833_v38, %v245_v17 }
  0x54   :  { %5215 = vst [vmem:[#allocation45_spill] sm:$0xff] %v2750_v43  ;;  %212 = vst.msk [vmem:[#allocation2 + $0x229] sm:$0xff] %vm83_vm0, %v2740_v41  ;;  %v414_v41 = vld [vmem:[#allocation2 + $0x19a] sm:$0xff] }
  0x55   :  { %213 = vst.msk [vmem:[#allocation2 + $0x231] sm:$0xff] %vm83_vm0, %v2745_v42  ;;  %214 = vst.msk [vmem:[#allocation2 + $0x241] sm:$0xff] %vm83_vm0, %v2750_v43  ;;  %v416_v43 = vld [vmem:[#allocation2 + $0x1b2] sm:$0xff]  ;;  %v2831_v42 = vrot.slane %v81_v56, %v718_v57  ;;  %v2893_v20 = vmul.f32 %v2886_v24, %v414_v41 }
  0x56   :  { %5216 = vst [vmem:[#allocation46_spill] sm:$0xff] %v2761_v44  ;;  %5217 = vst [vmem:[#allocation47_spill] sm:$0xff] %v2766_v45 }
  0x57   :  { %215 = vst.msk [vmem:[#allocation2 + $0x249] sm:$0xff] %vm83_vm0, %v2761_v44  ;;  %216 = vst.msk [vmem:[#allocation2 + $0x259] sm:$0xff] %vm83_vm0, %v2766_v45  ;;  %v344_v45 = vld [vmem:[#allocation2 + $0x1b1] sm:$0xff]  ;;  %v378_v44 = vld [vmem:[#allocation2 + $0x349] sm:$0xff]  ;;  %v721_v22 = vmul.f32 %v2831_v42, %v381_v61  ;;  %v723_v41 = vmul.f32 %v2831_v42, %v383_v26 }
  0x58   :  { %5218 = vst [vmem:[#allocation48_spill] sm:$0xff] %v2775_v46  ;;  %217 = vst.msk [vmem:[#allocation2 + $0x261] sm:$0xff] %vm83_vm0, %v2775_v46  ;;  %v309_v46 = vld [vmem:[#allocation2 + $0x9] sm:$0xff]  ;;  %v2881_v25 = vmul.f32 %v2839_v35, %v378_v44 }
  0x59   :  { %5219 = vst [vmem:[#allocation49_spill] sm:$0xff] %v2782_v47  ;;  %5220 = vst [vmem:[#allocation50_spill] sm:$0xff] %v2787_v48 }
  0x5a   :  { %218 = vst.msk [vmem:[#allocation2 + $0x271] sm:$0xff] %vm83_vm0, %v2782_v47  ;;  %219 = vst.msk [vmem:[#allocation2 + $0x279] sm:$0xff] %vm83_vm0, %v2787_v48  ;;  %v307_v48 = vld [vmem:[#allocation2 + $0x350] sm:$0xff]  ;;  %v342_v47 = vld [vmem:[#allocation2 + $0x199] sm:$0xff] }
  0x5b   :  { %5221 = vst [vmem:[#allocation51_spill] sm:$0xff] %v2796_v49  ;;  %220 = vst.msk [vmem:[#allocation2 + $0x289] sm:$0xff] %vm83_vm0, %v2796_v49  ;;  %v1114_v49 = vsub.s32 5, %v453_v52  ;;  %v239_v52 = vld [vmem:[#allocation2 + $0x20] sm:$0xff]  ;;  %v2858_v0 = vmul.f32 %v2839_v35, %v342_v47 }
  0x5c   :  { %5222 = vst [vmem:[#allocation52_spill] sm:$0xff] %v2803_v51  ;;  %221 = vst.msk [vmem:[#allocation2 + $0x291] sm:$0xff] %vm83_vm0, %v2803_v51  ;;  %v2822_v51 = vrot.slane %v81_v56, %v586_v55  ;;  %v270_v55 = vld [vmem:[#allocation2 + $0x198] sm:$0xff]  ;;  %v459_v63 = vmul.f32 %v2820_v50, %v239_v52 }
  0x5d   :  { %5223 = vst [vmem:[#allocation53_spill] sm:$0xff] %v2810_v53  ;;  %5224 = vst [vmem:[#allocation54_spill] sm:$0xff] %v2812_v54  ;;  %v2848_v30 = vrot.slane %v81_v56, %v1114_v49  ;;  %v343_v49 = vld [vmem:[#allocation2 + $0x1a1] sm:$0xff]  ;;  %v2890_v21 = vmul.f32 %v2837_v36, %v270_v55  ;;  %v3010_v54 = vld [vmem:[%s5041_s0 + $0x1b8] sm:$0xff] }
  0x5e   :  { %222 = vst.msk [vmem:[#allocation2 + $0x2a1] sm:$0xff] %vm83_vm0, %v2810_v53  ;;  %v2827_v53 = vld [vmem:[%s5041_s0 + $0x198] sm:$0xff]  ;;  %v589_v57 = vmul.f32 %v2822_v51, %v309_v46  ;;  %v620_v59 = vmul.f32 %v2822_v51, %v344_v45  ;;  %v2863_v46 = vld [vmem:[%s5041_s0 + $0x1a0] sm:$0xff]  ;;  %v621_v56 = vmul.f32 %v2822_v51, %v345_v40  ;;  %v2867_v45 = vmul.f32 %v2831_v42, %v416_v43 }
  0x5f   :  { %5225 = vst [vmem:[#allocation55_spill] sm:$0xff] %v2827_v53  ;;  %223 = vst.msk [vmem:[#allocation2 + $0x2a9] sm:$0xff] %vm83_vm0, %v2827_v53  ;;  %v457_v53 = vmul.f32 %v2820_v50, %v237_v58  ;;  %v2855_v58 = vmul.f32 %v2837_v36, %v307_v48  ;;  %v591_v29 = vmul.f32 %v2822_v51, %v311_v39  ;;  %v244_v48 = vld [vmem:[#allocation2 + $0x60] sm:$0xff] }
  0x60   :  { %5227 = vst [vmem:[#allocation57_spill] sm:$0xff] %v2863_v46  ;;  %224 = vst.msk [vmem:[#allocation2 + $0x2b9] sm:$0xff] %vm83_vm0, %v2863_v46  ;;  %v417_v47 = vld [vmem:[#allocation2 + $0x1ba] sm:$0xff]  ;;  %v463_v40 = vmul.f32 %v2820_v50, %v2844_v32  ;;  %v595_v43 = vmul.f32 %v2822_v51, %v2846_v31  ;;  %v379_v46 = vld [vmem:[#allocation2 + $0x351] sm:$0xff]  ;;  %v464_v44 = vmul.f32 %v2820_v50, %v244_v48 }
  0x61   :  { %5226 = vst [vmem:[#allocation56_spill] sm:$0xff] %v2855_v58  ;;  %5228 = vst [vmem:[#allocation58_spill] sm:$0xff] %v2881_v25  ;;  %v653_v23 = vadd.f32 %v589_v57, %v457_v53  ;;  %v596_v18 = vmul.f32 %v2822_v51, %v2871_v28  ;;  %v2902_v53 = vmul.f32 %v2839_v35, %v343_v49  ;;  %v2995_v28 = vld [vmem:[#allocation2 + $0x92] sm:$0xff] }
  0x62   :  { %5229 = vst [vmem:[#allocation59_spill] sm:$0xff] %v2899_v16  ;;  %v685_v57 = vadd.f32 %v621_v56, %v489_v34  ;;  %v753_v55 = vmul.f32 %v2831_v42, %v417_v47  ;;  %v655_v61 = vadd.f32 %v591_v29, %v459_v63  ;;  %5230 = vst [vmem:[#allocation60_spill] sm:$0xff] %v2911_v13 }
  0x63   :  { %v2913_v12 = vadd.f32 %v620_v59, %v488_v27  ;;  %v659_v11 = vadd.f32 %v595_v43, %v463_v40  ;;  %v727_v49 = vmul.f32 %v2831_v42, %v387_v33  ;;  %v2917_v34 = vmul.f32 %v2839_v35, %v379_v46  ;;  %225 = vst.msk [vmem:[#allocation2 + $0x2c1] sm:$0xff] %vm83_vm0, %v2911_v13  ;;  %v246_v40 = vld [vmem:[#allocation2 + $0x78] sm:$0xff]  ;;  %v389_v43 = vld [vmem:[#allocation2 + $0x6a] sm:$0xff] }
  0x64   :  { %v2921_v26 = vadd.f32 %v721_v22, %v653_v23  ;;  %v2924_v29 = vmul.f32 %v2833_v38, %v239_v52  ;;  %v2927_v56 = vmul.f32 %v2835_v37, %v311_v39  ;;  %v2930_v27 = vmul.f32 %v2886_v24, %v415_v19  ;;  %v2936_v22 = vld [vmem:[#allocation2 + $0x79] sm:$0xff]  ;;  %5236 = vst [vmem:[#allocation66_spill] sm:$0xff] %v2981_v5  ;;  %v323_v5 = vld [vmem:[#allocation2 + $0xb1] sm:$0xff] }
  0x65   :  { %5231 = vst [vmem:[#allocation61_spill] sm:$0xff] %v2917_v34  ;;  %v660_v59 = vadd.f32 %v596_v18, %v464_v44  ;;  %v465_v63 = vmul.f32 %v2820_v50, %v245_v17  ;;  %v597_v46 = vmul.f32 %v2822_v51, %v2906_v15  ;;  %v728_v47 = vmul.f32 %v2831_v42, %v388_v14 }
  0x66   :  { %v2938_v23 = vadd.f32 %v753_v55, %v685_v57  ;;  %v787_v52 = vadd.f32 %v723_v41, %v655_v61  ;;  %v2941_v39 = vmul.f32 %v2820_v50, %v241_v60  ;;  %v855_v19 = vmul.f32 %v2833_v38, %v241_v60  ;;  %v2953_v57 = vld [vmem:[#allocation2 + $0x90] sm:$0xff]  ;;  %v247_v60 = vld [vmem:[#allocation2 + $0x80] sm:$0xff]  ;;  %5238 = vst [vmem:[#allocation68_spill] sm:$0xff] %v3001_v2 }
  0x67   :  { %v2946_v18 = vmul.f32 %v2833_v38, %v2844_v32  ;;  %v2950_v44 = vmul.f32 %v2835_v37, %v2846_v31  ;;  %v791_v13 = vadd.f32 %v727_v49, %v659_v11  ;;  %v2955_v55 = vld [vmem:[#allocation2 + $0x91] sm:$0xff]  ;;  %v2963_v41 = vmul.f32 %v2848_v30, %v387_v33  ;;  %v319_v49 = vld [vmem:[#allocation2 + $0x81] sm:$0xff]  ;;  %5239 = vst [vmem:[#allocation69_spill] sm:$0xff] %v3010_v54 }
  0x68   :  { %v2960_v61 = vld [vmem:[%s5041_s0 + $0x1b0] sm:$0xff]  ;;  %v2966_v32 = vmul.f32 %v2833_v38, %v244_v48  ;;  %v466_v31 = vmul.f32 %v2820_v50, %v246_v40  ;;  %v598_v11 = vmul.f32 %v2822_v51, %v2936_v22  ;;  %v661_v9 = vadd.f32 %v597_v46, %v465_v63  ;;  %227 = vst.msk [vmem:[#allocation2 + $0x2d9] sm:$0xff] %vm83_vm0, %v3010_v54  ;;  %v3026_v2 = vld [vmem:[#allocation2 + $0x9a] sm:$0xff]  ;;  %v250_v54 = vld [vmem:[#allocation2 + $0xa8] sm:$0xff] }
  0x69   :  { %5232 = vst [vmem:[#allocation62_spill] sm:$0xff] %v2950_v44  ;;  %5233 = vst [vmem:[#allocation63_spill] sm:$0xff] %v2960_v61  ;;  %v792_v8 = vadd.f32 %v728_v47, %v660_v59  ;;  %v729_v7 = vmul.f32 %v2831_v42, %v389_v43  ;;  %v860_v33 = vmul.f32 %v2833_v38, %v246_v40 }
  0x6a   :  { %5234 = vst [vmem:[#allocation64_spill] sm:$0xff] %v2963_v41  ;;  %226 = vst.msk [vmem:[#allocation2 + $0x2d1] sm:$0xff] %vm83_vm0, %v2960_v61  ;;  %v2977_v48 = vadd.f32 %v855_v19, %v787_v52  ;;  %v468_v4 = vmul.f32 %v2820_v50, %v2953_v57  ;;  %v600_v61 = vmul.f32 %v2822_v51, %v2955_v55  ;;  %v2991_v52 = vld [vmem:[#allocation2 + $0x98] sm:$0xff]  ;;  %v3043_v41 = vld [vmem:[%s5041_s0 + $0x1c0] sm:$0xff] }
  0x6b   :  { %v923_v63 = vadd.f32 %v859_v10, %v791_v13  ;;  %v991_v59 = vmul.f32 %v2835_v37, %v2906_v15  ;;  %v467_v46 = vmul.f32 %v2820_v50, %v247_v60  ;;  %v599_v47 = vmul.f32 %v2822_v51, %v319_v49  ;;  %v2993_v19 = vld [vmem:[#allocation2 + $0x99] sm:$0xff]  ;;  %5242 = vst [vmem:[#allocation72_spill] sm:$0xff] %v3043_v41 }
  0x6c   :  { %5235 = vst [vmem:[#allocation65_spill] sm:$0xff] %v2977_v48  ;;  %v2998_v3 = vmul.f32 %v2848_v30, %v388_v14  ;;  %v662_v10 = vadd.f32 %v598_v11, %v466_v31  ;;  %v730_v13 = vmul.f32 %v2831_v42, %v2975_v6  ;;  %v793_v34 = vadd.f32 %v729_v7, %v661_v9 }
  0x6d   :  { %v924_v25 = vadd.f32 %v860_v33, %v792_v8  ;;  %v992_v14 = vmul.f32 %v2835_v37, %v2936_v22  ;;  %v861_v58 = vmul.f32 %v2833_v38, %v247_v60  ;;  %v664_v17 = vadd.f32 %v600_v61, %v468_v4  ;;  %228 = vst.msk [vmem:[#allocation2 + $0x2e9] sm:$0xff] %vm83_vm0, %v3043_v41 }
  0x6e   :  { %5237 = vst [vmem:[#allocation67_spill] sm:$0xff] %v2998_v3  ;;  %v469_v31 = vmul.f32 %v2820_v50, %v2991_v52  ;;  %v601_v11 = vmul.f32 %v2822_v51, %v2993_v19  ;;  %v732_v16 = vmul.f32 %v2831_v42, %v2995_v28  ;;  %v1055_v7 = vadd.f32 %v991_v59, %v923_v63 }
  0x6f   :  { %v1123_v8 = vmul.f32 %v2848_v30, %v389_v43  ;;  %v663_v9 = vadd.f32 %v599_v47, %v467_v46  ;;  %v731_v33 = vmul.f32 %v2831_v42, %v3005_v1  ;;  %v3030_v4 = vmul.f32 %v2839_v35, %v2906_v15 }
  0x70   :  { %v3033_v61 = vmul.f32 %v2837_v36, %v246_v40  ;;  %v794_v3 = vadd.f32 %v730_v13, %v662_v10  ;;  %v862_v63 = vmul.f32 %v2833_v38, %v2953_v57  ;;  %v1056_v59 = vadd.f32 %v992_v14, %v924_v25  ;;  %v251_v14 = vld [vmem:[#allocation2 + $0xb0] sm:$0xff] }
  0x71   :  { %5240 = vst [vmem:[#allocation70_spill] sm:$0xff] %v3030_v4  ;;  %v925_v43 = vadd.f32 %v861_v58, %v793_v34  ;;  %v993_v46 = vmul.f32 %v2835_v37, %v319_v49  ;;  %v1124_v47 = vmul.f32 %v2848_v30, %v2975_v6  ;;  %v665_v15 = vadd.f32 %v601_v11, %v469_v31 }
  0x72   :  { %5241 = vst [vmem:[#allocation71_spill] sm:$0xff] %v3033_v61  ;;  %v796_v4 = vadd.f32 %v732_v16, %v664_v17  ;;  %v733_v40 = vmul.f32 %v2831_v42, %v3026_v2  ;;  %v864_v10 = vmul.f32 %v2833_v38, %v250_v54  ;;  %v1187_v25 = vadd.f32 %v1123_v8, %v1055_v7  ;;  %v322_v61 = vld [vmem:[#allocation2 + $0xa9] sm:$0xff] }
  0x73   :  { %v3052_v58 = vmul.f32 %v2839_v35, %v2936_v22  ;;  %v795_v34 = vadd.f32 %v731_v33, %v663_v9  ;;  %v863_v13 = vmul.f32 %v2833_v38, %v2991_v52  ;;  %v1255_v16 = vmul.f32 %v2837_v36, %v247_v60 }
  0x74   :  { %v1387_v17 = vmul.f32 %v2839_v35, %v319_v49  ;;  %v926_v31 = vadd.f32 %v862_v63, %v794_v3  ;;  %v994_v11 = vmul.f32 %v2835_v37, %v2955_v55  ;;  %v1057_v41 = vadd.f32 %v993_v46, %v925_v43  ;;  %v3069_v3 = vld [vmem:[%s5041_s0 + $0x1c8] sm:$0xff] }
  0x75   :  { %5243 = vst [vmem:[#allocation73_spill] sm:$0xff] %v3052_v58  ;;  %v1188_v7 = vadd.f32 %v1124_v47, %v1056_v59  ;;  %v1125_v22 = vmul.f32 %v2848_v30, %v3005_v1  ;;  %v1256_v8 = vmul.f32 %v2837_v36, %v2953_v57  ;;  %v797_v9 = vadd.f32 %v733_v40, %v665_v15  ;;  %v394_v15 = vld [vmem:[#allocation2 + $0xaa] sm:$0xff] }
  0x76   :  { %v928_v33 = vadd.f32 %v864_v10, %v796_v4  ;;  %v996_v58 = vmul.f32 %v2835_v37, %v322_v61  ;;  %v865_v60 = vmul.f32 %v2833_v38, %v251_v14  ;;  %5244 = vst [vmem:[#allocation74_spill] sm:$0xff] %v3069_v3  ;;  %v927_v49 = vadd.f32 %v863_v13, %v795_v34 }
  0x77   :  { %v995_v63 = vmul.f32 %v2835_v37, %v2993_v19  ;;  %v470_v59 = vmul.f32 %v2820_v50, %v250_v54  ;;  %v602_v43 = vmul.f32 %v2822_v51, %v322_v61  ;;  %229 = vst.msk [vmem:[#allocation2 + $0x2f1] sm:$0xff] %vm83_vm0, %v3069_v3  ;;  %v1319_v57 = vadd.f32 %v1255_v16, %v1187_v25 }
  0x78   :  { %v3079_v4 = vmul.f32 %v2886_v24, %v2975_v6  ;;  %v1058_v46 = vadd.f32 %v994_v11, %v926_v31  ;;  %v1126_v47 = vmul.f32 %v2848_v30, %v2995_v28  ;;  %v1189_v40 = vadd.f32 %v1125_v22, %v1057_v41 }
  0x79   :  { %v1320_v10 = vadd.f32 %v1256_v8, %v1188_v7  ;;  %v1388_v34 = vmul.f32 %v2839_v35, %v2955_v55  ;;  %v1257_v13 = vmul.f32 %v2837_v36, %v2991_v52  ;;  %v1060_v3 = vadd.f32 %v996_v58, %v928_v33  ;;  %v3095_v55 = vld [vmem:[%s5041_s0 + $0x1d0] sm:$0xff]  ;;  %v252_v8 = vld [vmem:[#allocation2 + $0xc0] sm:$0xff] }
  0x7a   :  { %5245 = vst [vmem:[#allocation75_spill] sm:$0xff] %v3079_v4  ;;  %v929_v25 = vadd.f32 %v865_v60, %v797_v9  ;;  %v997_v16 = vmul.f32 %v2835_v37, %v323_v5  ;;  %v1128_v6 = vmul.f32 %v2848_v30, %v394_v15  ;;  %v1059_v31 = vadd.f32 %v995_v63, %v927_v49  ;;  %v395_v63 = vld [vmem:[#allocation2 + $0xb2] sm:$0xff] }
  0x7b   :  { %v1127_v11 = vmul.f32 %v2848_v30, %v3026_v2  ;;  %v666_v4 = vadd.f32 %v602_v43, %v470_v59  ;;  %v734_v41 = vmul.f32 %v2831_v42, %v394_v15  ;;  %5246 = vst [vmem:[#allocation76_spill] sm:$0xff] %v3095_v55  ;;  %v1190_v52 = vadd.f32 %v1126_v47, %v1058_v46  ;;  %v324_v46 = vld [vmem:[#allocation2 + $0xc1] sm:$0xff] }
  0x7c   :  { %v1258_v58 = vmul.f32 %v2837_v36, %v250_v54  ;;  %v471_v7 = vmul.f32 %v2820_v50, %v251_v14  ;;  %v603_v22 = vmul.f32 %v2822_v51, %v323_v5  ;;  %230 = vst.msk [vmem:[#allocation2 + $0x301] sm:$0xff] %vm83_vm0, %v3095_v55  ;;  %v3102_v9 = vadd.f32 %v1387_v17, %v1319_v57 }
  0x7d   :  { %v3106_v33 = vmul.f32 %v2886_v24, %v3005_v1  ;;  %v3108_v60 = vadd.f32 %v1388_v34, %v1320_v10  ;;  %v1321_v49 = vadd.f32 %v1257_v13, %v1189_v40  ;;  %v1061_v59 = vadd.f32 %v997_v16, %v929_v25  ;;  %v253_v25 = vld [vmem:[#allocation2 + $0xc8] sm:$0xff] }
  0x7e   :  { %v1192_v54 = vadd.f32 %v1128_v6, %v1060_v3  ;;  %v1129_v43 = vmul.f32 %v2848_v30, %v395_v63  ;;  %v1260_v47 = vmul.f32 %v2837_v36, %v252_v8  ;;  %v1191_v48 = vadd.f32 %v1127_v11, %v1059_v31  ;;  %v3119_v3 = vld [vmem:[%s5041_s0 + $0x1d8] sm:$0xff]  ;;  %v325_v31 = vld [vmem:[#allocation2 + $0xc9] sm:$0xff] }
  0x7f   :  { %v798_v44 = vadd.f32 %v734_v41, %v666_v4  ;;  %v1259_v17 = vmul.f32 %v2837_v36, %v251_v14  ;;  %v866_v57 = vmul.f32 %v2833_v38, %v252_v8  ;;  %v1322_v55 = vadd.f32 %v1258_v58, %v1190_v52  ;;  %5247 = vst [vmem:[#allocation77_spill] sm:$0xff] %v3119_v3  ;;  %v396_v11 = vld [vmem:[#allocation2 + $0xc2] sm:$0xff] }
  0x80   :  { %v1390_v1 = vmul.f32 %v2839_v35, %v322_v61  ;;  %v667_v10 = vadd.f32 %v603_v22, %v471_v7  ;;  %v735_v40 = vmul.f32 %v2831_v42, %v395_v63  ;;  %v1389_v34 = vmul.f32 %v2839_v35, %v2993_v19  ;;  %231 = vst.msk [vmem:[#allocation2 + $0x309] sm:$0xff] %vm83_vm0, %v3119_v3 }
  0x81   :  { %v1520_v4 = vmul.f32 %v2886_v24, %v2995_v28  ;;  %v472_v14 = vmul.f32 %v2820_v50, %v252_v8  ;;  %v604_v13 = vmul.f32 %v2822_v51, %v324_v46  ;;  %v1193_v61 = vadd.f32 %v1129_v43, %v1061_v59 }
  0x82   :  { %v1324_v16 = vadd.f32 %v1260_v47, %v1192_v54  ;;  %v1392_v6 = vmul.f32 %v2839_v35, %v324_v46  ;;  %v1261_v41 = vmul.f32 %v2837_v36, %v253_v25  ;;  %v1323_v19 = vadd.f32 %v1259_v17, %v1191_v48 }
  0x83   :  { %v1391_v52 = vmul.f32 %v2839_v35, %v323_v5  ;;  %v930_v28 = vadd.f32 %v866_v57, %v798_v44  ;;  %v998_v58 = vmul.f32 %v2835_v37, %v324_v46  ;;  %v1454_v7 = vadd.f32 %v1390_v1, %v1322_v55  ;;  %v3141_v5 = vld [vmem:[%s5041_s0 + $0x1e0] sm:$0xff]  ;;  %v397_v46 = vld [vmem:[#allocation2 + $0xca] sm:$0xff] }
  0x84   :  { %v1522_v22 = vmul.f32 %v2886_v24, %v394_v15  ;;  %v799_v8 = vadd.f32 %v735_v40, %v667_v10  ;;  %v867_v3 = vmul.f32 %v2833_v38, %v253_v25  ;;  %v668_v59 = vadd.f32 %v604_v13, %v472_v14  ;;  %5248 = vst [vmem:[#allocation78_spill] sm:$0xff] %v3141_v5  ;;  %v254_v40 = vld [vmem:[#allocation2 + $0xd8] sm:$0xff] }
  0x85   :  { %v473_v54 = vmul.f32 %v2820_v50, %v253_v25  ;;  %v605_v43 = vmul.f32 %v2822_v51, %v325_v31  ;;  %v736_v47 = vmul.f32 %v2831_v42, %v396_v11  ;;  %v1456_v44 = vadd.f32 %v1392_v6, %v1324_v16  ;;  %232 = vst.msk [vmem:[#allocation2 + $0x319] sm:$0xff] %vm83_vm0, %v3141_v5 }
  0x86   :  { %v1325_v48 = vadd.f32 %v1261_v41, %v1193_v61  ;;  %v1393_v55 = vmul.f32 %v2839_v35, %v325_v31  ;;  %v1524_v15 = vmul.f32 %v2886_v24, %v396_v11  ;;  %v1455_v17 = vadd.f32 %v1391_v52, %v1323_v19  ;;  %v326_v19 = vld [vmem:[#allocation2 + $0xd9] sm:$0xff] }
  0x87   :  { %v1523_v57 = vmul.f32 %v2886_v24, %v395_v63  ;;  %v1062_v1 = vadd.f32 %v998_v58, %v930_v28  ;;  %v1130_v10 = vmul.f32 %v2848_v30, %v396_v11  ;;  %v1453_v14 = vadd.f32 %v1389_v34, %v1321_v49  ;;  %v255_v34 = vld [vmem:[#allocation2 + $0xe0] sm:$0xff] }
  0x88   :  { %v1521_v13 = vmul.f32 %v2886_v24, %v3026_v2  ;;  %v931_v25 = vadd.f32 %v867_v3, %v799_v8  ;;  %v999_v61 = vmul.f32 %v2835_v37, %v325_v31  ;;  %v3152_v16 = vadd.f32 %v1522_v22, %v1454_v7  ;;  %v3162_v2 = vld [vmem:[%s5041_s0 + $0x1e8] sm:$0xff] }
  0x89   :  { %v669_v6 = vadd.f32 %v605_v43, %v473_v54  ;;  %v800_v41 = vadd.f32 %v736_v47, %v668_v59  ;;  %v737_v5 = vmul.f32 %v2831_v42, %v397_v46  ;;  %v1457_v52 = vadd.f32 %v1393_v55, %v1325_v48  ;;  %5251 = vst [vmem:[#allocation81_spill] sm:$0xff] %v3162_v2  ;;  %v327_v54 = vld [vmem:[#allocation2 + $0xe1] sm:$0xff] }
  0x8a   :  { %5249 = vst [vmem:[#allocation79_spill] sm:$0xff] %v3152_v16  ;;  %v3155_v63 = vadd.f32 %v1524_v15, %v1456_v44  ;;  %v1525_v11 = vmul.f32 %v2886_v24, %v397_v46  ;;  %v868_v49 = vmul.f32 %v2833_v38, %v254_v40  ;;  %v3165_v3 = vadd.f32 %v1520_v4, %v3108_v60  ;;  %v398_v47 = vld [vmem:[#allocation2 + $0xda] sm:$0xff] }
  0x8b   :  { %v3167_v31 = vadd.f32 %v1523_v57, %v1455_v17  ;;  %v1194_v28 = vadd.f32 %v1130_v10, %v1062_v1  ;;  %v1262_v58 = vmul.f32 %v2837_v36, %v254_v40  ;;  %233 = vst.msk [vmem:[#allocation2 + $0x321] sm:$0xff] %vm83_vm0, %v3162_v2  ;;  %v1063_v7 = vadd.f32 %v999_v61, %v931_v25 }
  0x8c   :  { %5250 = vst [vmem:[#allocation80_spill] sm:$0xff] %v3155_v63  ;;  %5252 = vst [vmem:[#allocation82_spill] sm:$0xff] %v3165_v3  ;;  %v1131_v22 = vmul.f32 %v2848_v30, %v397_v46  ;;  %v474_v8 = vmul.f32 %v2820_v50, %v254_v40  ;;  %v606_v59 = vmul.f32 %v2822_v51, %v326_v19  ;;  %v256_v40 = vld [vmem:[#allocation2 + $0xf0] sm:$0xff] }
  0x8d   :  { %5253 = vst [vmem:[#allocation83_spill] sm:$0xff] %v3167_v31  ;;  %v3175_v43 = vadd.f32 %v1521_v13, %v1453_v14  ;;  %v3179_v60 = vmul.f32 %v3152_v16, %v3152_v16  ;;  %v801_v4 = vadd.f32 %v737_v5, %v669_v6  ;;  %v869_v44 = vmul.f32 %v2833_v38, %v255_v34  ;;  %v328_v5 = vld [vmem:[#allocation2 + $0xf1] sm:$0xff] }
  0x8e   :  { %v1785_v48 = vmul.f32 %v3155_v63, %v3155_v63  ;;  %v3184_v55 = vadd.f32 %v1525_v11, %v1457_v52  ;;  %v932_v15 = vadd.f32 %v868_v49, %v800_v41  ;;  %v1000_v46 = vmul.f32 %v2835_v37, %v326_v19  ;;  %v3193_v14 = vld [vmem:[%s5041_s0 + $0x1f0] sm:$0xff] }
  0x8f   :  { %5254 = vst [vmem:[#allocation84_spill] sm:$0xff] %v3175_v43  ;;  %5255 = vst [vmem:[#allocation85_spill] sm:$0xff] %v3179_v60  ;;  %v1326_v17 = vadd.f32 %v1262_v58, %v1194_v28  ;;  %v1394_v57 = vmul.f32 %v2839_v35, %v326_v19  ;;  %v475_v1 = vmul.f32 %v2820_v50, %v255_v34  ;;  %v3204_v41 = vsel %vm83_vm0, %v3155_v63, 0.0  ;;  %v399_v58 = vld [vmem:[#allocation2 + $0xe2] sm:$0xff]  ;;  %v257_v63 = vld [vmem:[#allocation2 + $0xf8] sm:$0xff] }
  0x90   :  { %5256 = vst [vmem:[#allocation86_spill] sm:$0xff] %v3184_v55  ;;  %v607_v10 = vmul.f32 %v2822_v51, %v327_v54  ;;  %5257 = vst [vmem:[#allocation87_spill] sm:$0xff] %v3193_v14  ;;  %v3197_v13 = vmul.f32 %v3167_v31, %v3167_v31  ;;  %v1195_v25 = vadd.f32 %v1131_v22, %v1063_v7 }
  0x91   :  { %v670_v61 = vadd.f32 %v606_v59, %v474_v8  ;;  %v738_v6 = vmul.f32 %v2831_v42, %v398_v47  ;;  %234 = vst.msk [vmem:[#allocation2 + $0x331] sm:$0xff] %vm83_vm0, %v3193_v14  ;;  %5259 = vst [vmem:[#allocation89_spill] sm:$0xff] %v3204_v41  ;;  %v933_v19 = vadd.f32 %v869_v44, %v801_v4  ;;  %v3212_v8 = vsel %vm83_vm0, %v1785_v48, 0.0  ;;  %v400_v44 = vld [vmem:[#allocation2 + $0xf2] sm:$0xff] }
  0x92   :  { %5258 = vst [vmem:[#allocation88_spill] sm:$0xff] %v3197_v13  ;;  %v1001_v52 = vmul.f32 %v2835_v37, %v327_v54  ;;  %v1263_v11 = vmul.f32 %v2837_v36, %v255_v34  ;;  %v1064_v49 = vadd.f32 %v1000_v46, %v932_v15  ;;  %v1132_v28 = vmul.f32 %v2848_v30, %v398_v47  ;;  %v329_v13 = vld [vmem:[#allocation2 + $0xf9] sm:$0xff] }
  0x93   :  { %v476_v7 = vmul.f32 %v2820_v50, %v256_v40  ;;  %v608_v22 = vmul.f32 %v2822_v51, %v328_v5  ;;  %5260 = vst [vmem:[#allocation90_spill] sm:$0xff] %v3212_v8  ;;  %v1786_v59 = vmul.f32 %v3184_v55, %v3184_v55  ;;  %v1458_v14 = vadd.f32 %v1394_v57, %v1326_v17  ;;  %v3222_v48 = vld [vmem:[%s5041_s0 + $0x1f8] sm:$0xff] }
  0x94   :  { %v671_v4 = vadd.f32 %v607_v10, %v475_v1  ;;  %v802_v2 = vadd.f32 %v738_v6, %v670_v61  ;;  %v1395_v34 = vmul.f32 %v2839_v35, %v327_v54  ;;  %v1526_v15 = vmul.f32 %v2886_v24, %v398_v47  ;;  %5261 = vst [vmem:[#allocation91_spill] sm:$0xff] %v3222_v48 }
  0x95   :  { %v870_v46 = vmul.f32 %v2833_v38, %v256_v40  ;;  %v1065_v8 = vadd.f32 %v1001_v52, %v933_v19  ;;  %v1327_v60 = vadd.f32 %v1263_v11, %v1195_v25  ;;  %v739_v17 = vmul.f32 %v2831_v42, %v399_v58  ;;  %235 = vst.msk [vmem:[#allocation2 + $0x339] sm:$0xff] %vm83_vm0, %v3222_v48  ;;  %v258_v52 = vld [vmem:[#allocation2 + $0x108] sm:$0xff] }
  0x96   :  { %v1133_v57 = vmul.f32 %v2848_v30, %v399_v58  ;;  %v1196_v54 = vadd.f32 %v1132_v28, %v1064_v49  ;;  %v672_v47 = vadd.f32 %v608_v22, %v476_v7  ;;  %v1264_v1 = vmul.f32 %v2837_v36, %v256_v40  ;;  %v401_v7 = vld [vmem:[#allocation2 + $0xfa] sm:$0xff]  ;;  %v330_v22 = vld [vmem:[#allocation2 + $0x109] sm:$0xff] }
  0x97   :  { %v740_v10 = vmul.f32 %v2831_v42, %v400_v44  ;;  %v3232_v61 = vsel %vm83_vm0, %v3184_v55, 0.0  ;;  %v3235_v6 = vsel %vm83_vm0, %v1786_v59, 0.0  ;;  %v477_v25 = vmul.f32 %v2820_v50, %v257_v63 }
  0x98   :  { %5262 = vst [vmem:[#allocation92_spill] sm:$0xff] %v3232_v61  ;;  %5263 = vst [vmem:[#allocation93_spill] sm:$0xff] %v3235_v6  ;;  %v609_v19 = vmul.f32 %v2822_v51, %v329_v13  ;;  %v3239_v11 = vadd.f32 %v1526_v15, %v1458_v14  ;;  %v1527_v49 = vmul.f32 %v2886_v24, %v399_v58 }
  0x99   :  { %v934_v28 = vadd.f32 %v870_v46, %v802_v2  ;;  %v1002_v40 = vmul.f32 %v2835_v37, %v328_v5  ;;  %v1459_v48 = vadd.f32 %v1395_v34, %v1327_v60  ;;  %v803_v55 = vadd.f32 %v739_v17, %v671_v4  ;;  %v259_v34 = vld [vmem:[#allocation2 + $0x110] sm:$0xff] }
  0x9a   :  { %5264 = vst [vmem:[#allocation94_spill] sm:$0xff] %v3239_v11  ;;  %v1197_v61 = vadd.f32 %v1133_v57, %v1065_v8  ;;  %v871_v59 = vmul.f32 %v2833_v38, %v257_v63  ;;  %v1328_v6 = vadd.f32 %v1264_v1, %v1196_v54  ;;  %v1396_v41 = vmul.f32 %v2839_v35, %v328_v5  ;;  %v402_v46 = vld [vmem:[#allocation2 + $0x10a] sm:$0xff] }
  0x9b   :  { %v804_v31 = vadd.f32 %v740_v10, %v672_v47  ;;  %v872_v16 = vmul.f32 %v2833_v38, %v258_v52  ;;  %v673_v14 = vadd.f32 %v609_v19, %v477_v25  ;;  %v741_v15 = vmul.f32 %v2831_v42, %v401_v7  ;;  %v331_v1 = vld [vmem:[#allocation2 + $0x111] sm:$0xff] }
  0x9c   :  { %v478_v2 = vmul.f32 %v2820_v50, %v258_v52  ;;  %v610_v58 = vmul.f32 %v2822_v51, %v330_v22  ;;  %v3251_v60 = vsel %vm83_vm0, %v3239_v11, 0.0  ;;  %v1787_v8 = vmul.f32 %v3239_v11, %v3239_v11 }
  0x9d   :  { %5265 = vst [vmem:[#allocation95_spill] sm:$0xff] %v3251_v60  ;;  %v1066_v4 = vadd.f32 %v1002_v40, %v934_v28  ;;  %v1134_v5 = vmul.f32 %v2848_v30, %v400_v44  ;;  %v3256_v17 = vadd.f32 %v1527_v49, %v1459_v48  ;;  %v935_v57 = vadd.f32 %v871_v59, %v803_v55  ;;  %v260_v59 = vld [vmem:[#allocation2 + $0x120] sm:$0xff] }
  0x9e   :  { %v1003_v54 = vmul.f32 %v2835_v37, %v329_v13  ;;  %v1265_v47 = vmul.f32 %v2837_v36, %v257_v63  ;;  %v1460_v10 = vadd.f32 %v1396_v41, %v1328_v6  ;;  %v1397_v25 = vmul.f32 %v2839_v35, %v329_v13  ;;  %v403_v13 = vld [vmem:[#allocation2 + $0x112] sm:$0xff] }
  0x9f   :  { %5266 = vst [vmem:[#allocation96_spill] sm:$0xff] %v3256_v17  ;;  %v936_v19 = vadd.f32 %v872_v16, %v804_v31  ;;  %v1004_v60 = vmul.f32 %v2835_v37, %v330_v22  ;;  %v805_v11 = vadd.f32 %v741_v15, %v673_v14  ;;  %v674_v28 = vadd.f32 %v610_v58, %v478_v2 }
  0xa0   :  { %v742_v40 = vmul.f32 %v2831_v42, %v402_v46  ;;  %v873_v43 = vmul.f32 %v2833_v38, %v259_v34  ;;  %v1198_v48 = vadd.f32 %v1134_v5, %v1066_v4  ;;  %v1528_v55 = vmul.f32 %v2886_v24, %v400_v44 }
  0xa1   :  { %v479_v49 = vmul.f32 %v2820_v50, %v259_v34  ;;  %v611_v63 = vmul.f32 %v2822_v51, %v331_v1  ;;  %v1067_v41 = vadd.f32 %v1003_v54, %v935_v57  ;;  %v1329_v6 = vadd.f32 %v1265_v47, %v1197_v61 }
  0xa2   :  { %v1135_v16 = vmul.f32 %v2848_v30, %v401_v7  ;;  %v1266_v31 = vmul.f32 %v2837_v36, %v258_v52  ;;  %v3270_v14 = vsel %vm83_vm0, %v1787_v8, 0.0  ;;  %v3274_v15 = vsel %vm83_vm0, %v3256_v17, 0.0 }
  0xa3   :  { %5267 = vst [vmem:[#allocation97_spill] sm:$0xff] %v3270_v14  ;;  %5268 = vst [vmem:[#allocation98_spill] sm:$0xff] %v3274_v15  ;;  %v1068_v44 = vadd.f32 %v1004_v60, %v936_v19  ;;  %v1136_v2 = vmul.f32 %v2848_v30, %v402_v46  ;;  %v806_v58 = vadd.f32 %v742_v40, %v674_v28  ;;  %v332_v15 = vld [vmem:[#allocation2 + $0x121] sm:$0xff] }
  0xa4   :  { %v937_v4 = vadd.f32 %v873_v43, %v805_v11  ;;  %v1005_v5 = vmul.f32 %v2835_v37, %v331_v1  ;;  %v874_v61 = vmul.f32 %v2833_v38, %v260_v59  ;;  %v1788_v52 = vmul.f32 %v3256_v17, %v3256_v17  ;;  %v261_v28 = vld [vmem:[#allocation2 + $0x128] sm:$0xff] }
  0xa5   :  { %v1529_v57 = vmul.f32 %v2886_v24, %v401_v7  ;;  %v675_v8 = vadd.f32 %v611_v63, %v479_v49  ;;  %v743_v54 = vmul.f32 %v2831_v42, %v403_v13  ;;  %v1461_v47 = vadd.f32 %v1397_v25, %v1329_v6 }
  0xa6   :  { %v3283_v14 = vadd.f32 %v1528_v55, %v1460_v10  ;;  %v1199_v60 = vadd.f32 %v1135_v16, %v1067_v41  ;;  %v1330_v19 = vadd.f32 %v1266_v31, %v1198_v48  ;;  %v1398_v43 = vmul.f32 %v2839_v35, %v330_v22 }
  0xa7   :  { %v1200_v11 = vadd.f32 %v1136_v2, %v1068_v44  ;;  %v1267_v40 = vmul.f32 %v2837_v36, %v259_v34  ;;  %v1137_v3 = vmul.f32 %v2848_v30, %v403_v13  ;;  %v1069_v17 = vadd.f32 %v1005_v5, %v937_v4  ;;  %v333_v2 = vld [vmem:[#allocation2 + $0x129] sm:$0xff] }
  0xa8   :  { %5269 = vst [vmem:[#allocation99_spill] sm:$0xff] %v3283_v14  ;;  %v480_v7 = vmul.f32 %v2820_v50, %v260_v59  ;;  %v938_v49 = vadd.f32 %v874_v61, %v806_v58  ;;  %v1006_v63 = vmul.f32 %v2835_v37, %v332_v15  ;;  %v807_v25 = vadd.f32 %v743_v54, %v675_v8  ;;  %v404_v58 = vld [vmem:[#allocation2 + $0x122] sm:$0xff] }
  0xa9   :  { %v612_v10 = vmul.f32 %v2822_v51, %v332_v15  ;;  %v1268_v48 = vmul.f32 %v2837_v36, %v260_v59  ;;  %v875_v55 = vmul.f32 %v2833_v38, %v261_v28  ;;  %v3294_v22 = vsel %vm83_vm0, %v1788_v52, 0.0 }
  0xaa   :  { %5270 = vst [vmem:[#allocation100_spill] sm:$0xff] %v3294_v22  ;;  %v3298_v34 = vsel %vm83_vm0, %v3283_v14, 0.0  ;;  %v1789_v41 = vmul.f32 %v3283_v14, %v3283_v14  ;;  %v3302_v6 = vadd.f32 %v1529_v57, %v1461_v47  ;;  %v1462_v16 = vadd.f32 %v1398_v43, %v1330_v19 }
  0xab   :  { %v1331_v31 = vadd.f32 %v1267_v40, %v1199_v60  ;;  %v1399_v44 = vmul.f32 %v2839_v35, %v331_v1  ;;  %v1530_v59 = vmul.f32 %v2886_v24, %v402_v46  ;;  %v1201_v4 = vadd.f32 %v1137_v3, %v1069_v17 }
  0xac   :  { %5271 = vst [vmem:[#allocation101_spill] sm:$0xff] %v3302_v6  ;;  %v1070_v5 = vadd.f32 %v1006_v63, %v938_v49  ;;  %v1138_v61 = vmul.f32 %v2848_v30, %v404_v58  ;;  %v1269_v52 = vmul.f32 %v2837_v36, %v261_v28  ;;  %v676_v8 = vadd.f32 %v612_v10, %v480_v7  ;;  %v334_v49 = vld [vmem:[#allocation2 + $0x139] sm:$0xff] }
  0xad   :  { %v1332_v54 = vadd.f32 %v1268_v48, %v1200_v11  ;;  %v939_v22 = vadd.f32 %v875_v55, %v807_v25  ;;  %v1007_v57 = vmul.f32 %v2835_v37, %v333_v2  ;;  %v1400_v47 = vmul.f32 %v2839_v35, %v332_v15  ;;  %v405_v11 = vld [vmem:[#allocation2 + $0x12a] sm:$0xff]  ;;  %v262_v15 = vld [vmem:[#allocation2 + $0x138] sm:$0xff] }
  0xae   :  { %v481_v60 = vmul.f32 %v2820_v50, %v261_v28  ;;  %v613_v1 = vmul.f32 %v2822_v51, %v333_v2  ;;  %v744_v46 = vmul.f32 %v2831_v42, %v404_v58  ;;  %v3314_v3 = vsel %vm83_vm0, %v1789_v41, 0.0 }
  0xaf   :  { %5272 = vst [vmem:[#allocation102_spill] sm:$0xff] %v3314_v3  ;;  %v3318_v17 = vsel %vm83_vm0, %v3302_v6, 0.0  ;;  %v1790_v19 = vmul.f32 %v3302_v6, %v3302_v6  ;;  %v1531_v43 = vmul.f32 %v2886_v24, %v403_v13  ;;  %v1202_v40 = vadd.f32 %v1138_v61, %v1070_v5  ;;  %v263_v61 = vld [vmem:[#allocation2 + $0x140] sm:$0xff] }
  0xb0   :  { %v1333_v28 = vadd.f32 %v1269_v52, %v1201_v4  ;;  %v1401_v7 = vmul.f32 %v2839_v35, %v333_v2  ;;  %v1270_v63 = vmul.f32 %v2837_v36, %v262_v15  ;;  %v1463_v25 = vadd.f32 %v1399_v44, %v1331_v31 }
  0xb1   :  { %v3325_v10 = vadd.f32 %v1530_v59, %v1462_v16  ;;  %v1071_v48 = vadd.f32 %v1007_v57, %v939_v22  ;;  %v1139_v55 = vmul.f32 %v2848_v30, %v405_v11  ;;  %v1464_v41 = vadd.f32 %v1400_v47, %v1332_v54 }
  0xb2   :  { %v677_v14 = vadd.f32 %v613_v1, %v481_v60  ;;  %v808_v6 = vadd.f32 %v744_v46, %v676_v8  ;;  %v745_v13 = vmul.f32 %v2831_v42, %v405_v11  ;;  %v1532_v3 = vmul.f32 %v2886_v24, %v404_v58  ;;  %v406_v8 = vld [vmem:[#allocation2 + $0x13a] sm:$0xff] }
  0xb3   :  { %5273 = vst [vmem:[#allocation103_spill] sm:$0xff] %v3325_v10  ;;  %v482_v4 = vmul.f32 %v2820_v50, %v262_v15  ;;  %v614_v2 = vmul.f32 %v2822_v51, %v334_v49  ;;  %v876_v5 = vmul.f32 %v2833_v38, %v262_v15  ;;  %v1465_v31 = vadd.f32 %v1401_v7, %v1333_v28  ;;  %v335_v1 = vld [vmem:[#allocation2 + $0x141] sm:$0xff] }
  0xb4   :  { %v1533_v16 = vmul.f32 %v2886_v24, %v405_v11  ;;  %v1334_v22 = vadd.f32 %v1270_v63, %v1202_v40  ;;  %v1402_v44 = vmul.f32 %v2839_v35, %v334_v49  ;;  %v3336_v59 = vsel %vm83_vm0, %v1790_v19, 0.0 }
  0xb5   :  { %5274 = vst [vmem:[#allocation104_spill] sm:$0xff] %v3336_v59  ;;  %v3340_v52 = vsel %vm83_vm0, %v3325_v10, 0.0  ;;  %v1203_v58 = vadd.f32 %v1139_v55, %v1071_v48  ;;  %v1271_v54 = vmul.f32 %v2837_v36, %v263_v61  ;;  %v1791_v57 = vmul.f32 %v3325_v10, %v3325_v10  ;;  %v265_v10 = vld [vmem:[#allocation2 + $0x158] sm:$0xff] }
  0xb6   :  { %5275 = vst [vmem:[#allocation105_spill] sm:$0xff] %v3340_v52  ;;  %v3345_v47 = vadd.f32 %v1531_v43, %v1463_v25  ;;  %v809_v60 = vadd.f32 %v745_v13, %v677_v14  ;;  %v877_v46 = vmul.f32 %v2833_v38, %v263_v61  ;;  %v3348_v11 = vadd.f32 %v1532_v3, %v1464_v41  ;;  %v264_v3 = vld [vmem:[#allocation2 + $0x150] sm:$0xff] }
  0xb7   :  { %v678_v19 = vadd.f32 %v614_v2, %v482_v4  ;;  %v940_v15 = vadd.f32 %v876_v5, %v808_v6  ;;  %v1008_v40 = vmul.f32 %v2835_v37, %v334_v49  ;;  %v3351_v28 = vadd.f32 %v1533_v16, %v1465_v31  ;;  %v407_v4 = vld [vmem:[#allocation2 + $0x142] sm:$0xff]  ;;  %v336_v16 = vld [vmem:[#allocation2 + $0x151] sm:$0xff] }
  0xb8   :  { %5276 = vst [vmem:[#allocation106_spill] sm:$0xff] %v3345_v47  ;;  %5277 = vst [vmem:[#allocation107_spill] sm:$0xff] %v3348_v11  ;;  %v1466_v7 = vadd.f32 %v1402_v44, %v1334_v22  ;;  %v746_v63 = vmul.f32 %v2831_v42, %v406_v8  ;;  %v1534_v48 = vmul.f32 %v2886_v24, %v406_v8  ;;  %v3359_v41 = vsel %vm83_vm0, %v1791_v57, 0.0 }
  0xb9   :  { %5278 = vst [vmem:[#allocation108_spill] sm:$0xff] %v3351_v28  ;;  %v483_v43 = vmul.f32 %v2820_v50, %v263_v61  ;;  %v615_v14 = vmul.f32 %v2822_v51, %v335_v1  ;;  %v1335_v25 = vadd.f32 %v1271_v54, %v1203_v58  ;;  %v1403_v55 = vmul.f32 %v2839_v35, %v335_v1 }
  0xba   :  { %5279 = vst [vmem:[#allocation109_spill] sm:$0xff] %v3359_v41  ;;  %v3363_v6 = vsel %vm83_vm0, %v3345_v47, 0.0  ;;  %v941_v49 = vadd.f32 %v877_v46, %v809_v60  ;;  %v1009_v13 = vmul.f32 %v2835_v37, %v335_v1  ;;  %v1792_v2 = vmul.f32 %v3345_v47, %v3345_v47 }
  0xbb   :  { %5280 = vst [vmem:[#allocation110_spill] sm:$0xff] %v3363_v6  ;;  %v1793_v5 = vmul.f32 %v3348_v11, %v3348_v11  ;;  %v1072_v61 = vadd.f32 %v1008_v40, %v940_v15  ;;  %v1140_v31 = vmul.f32 %v2848_v30, %v406_v8  ;;  %v1794_v22 = vmul.f32 %v3351_v28, %v3351_v28 }
  0xbc   :  { %v810_v44 = vadd.f32 %v746_v63, %v678_v19  ;;  %v3373_v58 = vadd.f32 %v1534_v48, %v1466_v7  ;;  %v878_v54 = vmul.f32 %v2833_v38, %v264_v3  ;;  %v679_v57 = vadd.f32 %v615_v14, %v483_v43  ;;  %v408_v43 = vld [vmem:[#allocation2 + $0x152] sm:$0xff] }
  0xbd   :  { %v1467_v60 = vadd.f32 %v1403_v55, %v1335_v25  ;;  %v747_v1 = vmul.f32 %v2831_v42, %v407_v4  ;;  %v1535_v46 = vmul.f32 %v2886_v24, %v407_v4  ;;  %v1073_v47 = vadd.f32 %v1009_v13, %v941_v49 }
  0xbe   :  { %5281 = vst [vmem:[#allocation111_spill] sm:$0xff] %v3373_v58  ;;  %v1141_v15 = vmul.f32 %v2848_v30, %v407_v4  ;;  %v484_v8 = vmul.f32 %v2820_v50, %v264_v3  ;;  %v616_v40 = vmul.f32 %v2822_v51, %v336_v16  ;;  %v3382_v19 = vsel %vm83_vm0, %v1792_v2, 0.0 }
  0xbf   :  { %5282 = vst [vmem:[#allocation112_spill] sm:$0xff] %v3382_v19  ;;  %v3386_v7 = vsel %vm83_vm0, %v3348_v11, 0.0  ;;  %v1204_v63 = vadd.f32 %v1140_v31, %v1072_v61  ;;  %v1272_v48 = vmul.f32 %v2837_v36, %v264_v3  ;;  %v3390_v14 = vsel %vm83_vm0, %v1793_v5, 0.0  ;;  %v337_v61 = vld [vmem:[#allocation2 + $0x159] sm:$0xff] }
  0xc0   :  { %5283 = vst [vmem:[#allocation113_spill] sm:$0xff] %v3386_v7  ;;  %5284 = vst [vmem:[#allocation114_spill] sm:$0xff] %v3390_v14  ;;  %v1795_v25 = vmul.f32 %v3373_v58, %v3373_v58  ;;  %v942_v55 = vadd.f32 %v878_v54, %v810_v44  ;;  %v1010_v49 = vmul.f32 %v2835_v37, %v336_v16  ;;  %v3397_v13 = vsel %vm83_vm0, %v3351_v28, 0.0 }
  0xc1   :  { %5285 = vst [vmem:[#allocation115_spill] sm:$0xff] %v3397_v13  ;;  %v811_v4 = vadd.f32 %v747_v1, %v679_v57  ;;  %v3399_v2 = vadd.f32 %v1535_v46, %v1467_v60  ;;  %v879_v3 = vmul.f32 %v2833_v38, %v265_v10  ;;  %v3403_v31 = vsel %vm83_vm0, %v1794_v22, 0.0  ;;  %v266_v60 = vld [vmem:[#allocation2 + $0x168] sm:$0xff] }
  0xc2   :  { %5287 = vst [vmem:[#allocation117_spill] sm:$0xff] %v3403_v31  ;;  %v1205_v5 = vadd.f32 %v1141_v15, %v1073_v47  ;;  %v680_v11 = vadd.f32 %v616_v40, %v484_v8  ;;  %v748_v14 = vmul.f32 %v2831_v42, %v408_v43  ;;  %v3408_v44 = vsel %vm83_vm0, %v3373_v58, 0.0  ;;  %v338_v1 = vld [vmem:[#allocation2 + $0x169] sm:$0xff]  ;;  %v339_v8 = vld [vmem:[#allocation2 + $0x171] sm:$0xff]  ;;  %v409_v58 = vld [vmem:[#allocation2 + $0x15a] sm:$0xff] }
  0xc3   :  { %5286 = vst [vmem:[#allocation116_spill] sm:$0xff] %v3399_v2  ;;  %5288 = vst [vmem:[#allocation118_spill] sm:$0xff] %v3408_v44  ;;  %v1336_v54 = vadd.f32 %v1272_v48, %v1204_v63  ;;  %v1404_v28 = vmul.f32 %v2839_v35, %v336_v16  ;;  %v485_v57 = vmul.f32 %v2820_v50, %v265_v10  ;;  %v3413_v46 = vsel %vm83_vm0, %v1795_v25, 0.0  ;;  %v410_v44 = vld [vmem:[#allocation2 + $0x16a] sm:$0xff] }
  0xc4   :  { %5289 = vst [vmem:[#allocation119_spill] sm:$0xff] %v3413_v46  ;;  %v1074_v22 = vadd.f32 %v1010_v49, %v942_v55  ;;  %v617_v47 = vmul.f32 %v2822_v51, %v337_v61  ;;  %v1273_v15 = vmul.f32 %v2837_v36, %v265_v10  ;;  %v3419_v40 = vsel %vm83_vm0, %v3399_v2, 0.0  ;;  %v267_v46 = vld [vmem:[#allocation2 + $0x170] sm:$0xff] }
  0xc5   :  { %5290 = vst [vmem:[#allocation120_spill] sm:$0xff] %v3419_v40  ;;  %v943_v63 = vadd.f32 %v879_v3, %v811_v4  ;;  %v1011_v16 = vmul.f32 %v2835_v37, %v337_v61  ;;  %v1142_v48 = vmul.f32 %v2848_v30, %v408_v43  ;;  %v812_v31 = vadd.f32 %v748_v14, %v680_v11  ;;  %v411_v14 = vld [vmem:[#allocation2 + $0x172] sm:$0xff] }
  0xc6   :  { %v486_v25 = vmul.f32 %v2820_v50, %v266_v60  ;;  %v618_v55 = vmul.f32 %v2822_v51, %v338_v1  ;;  %v880_v49 = vmul.f32 %v2833_v38, %v266_v60  ;;  %v1468_v10 = vadd.f32 %v1404_v28, %v1336_v54 }
  0xc7   :  { %v1536_v19 = vmul.f32 %v2886_v24, %v408_v43  ;;  %v487_v40 = vmul.f32 %v2820_v50, %v267_v46  ;;  %v619_v4 = vmul.f32 %v2822_v51, %v339_v8  ;;  %v681_v3 = vadd.f32 %v617_v47, %v485_v57 }
  0xc8   :  { %v1337_v41 = vadd.f32 %v1273_v15, %v1205_v5  ;;  %v1405_v13 = vmul.f32 %v2839_v35, %v337_v61  ;;  %v749_v11 = vmul.f32 %v2831_v42, %v409_v58  ;;  %v1075_v59 = vadd.f32 %v1011_v16, %v943_v63  ;;  %v268_v15 = vld [vmem:[#allocation2 + $0x180] sm:$0xff] }
  0xc9   :  { %v1206_v7 = vadd.f32 %v1142_v48, %v1074_v22  ;;  %v1143_v6 = vmul.f32 %v2848_v30, %v409_v58  ;;  %v1274_v28 = vmul.f32 %v2837_v36, %v266_v60  ;;  %v682_v54 = vadd.f32 %v618_v55, %v486_v25  ;;  %v3443_v60 = vld [vmem:[%s5042_s1 + $0x8] ss:$0 sm:$0xff] }
  0xca   :  { %v944_v24 = vadd.f32 %v880_v49, %v812_v31  ;;  %v1012_v43 = vmul.f32 %v2835_v37, %v338_v1  ;;  %v750_v52 = vmul.f32 %v2831_v42, %v410_v44  ;;  %v1796_v5 = vmul.f32 %v3399_v2, %v3399_v2  ;;  %v269_v48 = vld [vmem:[#allocation2 + $0x188] sm:$0xff] }
  0xcb   :  { %v3437_v57 = vadd.f32 %v1536_v19, %v1468_v10  ;;  %v683_v61 = vadd.f32 %v619_v4, %v487_v40  ;;  %v751_v47 = vmul.f32 %v2831_v42, %v411_v14  ;;  %v1469_v22 = vadd.f32 %v1405_v13, %v1337_v41 }
  0xcc   :  { %v813_v63 = vadd.f32 %v749_v11, %v681_v3  ;;  %v1537_v31 = vmul.f32 %v3443_v60, %v409_v58  ;;  %v881_v16 = vmul.f32 %v2833_v38, %v267_v46  ;;  %v1207_v25 = vadd.f32 %v1143_v6, %v1075_v59  ;;  %v340_v59 = vld [vmem:[#allocation2 + $0x181] sm:$0xff]  ;;  %v341_v11 = vld [vmem:[#allocation2 + $0x189] sm:$0xff] }
  0xcd   :  { %5291 = vst [vmem:[#allocation121_spill] sm:$0xff] %v3437_v57  ;;  %v1338_v55 = vadd.f32 %v1274_v28, %v1206_v7  ;;  %v1406_v19 = vmul.f32 %v2839_v35, %v338_v1  ;;  %v1275_v40 = vmul.f32 %v2837_v36, %v267_v46  ;;  %v1076_v49 = vadd.f32 %v1012_v43, %v944_v24  ;;  %v274_v28 = vld [vmem:[#allocation2 + $0x1c8] sm:$0xff] }
  0xce   :  { %v814_v10 = vadd.f32 %v750_v52, %v682_v54  ;;  %v1144_v41 = vmul.f32 %v2848_v30, %v410_v44  ;;  %v882_v13 = vmul.f32 %v2833_v38, %v268_v15  ;;  %v3452_v4 = vsel %vm83_vm0, %v1796_v5, 0.0 }
  0xcf   :  { %5292 = vst [vmem:[#allocation122_spill] sm:$0xff] %v3452_v4  ;;  %v3456_v58 = vsel %vm83_vm0, %v3437_v57, 0.0  ;;  %v815_v3 = vadd.f32 %v751_v47, %v683_v61  ;;  %v883_v6 = vmul.f32 %v2833_v38, %v269_v48  ;;  %v1797_v7 = vmul.f32 %v3437_v57, %v3437_v57  ;;  %v346_v57 = vld [vmem:[#allocation2 + $0x1c9] sm:$0xff] }
  0xd0   :  { %5293 = vst [vmem:[#allocation123_spill] sm:$0xff] %v3456_v58  ;;  %v3461_v1 = vadd.f32 %v1537_v31, %v1469_v22  ;;  %v945_v52 = vadd.f32 %v881_v16, %v813_v63  ;;  %v1013_v46 = vmul.f32 %v2835_v37, %v339_v8  ;;  %v1470_v54 = vadd.f32 %v1406_v19, %v1338_v55  ;;  %v412_v22 = vld [vmem:[#allocation2 + $0x182] sm:$0xff] }
  0xd1   :  { %v1339_v24 = vadd.f32 %v1275_v40, %v1207_v25  ;;  %v1407_v43 = vmul.f32 %v2839_v35, %v339_v8  ;;  %v1538_v5 = vmul.f32 %v3443_v60, %v410_v44  ;;  %v1208_v61 = vadd.f32 %v1144_v41, %v1076_v49  ;;  %v413_v40 = vld [vmem:[#allocation2 + $0x18a] sm:$0xff] }
  0xd2   :  { %5294 = vst [vmem:[#allocation124_spill] sm:$0xff] %v3461_v1  ;;  %v946_v47 = vadd.f32 %v882_v13, %v814_v10  ;;  %v1014_v2 = vmul.f32 %v2835_v37, %v340_v59  ;;  %v1276_v4 = vmul.f32 %v2837_v36, %v268_v15  ;;  %v947_v31 = vadd.f32 %v883_v6, %v815_v3  ;;  %v275_v13 = vld [vmem:[#allocation2 + $0x1d0] sm:$0xff] }
  0xd3   :  { %v1015_v63 = vmul.f32 %v2835_v37, %v341_v11  ;;  %v816_v16 = vadd.f32 %v2867_v45, %v2913_v12  ;;  %v884_v25 = vmul.f32 %v2833_v38, %v274_v28  ;;  %v1798_v8 = vmul.f32 %v3461_v1, %v3461_v1 }
  0xd4   :  { %v1077_v44 = vadd.f32 %v1013_v46, %v945_v52  ;;  %v1145_v55 = vmul.f32 %v2848_v30, %v411_v14  ;;  %v1539_v19 = vmul.f32 %v3443_v60, %v411_v14  ;;  %v1471_v15 = vadd.f32 %v1407_v43, %v1339_v24  ;;  %v418_v52 = vld [vmem:[#allocation2 + $0x1ca] sm:$0xff] }
  0xd5   :  { %v3476_v49 = vadd.f32 %v1538_v5, %v1470_v54  ;;  %v490_v10 = vmul.f32 %v2820_v50, %v274_v28  ;;  %v622_v41 = vmul.f32 %v2822_v51, %v346_v57  ;;  %v1078_v12 = vadd.f32 %v1014_v2, %v946_v47 }
  0xd6   :  { %v1340_v45 = vadd.f32 %v1276_v4, %v1208_v61  ;;  %v1408_v3 = vmul.f32 %v2839_v35, %v340_v59  ;;  %v1146_v6 = vmul.f32 %v2848_v30, %v412_v22  ;;  %v1079_v46 = vadd.f32 %v1015_v63, %v947_v31  ;;  %v276_v63 = vld [vmem:[#allocation2 + $0x1e0] sm:$0xff] }
  0xd7   :  { %5295 = vst [vmem:[#allocation125_spill] sm:$0xff] %v3476_v49  ;;  %v948_v58 = vadd.f32 %v884_v25, %v816_v16  ;;  %v1016_v14 = vmul.f32 %v2835_v37, %v346_v57  ;;  %v1147_v24 = vmul.f32 %v2848_v30, %v413_v40  ;;  %v3485_v54 = vsel %vm83_vm0, %v1797_v7, 0.0 }
  0xd8   :  { %5296 = vst [vmem:[#allocation126_spill] sm:$0xff] %v3485_v54  ;;  %v1209_v28 = vadd.f32 %v1145_v55, %v1077_v44  ;;  %v1277_v43 = vmul.f32 %v2837_v36, %v269_v48  ;;  %v885_v2 = vmul.f32 %v2833_v38, %v275_v13  ;;  %v3491_v4 = vsel %vm83_vm0, %v3461_v1, 0.0  ;;  %v347_v48 = vld [vmem:[#allocation2 + $0x1d1] sm:$0xff] }
  0xd9   :  { %v3494_v59 = vsel %vm83_vm0, %v1798_v8, 0.0  ;;  %v686_v5 = vadd.f32 %v622_v41, %v490_v10  ;;  %v754_v57 = vmul.f32 %v2831_v42, %v418_v52  ;;  %v1799_v61 = vmul.f32 %v3476_v49, %v3476_v49 }
  0xda   :  { %5297 = vst [vmem:[#allocation127_spill] sm:$0xff] %v3494_v59  ;;  %v3499_v7 = vadd.f32 %v1539_v19, %v1471_v15  ;;  %v1472_v47 = vadd.f32 %v1408_v3, %v1340_v45  ;;  %v1210_v31 = vadd.f32 %v1146_v6, %v1078_v12  ;;  %v1540_v16 = vmul.f32 %v3443_v60, %v412_v22  ;;  %v419_v3 = vld [vmem:[#allocation2 + $0x1d2] sm:$0xff] }
  0xdb   :  { %v1080_v25 = vadd.f32 %v1016_v14, %v948_v58  ;;  %v1211_v44 = vadd.f32 %v1147_v24, %v1079_v46  ;;  %v1148_v55 = vmul.f32 %v2848_v30, %v418_v52  ;;  %v1341_v8 = vadd.f32 %v1277_v43, %v1209_v28  ;;  %v348_v46 = vld [vmem:[#allocation2 + $0x1e1] sm:$0xff] }
  0xdc   :  { %5298 = vst [vmem:[#allocation128_spill] sm:$0xff] %v3499_v7  ;;  %v1409_v10 = vmul.f32 %v2839_v35, %v341_v11  ;;  %v949_v41 = vadd.f32 %v885_v2, %v2938_v23  ;;  %v1017_v1 = vmul.f32 %v2835_v37, %v347_v48  ;;  %v491_v19 = vmul.f32 %v2820_v50, %v275_v13 }
  0xdd   :  { %v623_v15 = vmul.f32 %v2822_v51, %v347_v48  ;;  %v818_v12 = vadd.f32 %v754_v57, %v686_v5  ;;  %v886_v45 = vmul.f32 %v2833_v38, %v276_v63  ;;  %v3511_v58 = vsel %vm83_vm0, %v3476_v49, 0.0  ;;  %v352_v49 = vld [vmem:[#allocation2 + $0x211] sm:$0xff] }
  0xde   :  { %v3514_v22 = vsel %vm83_vm0, %v1799_v61, 0.0  ;;  %v3518_v11 = vsel %vm83_vm0, %v3499_v7, 0.0  ;;  %v1342_v23 = vadd.f32 %v2890_v21, %v1210_v31  ;;  %v3521_v13 = vadd.f32 %v1540_v16, %v1472_v47  ;;  %v277_v16 = vld [vmem:[#allocation2 + $0x1e8] sm:$0xff] }
  0xdf   :  { %5299 = vst [vmem:[#allocation129_spill] sm:$0xff] %v3514_v22  ;;  %5300 = vst [vmem:[#allocation130_spill] sm:$0xff] %v3518_v11  ;;  %v1343_v6 = vadd.f32 %v2852_v62, %v1211_v44  ;;  %v1212_v52 = vadd.f32 %v1148_v55, %v1080_v25  ;;  %v1280_v14 = vmul.f32 %v2837_v36, %v276_v63 }
  0xe0   :  { %5301 = vst [vmem:[#allocation131_spill] sm:$0xff] %v3521_v13  ;;  %v1800_v24 = vmul.f32 %v3499_v7, %v3499_v7  ;;  %v1473_v28 = vadd.f32 %v1409_v10, %v1341_v8  ;;  %v1081_v43 = vadd.f32 %v1017_v1, %v949_v41  ;;  %v1149_v2 = vmul.f32 %v2848_v30, %v419_v3  ;;  %v420_v8 = vld [vmem:[#allocation2 + $0x1e2] sm:$0xff] }
  0xe1   :  { %v687_v5 = vadd.f32 %v623_v15, %v491_v19  ;;  %v755_v57 = vmul.f32 %v2831_v42, %v419_v3  ;;  %v950_v21 = vadd.f32 %v886_v45, %v818_v12  ;;  %v1018_v61 = vmul.f32 %v2835_v37, %v348_v46  ;;  %v349_v15 = vld [vmem:[#allocation2 + $0x1e9] sm:$0xff] }
  0xe2   :  { %v1474_v47 = vadd.f32 %v2858_v0, %v1342_v23  ;;  %v1541_v62 = vmul.f32 %v3443_v60, %v413_v40  ;;  %v492_v31 = vmul.f32 %v2820_v50, %v276_v63  ;;  %v624_v48 = vmul.f32 %v2822_v51, %v348_v46 }
  0xe3   :  { %v1801_v1 = vmul.f32 %v3521_v13, %v3521_v13  ;;  %v1475_v25 = vadd.f32 %v2902_v53, %v1343_v6  ;;  %v1344_v44 = vadd.f32 %v1280_v14, %v1212_v52  ;;  %v1412_v55 = vmul.f32 %v2839_v35, %v348_v46 }
  0xe4   :  { %v3539_v10 = vsel %vm83_vm0, %v1800_v24, 0.0  ;;  %v3543_v0 = vsel %vm83_vm0, %v3521_v13, 0.0  ;;  %v1213_v40 = vadd.f32 %v1149_v2, %v1081_v43  ;;  %v1281_v63 = vmul.f32 %v2837_v36, %v277_v16  ;;  %v278_v43 = vld [vmem:[#allocation2 + $0x1f8] sm:$0xff] }
  0xe5   :  { %5302 = vst [vmem:[#allocation132_spill] sm:$0xff] %v3539_v10  ;;  %5303 = vst [vmem:[#allocation133_spill] sm:$0xff] %v3543_v0  ;;  %v819_v41 = vadd.f32 %v755_v57, %v687_v5  ;;  %v1082_v19 = vadd.f32 %v1018_v61, %v950_v21  ;;  %v887_v12 = vmul.f32 %v2833_v38, %v277_v16  ;;  %v3555_v52 = vsel %vm83_vm0, %v1801_v1, 0.0  ;;  %v3864_v0 = vld [vmem:[#allocation2 + $0x3a] sm:$0xff] }
  0xe6   :  { %v1150_v53 = vmul.f32 %v2848_v30, %v420_v8  ;;  %v3548_v45 = vadd.f32 %v1541_v62, %v1473_v28  ;;  %v3551_v23 = vadd.f32 %v2893_v20, %v1474_v47  ;;  %v688_v3 = vadd.f32 %v624_v48, %v492_v31  ;;  %5306 = vst [vmem:[#allocation136_spill] sm:$0xff] %v3555_v52  ;;  %v421_v47 = vld [vmem:[#allocation2 + $0x1ea] sm:$0xff] }
  0xe7   :  { %v756_v6 = vmul.f32 %v2831_v42, %v420_v8  ;;  %v3558_v46 = vadd.f32 %v2930_v27, %v1475_v25  ;;  %v1476_v14 = vadd.f32 %v1412_v55, %v1344_v44  ;;  %v1544_v24 = vmul.f32 %v3443_v60, %v420_v8  ;;  %v350_v8 = vld [vmem:[#allocation2 + $0x1f9] sm:$0xff] }
  0xe8   :  { %5304 = vst [vmem:[#allocation134_spill] sm:$0xff] %v3548_v45  ;;  %5305 = vst [vmem:[#allocation135_spill] sm:$0xff] %v3551_v23  ;;  %v493_v2 = vmul.f32 %v2820_v50, %v277_v16  ;;  %v625_v28 = vmul.f32 %v2822_v51, %v349_v15  ;;  %v1345_v5 = vadd.f32 %v1281_v63, %v1213_v40  ;;  %v3568_v27 = vsel %vm83_vm0, %v3548_v45, 0.0 }
  0xe9   :  { %5307 = vst [vmem:[#allocation137_spill] sm:$0xff] %v3558_v46  ;;  %v1413_v20 = vmul.f32 %v2839_v35, %v349_v15  ;;  %v951_v57 = vadd.f32 %v887_v12, %v819_v41  ;;  %v1019_v21 = vmul.f32 %v2835_v37, %v349_v15  ;;  %v1214_v61 = vadd.f32 %v1150_v53, %v1082_v19 }
  0xea   :  { %v1282_v62 = vmul.f32 %v2837_v36, %v278_v43  ;;  %5308 = vst [vmem:[#allocation138_spill] sm:$0xff] %v3568_v27  ;;  %v3572_v31 = vsel %vm83_vm0, %v3551_v23, 0.0  ;;  %v820_v48 = vadd.f32 %v756_v6, %v688_v3  ;;  %v888_v16 = vmul.f32 %v2833_v38, %v278_v43  ;;  %v279_v6 = vld [vmem:[#allocation2 + $0x200] sm:$0xff] }
  0xeb   :  { %5309 = vst [vmem:[#allocation139_spill] sm:$0xff] %v3572_v31  ;;  %v1802_v1 = vmul.f32 %v3548_v45, %v3548_v45  ;;  %v1803_v25 = vmul.f32 %v3551_v23, %v3551_v23  ;;  %v1804_v44 = vmul.f32 %v3558_v46, %v3558_v46  ;;  %v3581_v55 = vadd.f32 %v1544_v24, %v1476_v14 }
  0xec   :  { %v689_v40 = vadd.f32 %v625_v28, %v493_v2  ;;  %v1477_v63 = vadd.f32 %v1413_v20, %v1345_v5  ;;  %v757_v41 = vmul.f32 %v2831_v42, %v421_v47  ;;  %v1545_v19 = vmul.f32 %v3443_v60, %v421_v47 }
  0xed   :  { %5310 = vst [vmem:[#allocation140_spill] sm:$0xff] %v3581_v55  ;;  %v1083_v15 = vadd.f32 %v1019_v21, %v951_v57  ;;  %v1151_v12 = vmul.f32 %v2848_v30, %v421_v47  ;;  %v1346_v53 = vadd.f32 %v1282_v62, %v1214_v61  ;;  %v1414_v3 = vmul.f32 %v2839_v35, %v350_v8  ;;  %v422_v57 = vld [vmem:[#allocation2 + $0x1fa] sm:$0xff] }
  0xee   :  { %v494_v23 = vmul.f32 %v2820_v50, %v278_v43  ;;  %v626_v45 = vmul.f32 %v2822_v51, %v350_v8  ;;  %v952_v14 = vadd.f32 %v888_v16, %v820_v48  ;;  %v1020_v24 = vmul.f32 %v2835_v37, %v350_v8  ;;  %v351_v47 = vld [vmem:[#allocation2 + $0x201] sm:$0xff] }
  0xef   :  { %v3592_v2 = vsel %vm83_vm0, %v3558_v46, 0.0  ;;  %v3595_v28 = vsel %vm83_vm0, %v1802_v1, 0.0  ;;  %v3598_v5 = vsel %vm83_vm0, %v1803_v25, 0.0  ;;  %v1805_v20 = vmul.f32 %v3581_v55, %v3581_v55 }
  0xf0   :  { %5311 = vst [vmem:[#allocation141_spill] sm:$0xff] %v3592_v2  ;;  %5312 = vst [vmem:[#allocation142_spill] sm:$0xff] %v3595_v28  ;;  %v3603_v43 = vsel %vm83_vm0, %v1804_v44, 0.0  ;;  %v821_v21 = vadd.f32 %v757_v41, %v689_v40  ;;  %v3605_v61 = vadd.f32 %v1545_v19, %v1477_v63  ;;  %v889_v62 = vmul.f32 %v2833_v38, %v279_v6  ;;  %v280_v44 = vld [vmem:[#allocation2 + $0x210] sm:$0xff] }
  0xf1   :  { %5313 = vst [vmem:[#allocation143_spill] sm:$0xff] %v3598_v5  ;;  %5314 = vst [vmem:[#allocation144_spill] sm:$0xff] %v3603_v43  ;;  %v1215_v48 = vadd.f32 %v1151_v12, %v1083_v15  ;;  %v1478_v16 = vadd.f32 %v1414_v3, %v1346_v53  ;;  %v1283_v1 = vmul.f32 %v2837_v36, %v279_v6  ;;  %v3614_v40 = vsel %vm83_vm0, %v3581_v55, 0.0  ;;  %v423_v53 = vld [vmem:[#allocation2 + $0x202] sm:$0xff]  ;;  %v281_v3 = vld [vmem:[#allocation2 + $0x218] sm:$0xff] }
  0xf2   :  { %5315 = vst [vmem:[#allocation145_spill] sm:$0xff] %v3605_v61  ;;  %v1546_v25 = vmul.f32 %v3443_v60, %v422_v57  ;;  %v690_v8 = vadd.f32 %v626_v45, %v494_v23  ;;  %v1084_v46 = vadd.f32 %v1020_v24, %v952_v14  ;;  %v758_v13 = vmul.f32 %v2831_v42, %v422_v57  ;;  %v353_v14 = vld [vmem:[#allocation2 + $0x219] sm:$0xff] }
  0xf3   :  { %v1152_v7 = vmul.f32 %v2848_v30, %v422_v57  ;;  %5316 = vst [vmem:[#allocation146_spill] sm:$0xff] %v3614_v40  ;;  %v3617_v63 = vsel %vm83_vm0, %v1805_v20, 0.0  ;;  %v495_v41 = vmul.f32 %v2820_v50, %v279_v6  ;;  %v627_v19 = vmul.f32 %v2822_v51, %v351_v47  ;;  %v354_v40 = vld [vmem:[#allocation2 + $0x229] sm:$0xff] }
  0xf4   :  { %5317 = vst [vmem:[#allocation147_spill] sm:$0xff] %v3617_v63  ;;  %v1806_v45 = vmul.f32 %v3605_v61, %v3605_v61  ;;  %v953_v23 = vadd.f32 %v889_v62, %v821_v21  ;;  %v1021_v15 = vmul.f32 %v2835_v37, %v351_v47  ;;  %v1415_v12 = vmul.f32 %v2839_v35, %v351_v47  ;;  %v424_v47 = vld [vmem:[#allocation2 + $0x212] sm:$0xff] }
  0xf5   :  { %v1347_v24 = vadd.f32 %v1283_v1, %v1215_v48  ;;  %v3625_v57 = vadd.f32 %v1546_v25, %v1478_v16  ;;  %v496_v20 = vmul.f32 %v2820_v50, %v280_v44  ;;  %v628_v6 = vmul.f32 %v2822_v51, %v352_v49 }
  0xf6   :  { %v822_v55 = vadd.f32 %v758_v13, %v690_v8  ;;  %v1216_v63 = vadd.f32 %v1152_v7, %v1084_v46  ;;  %v890_v43 = vmul.f32 %v2833_v38, %v280_v44  ;;  %v1284_v21 = vmul.f32 %v2837_v36, %v280_v44  ;;  %v425_v46 = vld [vmem:[#allocation2 + $0x21a] sm:$0xff] }
  0xf7   :  { %5318 = vst [vmem:[#allocation148_spill] sm:$0xff] %v3625_v57  ;;  %v691_v62 = vadd.f32 %v627_v19, %v495_v41  ;;  %v759_v5 = vmul.f32 %v2831_v42, %v423_v53  ;;  %v497_v28 = vmul.f32 %v2820_v50, %v281_v3  ;;  %v629_v48 = vmul.f32 %v2822_v51, %v353_v14  ;;  %v282_v19 = vld [vmem:[#allocation2 + $0x228] sm:$0xff] }
  0xf8   :  { %v3636_v16 = vsel %vm83_vm0, %v3605_v61, 0.0  ;;  %v1085_v1 = vadd.f32 %v1021_v15, %v953_v23  ;;  %v1153_v13 = vmul.f32 %v2848_v30, %v423_v53  ;;  %v1547_v7 = vmul.f32 %v3443_v60, %v423_v53 }
  0xf9   :  { %5319 = vst [vmem:[#allocation149_spill] sm:$0xff] %v3636_v16  ;;  %v1479_v25 = vadd.f32 %v1415_v12, %v1347_v24  ;;  %v1807_v8 = vmul.f32 %v3625_v57, %v3625_v57  ;;  %v692_v44 = vadd.f32 %v628_v6, %v496_v20  ;;  %v1022_v41 = vmul.f32 %v2835_v37, %v352_v49 }
  0xfa   :  { %v954_v52 = vadd.f32 %v890_v43, %v822_v55  ;;  %v1348_v2 = vadd.f32 %v1284_v21, %v1216_v63  ;;  %v1416_v61 = vmul.f32 %v2839_v35, %v352_v49  ;;  %v760_v23 = vmul.f32 %v2831_v42, %v424_v47  ;;  %v283_v55 = vld [vmem:[#allocation2 + $0x230] sm:$0xff] }
  0xfb   :  { %v3646_v15 = vsel %vm83_vm0, %v1806_v45, 0.0  ;;  %v823_v53 = vadd.f32 %v759_v5, %v691_v62  ;;  %v693_v16 = vadd.f32 %v629_v48, %v497_v28  ;;  %v761_v12 = vmul.f32 %v2831_v42, %v425_v46  ;;  %v3662_v5 = vld [vmem:[#allocation2 + $0x22a] sm:$0xff] }
  0xfc   :  { %5320 = vst [vmem:[#allocation150_spill] sm:$0xff] %v3646_v15  ;;  %v1217_v24 = vadd.f32 %v1153_v13, %v1085_v1  ;;  %v891_v20 = vmul.f32 %v2833_v38, %v281_v3  ;;  %v498_v6 = vmul.f32 %v2820_v50, %v282_v19  ;;  %v630_v10 = vmul.f32 %v2822_v51, %v354_v40  ;;  %v355_v1 = vld [vmem:[#allocation2 + $0x231] sm:$0xff] }
  0xfd   :  { %v3654_v49 = vsel %vm83_vm0, %v3625_v57, 0.0  ;;  %v3657_v43 = vsel %vm83_vm0, %v1807_v8, 0.0  ;;  %v3659_v63 = vadd.f32 %v1547_v7, %v1479_v25  ;;  %v1285_v28 = vmul.f32 %v2837_v36, %v281_v3 }
  0xfe   :  { %5321 = vst [vmem:[#allocation151_spill] sm:$0xff] %v3654_v49  ;;  %5322 = vst [vmem:[#allocation152_spill] sm:$0xff] %v3657_v43  ;;  %v1086_v45 = vadd.f32 %v1022_v41, %v954_v52  ;;  %v1480_v21 = vadd.f32 %v1416_v61, %v1348_v2  ;;  %v824_v62 = vadd.f32 %v760_v23, %v692_v44  ;;  %v284_v41 = vld [vmem:[#allocation2 + $0x240] sm:$0xff] }
  0xff   :  { %5323 = vst [vmem:[#allocation153_spill] sm:$0xff] %v3659_v63  ;;  %v892_v48 = vmul.f32 %v2833_v38, %v282_v19  ;;  %v1023_v13 = vmul.f32 %v2835_v37, %v353_v14  ;;  %v1154_v57 = vmul.f32 %v2848_v30, %v424_v47  ;;  %v825_v15 = vadd.f32 %v761_v12, %v693_v16 }
 0x100   :  { %v893_v8 = vmul.f32 %v2833_v38, %v283_v55  ;;  %v955_v43 = vadd.f32 %v891_v20, %v823_v53  ;;  %v1417_v7 = vmul.f32 %v2839_v35, %v353_v14  ;;  %v694_v25 = vadd.f32 %v630_v10, %v498_v6  ;;  %v427_v10 = vld [vmem:[#allocation2 + $0x232] sm:$0xff] }
 0x101   :  { %v762_v3 = vmul.f32 %v2831_v42, %v3662_v5  ;;  %v1349_v52 = vadd.f32 %v1285_v28, %v1217_v24  ;;  %v1548_v2 = vmul.f32 %v3443_v60, %v424_v47  ;;  %v499_v61 = vmul.f32 %v2820_v50, %v283_v55 }
 0x102   :  { %v631_v44 = vmul.f32 %v2822_v51, %v355_v1  ;;  %v1808_v16 = vmul.f32 %v3659_v63, %v3659_v63  ;;  %v1155_v23 = vmul.f32 %v2848_v30, %v425_v46  ;;  %v956_v53 = vadd.f32 %v892_v48, %v824_v62 }
 0x103   :  { %v1024_v14 = vmul.f32 %v2835_v37, %v354_v40  ;;  %v1218_v12 = vadd.f32 %v1154_v57, %v1086_v45  ;;  %v1286_v20 = vmul.f32 %v2837_v36, %v282_v19  ;;  %v957_v24 = vadd.f32 %v893_v8, %v825_v15  ;;  %v356_v8 = vld [vmem:[#allocation2 + $0x241] sm:$0xff] }
 0x104   :  { %v1025_v47 = vmul.f32 %v2835_v37, %v355_v1  ;;  %v1087_v6 = vadd.f32 %v1023_v13, %v955_v43  ;;  %v1549_v28 = vmul.f32 %v3443_v60, %v425_v46  ;;  %v826_v49 = vadd.f32 %v762_v3, %v694_v25  ;;  %v285_v43 = vld [vmem:[#allocation2 + $0x248] sm:$0xff] }
 0x105   :  { %v894_v31 = vmul.f32 %v2833_v38, %v284_v41  ;;  %v1481_v22 = vadd.f32 %v1417_v7, %v1349_v52  ;;  %v3682_v27 = vadd.f32 %v1548_v2, %v1480_v21  ;;  %v695_v59 = vadd.f32 %v631_v44, %v499_v61 }
 0x106   :  { %v763_v62 = vmul.f32 %v2831_v42, %v427_v10  ;;  %v3687_v57 = vsel %vm83_vm0, %v3659_v63, 0.0  ;;  %v3690_v19 = vsel %vm83_vm0, %v1808_v16, 0.0  ;;  %v1088_v15 = vadd.f32 %v1024_v14, %v956_v53 }
 0x107   :  { %5324 = vst [vmem:[#allocation154_spill] sm:$0xff] %v3682_v27  ;;  %5325 = vst [vmem:[#allocation155_spill] sm:$0xff] %v3687_v57  ;;  %v1156_v46 = vmul.f32 %v2848_v30, %v3662_v5  ;;  %v1350_v45 = vadd.f32 %v1286_v20, %v1218_v12  ;;  %v1418_v48 = vmul.f32 %v2839_v35, %v354_v40  ;;  %v357_v12 = vld [vmem:[#allocation2 + $0x249] sm:$0xff]  ;;  %v3862_v57 = vld [vmem:[#allocation2 + $0x32] sm:$0xff] }
 0x108   :  { %5326 = vst [vmem:[#allocation156_spill] sm:$0xff] %v3690_v19  ;;  %v1089_v21 = vadd.f32 %v1025_v47, %v957_v24  ;;  %v1157_v13 = vmul.f32 %v2848_v30, %v427_v10  ;;  %v1219_v7 = vadd.f32 %v1155_v23, %v1087_v6  ;;  %v1287_v25 = vmul.f32 %v2837_v36, %v283_v55  ;;  %v428_v20 = vld [vmem:[#allocation2 + $0x242] sm:$0xff] }
 0x109   :  { %v958_v3 = vadd.f32 %v894_v31, %v826_v49  ;;  %v1026_v52 = vmul.f32 %v2835_v37, %v356_v8  ;;  %v1809_v2 = vmul.f32 %v3682_v27, %v3682_v27  ;;  %v3700_v61 = vadd.f32 %v1549_v28, %v1481_v22  ;;  %v380_v19 = vld [vmem:[#allocation2 + $0x2] sm:$0xff] }
 0x10a   :  { %v827_v44 = vadd.f32 %v763_v62, %v695_v59  ;;  %v895_v16 = vmul.f32 %v2833_v38, %v285_v43  ;;  %v1220_v53 = vadd.f32 %v1156_v46, %v1088_v15  ;;  %v500_v40 = vmul.f32 %v2820_v50, %v284_v41 }
 0x10b   :  { %5327 = vst [vmem:[#allocation157_spill] sm:$0xff] %v3700_v61  ;;  %v632_v14 = vmul.f32 %v2822_v51, %v356_v8  ;;  %v1288_v23 = vmul.f32 %v2837_v36, %v284_v41  ;;  %v1482_v55 = vadd.f32 %v1418_v48, %v1350_v45  ;;  %v1419_v31 = vmul.f32 %v2839_v35, %v355_v1 }
 0x10c   :  { %v1221_v49 = vadd.f32 %v1157_v13, %v1089_v21  ;;  %v1289_v24 = vmul.f32 %v2837_v36, %v285_v43  ;;  %v1351_v22 = vadd.f32 %v1287_v25, %v1219_v7  ;;  %v1550_v59 = vmul.f32 %v3443_v60, %v3662_v5  ;;  %v429_v21 = vld [vmem:[#allocation2 + $0x24a] sm:$0xff]  ;;  %v286_v25 = vld [vmem:[#allocation2 + $0x258] sm:$0xff] }
 0x10d   :  { %v1090_v47 = vadd.f32 %v1026_v52, %v958_v3  ;;  %v1158_v6 = vmul.f32 %v2848_v30, %v428_v20  ;;  %v501_v28 = vmul.f32 %v2820_v50, %v285_v43  ;;  %v633_v62 = vmul.f32 %v2822_v51, %v357_v12 }
 0x10e   :  { %v959_v41 = vadd.f32 %v895_v16, %v827_v44  ;;  %v1027_v15 = vmul.f32 %v2835_v37, %v357_v12  ;;  %v696_v46 = vadd.f32 %v632_v14, %v500_v40  ;;  %v1352_v1 = vadd.f32 %v1288_v23, %v1220_v53 }
 0x10f   :  { %v1420_v45 = vmul.f32 %v2839_v35, %v356_v8  ;;  %v764_v48 = vmul.f32 %v2831_v42, %v428_v20  ;;  %v3718_v5 = vsel %vm83_vm0, %v3682_v27, 0.0  ;;  %v3721_v13 = vsel %vm83_vm0, %v1809_v2, 0.0 }
 0x110   :  { %5328 = vst [vmem:[#allocation158_spill] sm:$0xff] %v3718_v5  ;;  %5329 = vst [vmem:[#allocation159_spill] sm:$0xff] %v3721_v13  ;;  %v1353_v43 = vadd.f32 %v1289_v24, %v1221_v49  ;;  %v1421_v7 = vmul.f32 %v2839_v35, %v357_v12  ;;  %v1810_v3 = vmul.f32 %v3700_v61, %v3700_v61  ;;  %v287_v24 = vld [vmem:[#allocation2 + $0x260] sm:$0xff] }
 0x111   :  { %v1551_v52 = vmul.f32 %v3443_v60, %v427_v10  ;;  %v1222_v8 = vadd.f32 %v1158_v6, %v1090_v47  ;;  %v1290_v44 = vmul.f32 %v2837_v36, %v286_v25  ;;  %v697_v16 = vadd.f32 %v633_v62, %v501_v28  ;;  %v358_v47 = vld [vmem:[#allocation2 + $0x259] sm:$0xff] }
 0x112   :  { %v1091_v53 = vadd.f32 %v1027_v15, %v959_v41  ;;  %v765_v40 = vmul.f32 %v2831_v42, %v429_v21  ;;  %v1159_v14 = vmul.f32 %v2848_v30, %v429_v21  ;;  %v1483_v2 = vadd.f32 %v1419_v31, %v1351_v22  ;;  %v359_v41 = vld [vmem:[#allocation2 + $0x261] sm:$0xff] }
 0x113   :  { %v3730_v23 = vadd.f32 %v1550_v59, %v1482_v55  ;;  %v1484_v49 = vadd.f32 %v1420_v45, %v1352_v1  ;;  %v828_v12 = vadd.f32 %v764_v48, %v696_v46  ;;  %v1485_v27 = vadd.f32 %v1421_v7, %v1353_v43  ;;  %v382_v5 = vld [vmem:[#allocation2 + $0x1a] sm:$0xff] }
 0x114   :  { %v1552_v63 = vmul.f32 %v3443_v60, %v428_v20  ;;  %v1553_v10 = vmul.f32 %v3443_v60, %v429_v21  ;;  %v896_v6 = vmul.f32 %v2833_v38, %v286_v25  ;;  %v3737_v28 = vsel %vm83_vm0, %v3700_v61, 0.0 }
 0x115   :  { %5330 = vst [vmem:[#allocation160_spill] sm:$0xff] %v3730_v23  ;;  %5331 = vst [vmem:[#allocation161_spill] sm:$0xff] %v3737_v28  ;;  %v3740_v62 = vsel %vm83_vm0, %v1810_v3, 0.0  ;;  %v1354_v55 = vadd.f32 %v1290_v44, %v1222_v8  ;;  %v1422_v31 = vmul.f32 %v2839_v35, %v358_v47  ;;  %v829_v22 = vadd.f32 %v765_v40, %v697_v16  ;;  %v430_v8 = vld [vmem:[#allocation2 + $0x25a] sm:$0xff] }
 0x116   :  { %5332 = vst [vmem:[#allocation162_spill] sm:$0xff] %v3740_v62  ;;  %v1223_v59 = vadd.f32 %v1159_v14, %v1091_v53  ;;  %v897_v20 = vmul.f32 %v2833_v38, %v287_v24  ;;  %v1291_v15 = vmul.f32 %v2837_v36, %v287_v24  ;;  %v1811_v46 = vmul.f32 %v3730_v23, %v3730_v23 }
 0x117   :  { %v3747_v1 = vadd.f32 %v1551_v52, %v1483_v2  ;;  %v502_v45 = vmul.f32 %v2820_v50, %v286_v25  ;;  %v634_v48 = vmul.f32 %v2822_v51, %v358_v47  ;;  %v3751_v21 = vadd.f32 %v1552_v63, %v1484_v49  ;;  %v431_v2 = vld [vmem:[#allocation2 + $0x262] sm:$0xff] }
 0x118   :  { %v3753_v43 = vadd.f32 %v1553_v10, %v1485_v27  ;;  %v960_v7 = vadd.f32 %v896_v6, %v828_v12  ;;  %v1028_v3 = vmul.f32 %v2835_v37, %v358_v47  ;;  %v1486_v44 = vadd.f32 %v1422_v31, %v1354_v55  ;;  %v288_v31 = vld [vmem:[#allocation2 + $0x270] sm:$0xff] }
 0x119   :  { %5333 = vst [vmem:[#allocation163_spill] sm:$0xff] %v3747_v1  ;;  %5334 = vst [vmem:[#allocation164_spill] sm:$0xff] %v3751_v21  ;;  %v503_v16 = vmul.f32 %v2820_v50, %v287_v24  ;;  %v635_v53 = vmul.f32 %v2822_v51, %v359_v41  ;;  %v1554_v52 = vmul.f32 %v3443_v60, %v430_v8  ;;  %v3763_v27 = vsel %vm83_vm0, %v3730_v23, 0.0 }
 0x11a   :  { %5335 = vst [vmem:[#allocation165_spill] sm:$0xff] %v3753_v43  ;;  %v961_v40 = vadd.f32 %v897_v20, %v829_v22  ;;  %v1029_v25 = vmul.f32 %v2835_v37, %v359_v41  ;;  %v1355_v14 = vadd.f32 %v1291_v15, %v1223_v59  ;;  %v1423_v63 = vmul.f32 %v2839_v35, %v359_v41  ;;  %v360_v22 = vld [vmem:[#allocation2 + $0x271] sm:$0xff] }
 0x11b   :  { %5336 = vst [vmem:[#allocation166_spill] sm:$0xff] %v3763_v27  ;;  %v3766_v49 = vsel %vm83_vm0, %v1811_v46, 0.0  ;;  %v698_v12 = vadd.f32 %v634_v48, %v502_v45  ;;  %v766_v24 = vmul.f32 %v2831_v42, %v430_v8  ;;  %v1812_v10 = vmul.f32 %v3747_v1, %v3747_v1 }
 0x11c   :  { %5337 = vst [vmem:[#allocation167_spill] sm:$0xff] %v3766_v49  ;;  %v1813_v47 = vmul.f32 %v3751_v21, %v3751_v21  ;;  %v1092_v6 = vadd.f32 %v1028_v3, %v960_v7  ;;  %v1160_v55 = vmul.f32 %v2848_v30, %v430_v8  ;;  %v1814_v59 = vmul.f32 %v3753_v43, %v3753_v43  ;;  %v238_v49 = vld [vmem:[#allocation2 + $0x18] sm:$0xff] }
 0x11d   :  { %v699_v41 = vadd.f32 %v635_v53, %v503_v16  ;;  %v3776_v20 = vadd.f32 %v1554_v52, %v1486_v44  ;;  %v767_v15 = vmul.f32 %v2831_v42, %v431_v2  ;;  %v1093_v46 = vadd.f32 %v1029_v25, %v961_v40 }
 0x11e   :  { %v1487_v45 = vadd.f32 %v1423_v63, %v1355_v14  ;;  %v1161_v48 = vmul.f32 %v2848_v30, %v431_v2  ;;  %v1555_v23 = vmul.f32 %v3443_v60, %v431_v2  ;;  %v830_v61 = vadd.f32 %v766_v24, %v698_v12  ;;  %v289_v2 = vld [vmem:[#allocation2 + $0x278] sm:$0xff] }
 0x11f   :  { %5338 = vst [vmem:[#allocation168_spill] sm:$0xff] %v3776_v20  ;;  %v504_v7 = vmul.f32 %v2820_v50, %v288_v31  ;;  %v636_v3 = vmul.f32 %v2822_v51, %v360_v22  ;;  %v898_v8 = vmul.f32 %v2833_v38, %v288_v31  ;;  %v3786_v16 = vsel %vm83_vm0, %v3747_v1, 0.0  ;;  %v361_v12 = vld [vmem:[#allocation2 + $0x279] sm:$0xff] }
 0x120   :  { %5339 = vst [vmem:[#allocation169_spill] sm:$0xff] %v3786_v16  ;;  %v3789_v44 = vsel %vm83_vm0, %v1812_v10, 0.0  ;;  %v1224_v53 = vadd.f32 %v1160_v55, %v1092_v6  ;;  %v1292_v52 = vmul.f32 %v2837_v36, %v288_v31  ;;  %v3794_v40 = vsel %vm83_vm0, %v3751_v21, 0.0  ;;  %v432_v31 = vld [vmem:[#allocation2 + $0x272] sm:$0xff]  ;;  %v308_v21 = vld [vmem:[#allocation2 + $0x1] sm:$0xff] }
 0x121   :  { %5340 = vst [vmem:[#allocation170_spill] sm:$0xff] %v3789_v44  ;;  %5341 = vst [vmem:[#allocation171_spill] sm:$0xff] %v3794_v40  ;;  %v3797_v25 = vsel %vm83_vm0, %v1813_v47, 0.0  ;;  %v3801_v14 = vsel %vm83_vm0, %v3753_v43, 0.0  ;;  %v1815_v63 = vmul.f32 %v3776_v20, %v3776_v20  ;;  %v3806_v24 = vsel %vm83_vm0, %v1814_v59, 0.0  ;;  %v236_v47 = vld [vmem:[#allocation2] sm:$0xff] }
 0x122   :  { %5342 = vst [vmem:[#allocation172_spill] sm:$0xff] %v3797_v25  ;;  %5343 = vst [vmem:[#allocation173_spill] sm:$0xff] %v3801_v14  ;;  %v831_v10 = vadd.f32 %v767_v15, %v699_v41  ;;  %v3808_v6 = vadd.f32 %v1161_v48, %v1093_v46  ;;  %v3810_v55 = vadd.f32 %v1555_v23, %v1487_v45  ;;  %v3814_v43 = vsel %vm83_vm0, %v3776_v20, 0.0  ;;  %v3817_v14 = vld [vmem:[#allocation2 + $0x30] sm:$0xff]  ;;  %v3819_v59 = vld [vmem:[#allocation2 + $0x48] sm:$0xff] }
 0x123   :  { %5344 = vst [vmem:[#allocation174_spill] sm:$0xff] %v3806_v24  ;;  %5346 = vst [vmem:[#allocation176_spill] sm:$0xff] %v3814_v43  ;;  %v700_v1 = vadd.f32 %v636_v3, %v504_v7  ;;  %v962_v25 = vadd.f32 %v898_v8, %v830_v61  ;;  %v1030_v44 = vmul.f32 %v2835_v37, %v360_v22  ;;  %v310_v45 = vld [vmem:[#allocation2 + $0x19] sm:$0xff]  ;;  %v3824_v48 = vld [vmem:[#allocation2 + $0x31] sm:$0xff]  ;;  %v3829_v61 = vsel %vm83_vm0, %v1815_v63, 0.0 }
 0x124   :  { %5345 = vst [vmem:[#allocation175_spill] sm:$0xff] %v3810_v55  ;;  %v1356_v41 = vadd.f32 %v1292_v52, %v1224_v53  ;;  %v1424_v23 = vmul.f32 %v2839_v35, %v360_v22  ;;  %v505_v15 = vmul.f32 %v2820_v50, %v289_v2  ;;  %v637_v46 = vmul.f32 %v2822_v51, %v361_v12  ;;  %v3826_v20 = vld [vmem:[#allocation2 + $0x39] sm:$0xff]  ;;  %v3837_v52 = vld [vmem:[#allocation2 + $0x49] sm:$0xff] }
 0x125   :  { %5347 = vst [vmem:[#allocation177_spill] sm:$0xff] %v3829_v61  ;;  %v768_v7 = vmul.f32 %v2831_v42, %v432_v31  ;;  %v456_v3 = vmul.f32 %v2820_v50, %v236_v47  ;;  %v588_v8 = vmul.f32 %v2822_v51, %v308_v21  ;;  %v1816_v22 = vmul.f32 %v3810_v55, %v3810_v55 }
 0x126   :  { %v899_v53 = vmul.f32 %v2833_v38, %v289_v2  ;;  %v458_v24 = vmul.f32 %v2820_v50, %v238_v49  ;;  %v460_v43 = vmul.f32 %v2820_v50, %v3817_v14  ;;  %v462_v63 = vmul.f32 %v2820_v50, %v3819_v59 }
 0x127   :  { %v590_v61 = vmul.f32 %v2822_v51, %v310_v45  ;;  %v592_v21 = vmul.f32 %v2822_v51, %v3824_v48  ;;  %v593_v47 = vmul.f32 %v2822_v51, %v3826_v20  ;;  %v3851_v62 = vsel %vm83_vm0, %v3810_v55, 0.0 }
 0x128   :  { %5348 = vst [vmem:[#allocation178_spill] sm:$0xff] %v3851_v62  ;;  %v3853_v40 = vadd.f32 %v1030_v44, %v962_v25  ;;  %v3855_v13 = vadd.f32 %v1424_v23, %v1356_v41  ;;  %v3857_v16 = vadd.f32 %v637_v46, %v505_v15  ;;  %v3859_v27 = vadd.f32 %v768_v7, %v700_v1  ;;  %v3871_v41 = vld [vmem:[#allocation2 + $0x4a] sm:$0xff] }
 0x129   :  { %v1031_v28 = vmul.f32 %v2835_v37, %v361_v12  ;;  %v594_v55 = vmul.f32 %v2822_v51, %v3837_v52  ;;  %v652_v62 = vadd.f32 %v588_v8, %v456_v3  ;;  %v3869_v44 = vsel %vm83_vm0, %v1816_v22, 0.0  ;;  %v3881_v3 = vld [vmem:[#allocation2 + $0x27a] sm:$0xff] }
 0x12a   :  { %v963_v25 = vadd.f32 %v899_v53, %v831_v10  ;;  %v654_v23 = vadd.f32 %v590_v61, %v458_v24  ;;  %v656_v1 = vadd.f32 %v592_v21, %v460_v43  ;;  %v3874_v15 = vmul.f32 %v2848_v30, %v432_v31 }
 0x12b   :  { %v657_v46 = vadd.f32 %v593_v47, %v2941_v39  ;;  %v658_v7 = vadd.f32 %v594_v55, %v462_v63  ;;  %v720_v54 = vmul.f32 %v2831_v42, %v380_v19  ;;  %v3879_v11 = vmul.f32 %v2837_v36, %v289_v2 }
 0x12c   :  { %v722_v8 = vmul.f32 %v2831_v42, %v382_v5  ;;  %v724_v10 = vmul.f32 %v2831_v42, %v3862_v57  ;;  %v725_v43 = vmul.f32 %v2831_v42, %v3864_v0  ;;  %v3889_v24 = vmul.f32 %v2839_v35, %v361_v12 }
 0x12d   :  { %v3892_v39 = vmul.f32 %v3443_v60, %v432_v31  ;;  %v726_v19 = vmul.f32 %v2831_v42, %v3871_v41  ;;  %v784_v2 = vadd.f32 %v720_v54, %v652_v62  ;;  %v852_v53 = vmul.f32 %v2833_v38, %v238_v49 }
 0x12e   :  { %v786_v55 = vadd.f32 %v722_v8, %v654_v23  ;;  %v788_v61 = vadd.f32 %v724_v10, %v656_v1  ;;  %v789_v22 = vadd.f32 %v725_v43, %v657_v46  ;;  %v3899_v63 = vmul.f32 %v2831_v42, %v3881_v3 }
 0x12f   :  { %v790_v21 = vadd.f32 %v726_v19, %v658_v7  ;;  %v854_v12 = vmul.f32 %v2833_v38, %v3817_v14  ;;  %v856_v60 = vmul.f32 %v2833_v38, %v3819_v59  ;;  %v916_v31 = vadd.f32 %v852_v53, %v784_v2  ;;  %v5350_v19 = vld [vmem:[#allocation65_spill] sm:$0xff] }
 0x130   :  { %v917_v54 = vadd.f32 %v2924_v29, %v2921_v26  ;;  %v921_v62 = vadd.f32 %v2946_v18, %v789_v22  ;;  %v984_v47 = vmul.f32 %v2835_v37, %v310_v45  ;;  %v986_v46 = vmul.f32 %v2835_v37, %v3824_v48  ;;  %v5349_v45 = vld [vmem:[#allocation62_spill] sm:$0xff] }
 0x131   :  { %v918_v49 = vadd.f32 %v854_v12, %v786_v55  ;;  %v920_v23 = vadd.f32 %v856_v60, %v788_v61  ;;  %v922_v1 = vadd.f32 %v2966_v32, %v790_v21  ;;  %v987_v7 = vmul.f32 %v2835_v37, %v3826_v20  ;;  %v2256_v61 = vld [vmem:[#allocation2 + $0x22] sm:$0xff]  ;;  %v5351_v21 = vld [vmem:[#allocation66_spill] sm:$0xff] }
 0x132   :  { %v988_v8 = vmul.f32 %v2835_v37, %v3837_v52  ;;  %v1048_v10 = vadd.f32 %v984_v47, %v916_v31  ;;  %v1049_v26 = vadd.f32 %v2927_v56, %v917_v54  ;;  %v3919_v29 = vmul.f32 %v2848_v30, %v3881_v3 }
 0x133   :  { %v1050_v18 = vadd.f32 %v986_v46, %v918_v49  ;;  %v1053_v43 = vadd.f32 %v5349_v45, %v921_v62  ;;  %v1116_v32 = vmul.f32 %v2848_v30, %v382_v5  ;;  %v1051_v2 = vadd.f32 %v987_v7, %v5350_v19  ;;  %v2257_v46 = vld [vmem:[#allocation2 + $0x38] sm:$0xff]  ;;  %v2258_v19 = vld [vmem:[#allocation2 + $0x50] sm:$0xff] }
 0x134   :  { %v1052_v55 = vadd.f32 %v988_v8, %v920_v23  ;;  %v1117_v22 = vmul.f32 %v2256_v61, %v2848_v30  ;;  %v1118_v53 = vmul.f32 %v2848_v30, %v3862_v57  ;;  %v1054_v56 = vadd.f32 %v5351_v21, %v922_v1  ;;  %v5352_v8 = vld [vmem:[#allocation64_spill] sm:$0xff]  ;;  %v2260_v21 = vld [vmem:[#allocation2 + $0x51] sm:$0xff] }
 0x135   :  { %v1119_v12 = vmul.f32 %v2848_v30, %v3864_v0  ;;  %v1120_v60 = vmul.f32 %v2848_v30, %v3871_v41  ;;  %v1180_v31 = vadd.f32 %v1116_v32, %v1048_v10  ;;  %v3932_v54 = vadd.f32 %v1031_v28, %v963_v25  ;;  %v2259_v28 = vld [vmem:[#allocation2 + $0x60] sm:$0xff] }
 0x136   :  { %v1181_v5 = vadd.f32 %v1117_v22, %v1049_v26  ;;  %v1182_v62 = vadd.f32 %v1118_v53, %v1050_v18  ;;  %v1248_v47 = vmul.f32 %v2837_v36, %v3817_v14  ;;  %v1249_v7 = vmul.f32 %v2257_v46, %v2837_v36  ;;  %v5353_v18 = vld [vmem:[#allocation67_spill] sm:$0xff] }
 0x137   :  { %v1183_v49 = vadd.f32 %v1119_v12, %v1051_v2  ;;  %v1184_v23 = vadd.f32 %v1120_v60, %v1052_v55  ;;  %v1250_v1 = vmul.f32 %v2837_v36, %v3819_v59  ;;  %v1185_v45 = vadd.f32 %v5352_v8, %v1053_v43  ;;  %v2261_v12 = vld [vmem:[#allocation2 + $0x61] sm:$0xff] }
 0x138   :  { %v1251_v10 = vmul.f32 %v2258_v19, %v2837_v36  ;;  %v1252_v25 = vmul.f32 %v2259_v28, %v2837_v36  ;;  %v1312_v26 = vadd.f32 %v1248_v47, %v1180_v31  ;;  %v1186_v32 = vadd.f32 %v5353_v18, %v1054_v56  ;;  %v5355_v46 = vld [vmem:[#allocation71_spill] sm:$0xff]  ;;  %v362_v19 = vld [vmem:[#allocation2 + $0x289] sm:$0xff] }
 0x139   :  { %v1313_v14 = vadd.f32 %v1249_v7, %v1181_v5  ;;  %v1314_v2 = vadd.f32 %v1250_v1, %v1182_v62  ;;  %v1380_v55 = vmul.f32 %v2839_v35, %v3824_v48  ;;  %v1381_v59 = vmul.f32 %v2839_v35, %v3826_v20  ;;  %v3960_v20 = vld [vmem:[%s5042_s1 + $0x8] ss:$0 sm:$0xff] }
 0x13a   :  { %v1315_v61 = vadd.f32 %v1251_v10, %v1183_v49  ;;  %v1316_v22 = vadd.f32 %v1252_v25, %v1184_v23  ;;  %v1382_v43 = vmul.f32 %v2839_v35, %v3837_v52  ;;  %v3951_v53 = vadd.f32 %v3874_v15, %v3853_v40  ;;  %v290_v52 = vld [vmem:[#allocation2 + $0x288] sm:$0xff] }
 0x13b   :  { %v1383_v56 = vmul.f32 %v2260_v21, %v2839_v35  ;;  %v1384_v60 = vmul.f32 %v2261_v12, %v2839_v35  ;;  %v1444_v31 = vadd.f32 %v1380_v55, %v1312_v26  ;;  %v1357_v48 = vadd.f32 %v3879_v11, %v3808_v6  ;;  %v5354_v15 = vld [vmem:[#allocation68_spill] sm:$0xff] }
 0x13c   :  { %v1445_v5 = vadd.f32 %v1381_v59, %v1313_v14  ;;  %v1446_v62 = vadd.f32 %v1382_v43, %v1314_v2  ;;  %v1512_v40 = vmul.f32 %v3960_v20, %v3862_v57  ;;  %v1317_v47 = vadd.f32 %v5354_v15, %v1185_v45  ;;  %v2263_v57 = vld [vmem:[#allocation2 + $0x52] sm:$0xff]  ;;  %v2264_v45 = vld [vmem:[#allocation2 + $0x62] sm:$0xff]  ;;  %v2265_v2 = vld [vmem:[#allocation2 + $0x6a] sm:$0xff] }
 0x13d   :  { %v1447_v49 = vadd.f32 %v1383_v56, %v1315_v61  ;;  %v1513_v23 = vmul.f32 %v3960_v20, %v3864_v0  ;;  %v1514_v11 = vmul.f32 %v3960_v20, %v3871_v41  ;;  %v1557_v6 = vmul.f32 %v3960_v20, %v3881_v3 }
 0x13e   :  { %v1318_v7 = vadd.f32 %v5355_v46, %v1186_v32  ;;  %v1448_v1 = vadd.f32 %v1384_v60, %v1316_v22  ;;  %v3972_v8 = vadd.f32 %v1512_v40, %v1444_v31  ;;  %v1515_v10 = vmul.f32 %v2263_v57, %v3960_v20  ;;  %v5360_v32 = vld [vmem:[#allocation70_spill] sm:$0xff] }
 0x13f   :  { %v1516_v28 = vmul.f32 %v2264_v45, %v3960_v20  ;;  %v3976_v25 = vadd.f32 %v1513_v23, %v1445_v5  ;;  %v3978_v0 = vadd.f32 %v1514_v11, %v1446_v62  ;;  %v3982_v41 = vadd.f32 %v3892_v39, %v3855_v13  ;;  %v291_v45 = vld [vmem:[#allocation2 + $0x290] sm:$0xff] }
 0x140   :  { %5356 = vst [vmem:[#allocation62_spill] sm:$0xff] %v3972_v8  ;;  %v3986_v3 = vadd.f32 %v3899_v63, %v3857_v16  ;;  %v506_v26 = vmul.f32 %v2820_v50, %v290_v52  ;;  %v1640_v18 = vsel %vm83_vm0, %v3972_v8, 0.0  ;;  %v1449_v14 = vadd.f32 %v5360_v32, %v1317_v47  ;;  %v5362_v63 = vld [vmem:[#allocation73_spill] sm:$0xff]  ;;  %v5365_v47 = vld [vmem:[#allocation75_spill] sm:$0xff] }
 0x141   :  { %5357 = vst [vmem:[#allocation65_spill] sm:$0xff] %v3976_v25  ;;  %5358 = vst [vmem:[#allocation66_spill] sm:$0xff] %v3978_v0  ;;  %v1517_v55 = vmul.f32 %v2265_v2, %v3960_v20  ;;  %v3993_v61 = vadd.f32 %v1515_v10, %v1447_v49  ;;  %v1641_v13 = vsel %vm83_vm0, %v3976_v25, 0.0  ;;  %v1489_v39 = vadd.f32 %v3889_v24, %v1357_v48 }
 0x142   :  { %5359 = vst [vmem:[#allocation64_spill] sm:$0xff] %v3982_v41  ;;  %v638_v16 = vmul.f32 %v2822_v51, %v362_v19  ;;  %v1450_v22 = vadd.f32 %v5362_v63, %v1318_v7  ;;  %v1642_v59 = vadd.f32 %v1641_v13, %v1640_v18  ;;  %v4002_v43 = vadd.f32 %v3919_v29, %v3932_v54 }
 0x143   :  { %5361 = vst [vmem:[#allocation67_spill] sm:$0xff] %v3993_v61  ;;  %v900_v21 = vmul.f32 %v2833_v38, %v290_v52  ;;  %v4005_v56 = vadd.f32 %v1516_v28, %v1448_v1  ;;  %v1643_v12 = vsel %vm83_vm0, %v3978_v0, 0.0  ;;  %v1032_v60 = vmul.f32 %v2835_v37, %v362_v19 }
 0x144   :  { %v1644_v31 = vadd.f32 %v1643_v12, %v1642_v59  ;;  %v1773_v24 = vmul.f32 %v3972_v8, %v3972_v8  ;;  %v1774_v48 = vmul.f32 %v3976_v25, %v3976_v25  ;;  %v4016_v29 = vsel %vm83_vm0, %v3982_v41, 0.0 }
 0x145   :  { %5363 = vst [vmem:[#allocation68_spill] sm:$0xff] %v4005_v56  ;;  %v4018_v54 = vadd.f32 %v1517_v55, %v1449_v14  ;;  %v1645_v5 = vsel %vm83_vm0, %v3993_v61, 0.0  ;;  %v1775_v62 = vmul.f32 %v3978_v0, %v3978_v0  ;;  %v1817_v40 = vmul.f32 %v3982_v41, %v3982_v41 }
 0x146   :  { %v4026_v15 = vadd.f32 %v638_v16, %v506_v26  ;;  %v4029_v49 = vadd.f32 %v5365_v47, %v1450_v22  ;;  %v1646_v23 = vadd.f32 %v1645_v5, %v1644_v31  ;;  %v1647_v11 = vsel %vm83_vm0, %v4005_v56, 0.0  ;;  %v434_v16 = vld [vmem:[#allocation2 + $0x28a] sm:$0xff] }
 0x147   :  { %5364 = vst [vmem:[#allocation71_spill] sm:$0xff] %v4018_v54  ;;  %v1776_v46 = vmul.f32 %v3993_v61, %v3993_v61  ;;  %v1837_v7 = vsel %vm83_vm0, %v1773_v24, 0.0  ;;  %v1838_v1 = vsel %vm83_vm0, %v1774_v48, 0.0  ;;  %v4037_v57 = vadd.f32 %v1557_v6, %v1489_v39  ;;  %v5430_v61 = vld [vmem:[#allocation166_spill] sm:$0xff] }
 0x148   :  { %5366 = vst [vmem:[#allocation70_spill] sm:$0xff] %v4029_v49  ;;  %v1294_v10 = vmul.f32 %v2837_v36, %v290_v52  ;;  %v1648_v28 = vadd.f32 %v1647_v11, %v1646_v23  ;;  %v1839_v26 = vadd.f32 %v1838_v1, %v1837_v7  ;;  %v4042_v18 = vadd.f32 %v3106_v33, %v3102_v9  ;;  %v363_v52 = vld [vmem:[#allocation2 + $0x291] sm:$0xff] }
 0x149   :  { %5367 = vst [vmem:[#allocation73_spill] sm:$0xff] %v4037_v57  ;;  %v1649_v32 = vsel %vm83_vm0, %v4018_v54, 0.0  ;;  %v1777_v14 = vmul.f32 %v4005_v56, %v4005_v56  ;;  %v1840_v2 = vsel %vm83_vm0, %v1775_v62, 0.0  ;;  %v964_v6 = vadd.f32 %v900_v21, %v3859_v27  ;;  %v5369_v23 = vld [vmem:[#allocation82_spill] sm:$0xff] }
 0x14a   :  { %5368 = vst [vmem:[#allocation75_spill] sm:$0xff] %v4042_v18  ;;  %v1426_v55 = vmul.f32 %v2839_v35, %v362_v19  ;;  %v1650_v13 = vadd.f32 %v1649_v32, %v1648_v28  ;;  %v1841_v39 = vadd.f32 %v1840_v2, %v1839_v26  ;;  %v507_v63 = vmul.f32 %v2820_v50, %v291_v45 }
 0x14b   :  { %v1651_v9 = vsel %vm83_vm0, %v4029_v49, 0.0  ;;  %v1778_v33 = vmul.f32 %v4018_v54, %v4018_v54  ;;  %v1842_v22 = vsel %vm83_vm0, %v1776_v46, 0.0  ;;  %v4058_v59 = vsel %vm83_vm0, %v1817_v40, 0.0  ;;  %v5429_v54 = vld [vmem:[#allocation152_spill] sm:$0xff] }
 0x14c   :  { %v1358_v27 = vadd.f32 %v1294_v10, %v3951_v53  ;;  %v1652_v19 = vadd.f32 %v1651_v9, %v1650_v13  ;;  %v1843_v21 = vadd.f32 %v1842_v22, %v1841_v39  ;;  %v639_v12 = vmul.f32 %v2822_v51, %v363_v52 }
 0x14d   :  { %v1653_v31 = vsel %vm83_vm0, %v4042_v18, 0.0  ;;  %v1779_v24 = vmul.f32 %v4029_v49, %v4029_v49  ;;  %v1844_v48 = vsel %vm83_vm0, %v1777_v14, 0.0  ;;  %v4069_v5 = vsel %vm83_vm0, %v4037_v57, 0.0  ;;  %v5370_v14 = vld [vmem:[#allocation84_spill] sm:$0xff] }
 0x14e   :  { %v770_v62 = vmul.f32 %v2831_v42, %v434_v16  ;;  %v1654_v40 = vadd.f32 %v1653_v31, %v1652_v19  ;;  %v1845_v53 = vadd.f32 %v1844_v48, %v1843_v21  ;;  %v901_v47 = vmul.f32 %v2833_v38, %v291_v45 }
 0x14f   :  { %v1655_v11 = vsel %vm83_vm0, %v5369_v23, 0.0  ;;  %v1780_v46 = vmul.f32 %v4042_v18, %v4042_v18  ;;  %v1846_v7 = vsel %vm83_vm0, %v1778_v33, 0.0  ;;  %v1818_v1 = vmul.f32 %v4037_v57, %v4037_v57  ;;  %v5418_v18 = vld [vmem:[#allocation149_spill] sm:$0xff] }
 0x150   :  { %v1096_v10 = vadd.f32 %v1032_v60, %v964_v6  ;;  %v1656_v28 = vadd.f32 %v1655_v11, %v1654_v40  ;;  %v1847_v26 = vadd.f32 %v1846_v7, %v1845_v53  ;;  %v1295_v32 = vmul.f32 %v2837_v36, %v291_v45  ;;  %v5371_v60 = vld [vmem:[#allocation79_spill] sm:$0xff] }
 0x151   :  { %v1657_v2 = vsel %vm83_vm0, %v5370_v14, 0.0  ;;  %v1781_v13 = vmul.f32 %v5369_v23, %v5369_v23  ;;  %v1848_v39 = vsel %vm83_vm0, %v1779_v24, 0.0  ;;  %v1490_v9 = vadd.f32 %v1426_v55, %v1358_v27  ;;  %v435_v24 = vld [vmem:[#allocation2 + $0x292] sm:$0xff] }
 0x152   :  { %v1033_v22 = vmul.f32 %v2835_v37, %v363_v52  ;;  %v1658_v33 = vadd.f32 %v1657_v2, %v1656_v28  ;;  %v1849_v19 = vadd.f32 %v1848_v39, %v1847_v26  ;;  %v965_v21 = vadd.f32 %v901_v47, %v3986_v3  ;;  %v5372_v3 = vld [vmem:[#allocation83_spill] sm:$0xff]  ;;  %v5416_v23 = vld [vmem:[#allocation142_spill] sm:$0xff] }
 0x153   :  { %v1659_v6 = vsel %vm83_vm0, %v5371_v60, 0.0  ;;  %v1782_v45 = vmul.f32 %v5370_v14, %v5370_v14  ;;  %v1850_v31 = vsel %vm83_vm0, %v1780_v46, 0.0  ;;  %v1164_v48 = vmul.f32 %v2848_v30, %v434_v16  ;;  %v5400_v60 = vld [vmem:[#allocation119_spill] sm:$0xff] }
 0x154   :  { %v1558_v40 = vmul.f32 %v3960_v20, %v434_v16  ;;  %v1660_v55 = vadd.f32 %v1659_v6, %v1658_v33  ;;  %v1851_v27 = vadd.f32 %v1850_v31, %v1849_v19  ;;  %v1359_v53 = vadd.f32 %v1295_v32, %v4002_v43  ;;  %v292_v19 = vld [vmem:[#allocation2 + $0x2a0] sm:$0xff]  ;;  %v5374_v31 = vld [vmem:[#allocation89_spill] sm:$0xff] }
 0x155   :  { %v1427_v11 = vmul.f32 %v2839_v35, %v363_v52  ;;  %v1661_v47 = vsel %vm83_vm0, %v5372_v3, 0.0  ;;  %v1852_v7 = vsel %vm83_vm0, %v1781_v13, 0.0  ;;  %v703_v28 = vadd.f32 %v639_v12, %v507_v63  ;;  %v364_v6 = vld [vmem:[#allocation2 + $0x2a1] sm:$0xff] }
 0x156   :  { %v834_v26 = vadd.f32 %v770_v62, %v4026_v15  ;;  %v1662_v46 = vadd.f32 %v1661_v47, %v1660_v55  ;;  %v1853_v2 = vadd.f32 %v1852_v7, %v1851_v27  ;;  %v1097_v39 = vadd.f32 %v1033_v22, %v965_v21  ;;  %v5375_v62 = vld [vmem:[#allocation85_spill] sm:$0xff]  ;;  %v293_v7 = vld [vmem:[#allocation2 + $0x2a8] sm:$0xff] }
 0x157   :  { %v771_v16 = vmul.f32 %v2831_v42, %v435_v24  ;;  %v1165_v33 = vmul.f32 %v2848_v30, %v435_v24  ;;  %v1854_v43 = vsel %vm83_vm0, %v1782_v45, 0.0  ;;  %v1228_v32 = vadd.f32 %v1164_v48, %v1096_v10  ;;  %v5376_v10 = vld [vmem:[#allocation92_spill] sm:$0xff] }
 0x158   :  { %v4104_v52 = vadd.f32 %v1558_v40, %v1490_v9  ;;  %v1664_v57 = vadd.f32 %v5374_v31, %v1662_v46  ;;  %v1855_v13 = vadd.f32 %v1854_v43, %v1853_v2  ;;  %v1491_v63 = vadd.f32 %v1427_v11, %v1359_v53  ;;  %v5377_v53 = vld [vmem:[#allocation88_spill] sm:$0xff]  ;;  %v5378_v46 = vld [vmem:[#allocation95_spill] sm:$0xff] }
 0x159   :  { %v1559_v15 = vmul.f32 %v3960_v20, %v435_v24  ;;  %v1296_v12 = vmul.f32 %v2837_v36, %v292_v19  ;;  %v1856_v22 = vsel %vm83_vm0, %v5375_v62, 0.0  ;;  %v4112_v21 = vsel %vm83_vm0, %v1818_v1, 0.0  ;;  %v365_v1 = vld [vmem:[#allocation2 + $0x2a9] sm:$0xff] }
 0x15a   :  { %5373 = vst [vmem:[#allocation179_spill] sm:$0xff] %v4104_v52  ;;  %v902_v45 = vmul.f32 %v2833_v38, %v292_v19  ;;  %v1666_v9 = vadd.f32 %v5376_v10, %v1664_v57  ;;  %v1857_v48 = vadd.f32 %v1856_v22, %v1855_v13  ;;  %v835_v40 = vadd.f32 %v771_v16, %v703_v28  ;;  %v436_v62 = vld [vmem:[#allocation2 + $0x2a2] sm:$0xff]  ;;  %v5380_v22 = vld [vmem:[#allocation98_spill] sm:$0xff] }
 0x15b   :  { %v508_v55 = vmul.f32 %v2820_v50, %v292_v19  ;;  %v640_v27 = vmul.f32 %v2822_v51, %v364_v6  ;;  %v1858_v24 = vsel %vm83_vm0, %v5377_v53, 0.0  ;;  %v1819_v11 = vmul.f32 %v4104_v52, %v4104_v52 }
 0x15c   :  { %v1229_v47 = vadd.f32 %v1165_v33, %v1097_v39  ;;  %v1668_v2 = vadd.f32 %v5378_v46, %v1666_v9  ;;  %v1859_v43 = vadd.f32 %v1858_v24, %v1857_v48  ;;  %v4123_v31 = vadd.f32 %v1559_v15, %v1491_v63  ;;  %v5381_v33 = vld [vmem:[#allocation90_spill] sm:$0xff] }
 0x15d   :  { %v1034_v57 = vmul.f32 %v2835_v37, %v364_v6  ;;  %v1360_v28 = vadd.f32 %v1296_v12, %v1228_v32  ;;  %v1428_v16 = vmul.f32 %v2839_v35, %v364_v6  ;;  %v4129_v19 = vsel %vm83_vm0, %v4104_v52, 0.0  ;;  %v5384_v52 = vld [vmem:[#allocation105_spill] sm:$0xff] }
 0x15e   :  { %5379 = vst [vmem:[#allocation89_spill] sm:$0xff] %v4123_v31  ;;  %v966_v13 = vadd.f32 %v902_v45, %v834_v26  ;;  %v1670_v39 = vadd.f32 %v5380_v22, %v1668_v2  ;;  %v1861_v10 = vadd.f32 %v5381_v33, %v1859_v43  ;;  %v704_v53 = vadd.f32 %v640_v27, %v508_v55  ;;  %v5382_v26 = vld [vmem:[#allocation93_spill] sm:$0xff]  ;;  %v294_v43 = vld [vmem:[#allocation2 + $0x2b8] sm:$0xff] }
 0x15f   :  { %v509_v9 = vmul.f32 %v2820_v50, %v293_v7  ;;  %v641_v63 = vmul.f32 %v2822_v51, %v365_v1  ;;  %v903_v15 = vmul.f32 %v2833_v38, %v293_v7  ;;  %v4137_v32 = vsel %vm83_vm0, %v1819_v11, 0.0  ;;  %v437_v11 = vld [vmem:[#allocation2 + $0x2aa] sm:$0xff] }
 0x160   :  { %v1297_v6 = vmul.f32 %v2837_v36, %v293_v7  ;;  %v1672_v12 = vadd.f32 %v3298_v34, %v1670_v39  ;;  %v1863_v45 = vadd.f32 %v5382_v26, %v1861_v10  ;;  %v4144_v48 = vsel %vm83_vm0, %v4123_v31, 0.0  ;;  %v5383_v22 = vld [vmem:[#allocation97_spill] sm:$0xff] }
 0x161   :  { %v1492_v55 = vadd.f32 %v1428_v16, %v1360_v28  ;;  %v772_v27 = vmul.f32 %v2831_v42, %v436_v62  ;;  %v1560_v24 = vmul.f32 %v3960_v20, %v436_v62  ;;  %v1098_v46 = vadd.f32 %v1034_v57, %v966_v13  ;;  %v5385_v13 = vld [vmem:[#allocation100_spill] sm:$0xff] }
 0x162   :  { %v1166_v2 = vmul.f32 %v2848_v30, %v436_v62  ;;  %v1674_v7 = vadd.f32 %v3318_v17, %v1672_v12  ;;  %v1865_v34 = vadd.f32 %v5383_v22, %v1863_v45  ;;  %v1820_v39 = vmul.f32 %v4123_v31, %v4123_v31  ;;  %v366_v12 = vld [vmem:[#allocation2 + $0x2b9] sm:$0xff] }
 0x163   :  { %v705_v33 = vadd.f32 %v641_v63, %v509_v9  ;;  %v967_v10 = vadd.f32 %v903_v15, %v835_v40  ;;  %v1035_v28 = vmul.f32 %v2835_v37, %v365_v1  ;;  %v1361_v16 = vadd.f32 %v1297_v6, %v1229_v47  ;;  %v5387_v9 = vld [vmem:[#allocation110_spill] sm:$0xff] }
 0x164   :  { %v1429_v26 = vmul.f32 %v2839_v35, %v365_v1  ;;  %v1676_v57 = vadd.f32 %v5384_v52, %v1674_v7  ;;  %v1867_v62 = vadd.f32 %v5385_v13, %v1865_v34  ;;  %v836_v41 = vadd.f32 %v772_v27, %v704_v53  ;;  %v5388_v47 = vld [vmem:[#allocation102_spill] sm:$0xff]  ;;  %v5389_v7 = vld [vmem:[#allocation113_spill] sm:$0xff] }
 0x165   :  { %v4157_v3 = vadd.f32 %v1560_v24, %v1492_v55  ;;  %v773_v17 = vmul.f32 %v2831_v42, %v437_v11  ;;  %v904_v45 = vmul.f32 %v2833_v38, %v294_v43  ;;  %v1230_v22 = vadd.f32 %v1166_v2, %v1098_v46  ;;  %v295_v24 = vld [vmem:[#allocation2 + $0x2c0] sm:$0xff]  ;;  %v5390_v46 = vld [vmem:[#allocation104_spill] sm:$0xff] }
 0x166   :  { %v1298_v40 = vmul.f32 %v2837_v36, %v294_v43  ;;  %v1678_v63 = vadd.f32 %v5387_v9, %v1676_v57  ;;  %v1869_v15 = vadd.f32 %v5388_v47, %v1867_v62  ;;  %v1099_v1 = vadd.f32 %v1035_v28, %v967_v10  ;;  %v5392_v9 = vld [vmem:[#allocation109_spill] sm:$0xff] }
 0x167   :  { %5386 = vst [vmem:[#allocation85_spill] sm:$0xff] %v4157_v3  ;;  %v1167_v52 = vmul.f32 %v2848_v30, %v437_v11  ;;  %v1561_v6 = vmul.f32 %v3960_v20, %v437_v11  ;;  %v510_v53 = vmul.f32 %v2820_v50, %v294_v43  ;;  %v1493_v55 = vadd.f32 %v1429_v26, %v1361_v16  ;;  %v367_v16 = vld [vmem:[#allocation2 + $0x2c1] sm:$0xff] }
 0x168   :  { %v642_v27 = vmul.f32 %v2822_v51, %v366_v12  ;;  %v1680_v34 = vadd.f32 %v5389_v7, %v1678_v63  ;;  %v1871_v2 = vadd.f32 %v5390_v46, %v1869_v15  ;;  %v4171_v13 = vsel %vm83_vm0, %v1820_v39, 0.0  ;;  %v5391_v26 = vld [vmem:[#allocation115_spill] sm:$0xff] }
 0x169   :  { %v1821_v10 = vmul.f32 %v4157_v3, %v4157_v3  ;;  %v968_v28 = vadd.f32 %v904_v45, %v836_v41  ;;  %v1036_v57 = vmul.f32 %v2835_v37, %v366_v12  ;;  %v1362_v11 = vadd.f32 %v1298_v40, %v1230_v22  ;;  %v5394_v45 = vld [vmem:[#allocation118_spill] sm:$0xff]  ;;  %v5395_v40 = vld [vmem:[#allocation112_spill] sm:$0xff] }
 0x16a   :  { %v1430_v43 = vmul.f32 %v2839_v35, %v366_v12  ;;  %v1682_v62 = vadd.f32 %v5391_v26, %v1680_v34  ;;  %v1873_v47 = vadd.f32 %v5392_v9, %v1871_v2  ;;  %v4181_v63 = vsel %vm83_vm0, %v4157_v3, 0.0  ;;  %v438_v2 = vld [vmem:[#allocation2 + $0x2ba] sm:$0xff]  ;;  %v368_v3 = vld [vmem:[#allocation2 + $0x2d1] sm:$0xff] }
 0x16b   :  { %v837_v39 = vadd.f32 %v773_v17, %v705_v33  ;;  %v1231_v15 = vadd.f32 %v1167_v52, %v1099_v1  ;;  %v905_v7 = vmul.f32 %v2833_v38, %v295_v24  ;;  %v4184_v46 = vadd.f32 %v1561_v6, %v1493_v55  ;;  %v439_v1 = vld [vmem:[#allocation2 + $0x2c2] sm:$0xff] }
 0x16c   :  { %v706_v41 = vadd.f32 %v642_v27, %v510_v53  ;;  %v1684_v22 = vadd.f32 %v5394_v45, %v1682_v62  ;;  %v1875_v12 = vadd.f32 %v5395_v40, %v1873_v47  ;;  %v4189_v31 = vsel %vm83_vm0, %v1821_v10, 0.0  ;;  %v5396_v52 = vld [vmem:[#allocation120_spill] sm:$0xff]  ;;  %v5397_v53 = vld [vmem:[#allocation114_spill] sm:$0xff] }
 0x16d   :  { %5393 = vst [vmem:[#allocation92_spill] sm:$0xff] %v4184_v46  ;;  %v1100_v34 = vadd.f32 %v1036_v57, %v968_v28  ;;  %v511_v26 = vmul.f32 %v2820_v50, %v295_v24  ;;  %v643_v9 = vmul.f32 %v2822_v51, %v367_v16  ;;  %v1494_v33 = vadd.f32 %v1430_v43, %v1362_v11  ;;  %v5398_v11 = vld [vmem:[#allocation123_spill] sm:$0xff] }
 0x16e   :  { %v1299_v17 = vmul.f32 %v2837_v36, %v295_v24  ;;  %v1686_v6 = vadd.f32 %v5396_v52, %v1684_v22  ;;  %v1877_v55 = vadd.f32 %v5397_v53, %v1875_v12  ;;  %v969_v27 = vadd.f32 %v905_v7, %v837_v39  ;;  %v5399_v24 = vld [vmem:[#allocation117_spill] sm:$0xff] }
 0x16f   :  { %v1037_v62 = vmul.f32 %v2835_v37, %v367_v16  ;;  %v1168_v10 = vmul.f32 %v2848_v30, %v438_v2  ;;  %v1562_v28 = vmul.f32 %v3960_v20, %v438_v2  ;;  %v1822_v57 = vmul.f32 %v4184_v46, %v4184_v46  ;;  %v296_v53 = vld [vmem:[#allocation2 + $0x2d0] sm:$0xff] }
 0x170   :  { %v774_v47 = vmul.f32 %v2831_v42, %v438_v2  ;;  %v1688_v43 = vadd.f32 %v5398_v11, %v1686_v6  ;;  %v1879_v45 = vadd.f32 %v5399_v24, %v1877_v55  ;;  %v4206_v22 = vsel %vm83_vm0, %v4184_v46, 0.0 }
 0x171   :  { %v707_v39 = vadd.f32 %v643_v9, %v511_v26  ;;  %v1431_v7 = vmul.f32 %v2839_v35, %v367_v16  ;;  %v775_v40 = vmul.f32 %v2831_v42, %v439_v1  ;;  %v1363_v12 = vadd.f32 %v1299_v17, %v1231_v15  ;;  %v5402_v9 = vld [vmem:[#allocation122_spill] sm:$0xff] }
 0x172   :  { %v1169_v52 = vmul.f32 %v2848_v30, %v439_v1  ;;  %v1690_v2 = vadd.f32 %v3491_v4, %v1688_v43  ;;  %v1881_v6 = vadd.f32 %v5400_v60, %v1879_v45  ;;  %v1101_v11 = vadd.f32 %v1037_v62, %v969_v27 }
 0x173   :  { %v1232_v55 = vadd.f32 %v1168_v10, %v1100_v34  ;;  %v4213_v24 = vadd.f32 %v1562_v28, %v1494_v33  ;;  %v1300_v46 = vmul.f32 %v2837_v36, %v296_v53  ;;  %v4217_v26 = vsel %vm83_vm0, %v1822_v57, 0.0  ;;  %v297_v33 = vld [vmem:[#allocation2 + $0x2d8] sm:$0xff] }
 0x174   :  { %v838_v16 = vadd.f32 %v774_v47, %v706_v41  ;;  %v1692_v15 = vadd.f32 %v3511_v58, %v1690_v2  ;;  %v1883_v17 = vadd.f32 %v5402_v9, %v1881_v6  ;;  %v1563_v14 = vmul.f32 %v3960_v20, %v439_v1  ;;  %v5403_v10 = vld [vmem:[#allocation130_spill] sm:$0xff] }
 0x175   :  { %5401 = vst [vmem:[#allocation88_spill] sm:$0xff] %v4213_v24  ;;  %v512_v4 = vmul.f32 %v2820_v50, %v296_v53  ;;  %v644_v60 = vmul.f32 %v2822_v51, %v368_v3  ;;  %v906_v34 = vmul.f32 %v2833_v38, %v296_v53  ;;  %v1495_v27 = vadd.f32 %v1431_v7, %v1363_v12  ;;  %v5404_v57 = vld [vmem:[#allocation126_spill] sm:$0xff]  ;;  %v5405_v53 = vld [vmem:[#allocation133_spill] sm:$0xff]  ;;  %v5406_v7 = vld [vmem:[#allocation127_spill] sm:$0xff] }
 0x176   :  { %v839_v62 = vadd.f32 %v775_v40, %v707_v39  ;;  %v1694_v28 = vadd.f32 %v5403_v10, %v1692_v15  ;;  %v1885_v43 = vadd.f32 %v5404_v57, %v1883_v17  ;;  %v1823_v58 = vmul.f32 %v4213_v24, %v4213_v24  ;;  %v369_v2 = vld [vmem:[#allocation2 + $0x2d9] sm:$0xff]  ;;  %v5409_v17 = vld [vmem:[#allocation129_spill] sm:$0xff] }
 0x177   :  { %v1233_v41 = vadd.f32 %v1169_v52, %v1101_v11  ;;  %v1364_v47 = vadd.f32 %v1300_v46, %v1232_v55  ;;  %v1432_v1 = vmul.f32 %v2839_v35, %v368_v3  ;;  %v1038_v45 = vmul.f32 %v2835_v37, %v368_v3  ;;  %v5408_v3 = vld [vmem:[#allocation138_spill] sm:$0xff] }
 0x178   :  { %v907_v6 = vmul.f32 %v2833_v38, %v297_v33  ;;  %v1696_v9 = vadd.f32 %v5405_v53, %v1694_v28  ;;  %v1887_v39 = vadd.f32 %v5406_v7, %v1885_v43  ;;  %v4236_v40 = vsel %vm83_vm0, %v4213_v24, 0.0  ;;  %v440_v43 = vld [vmem:[#allocation2 + $0x2d2] sm:$0xff] }
 0x179   :  { %v708_v12 = vadd.f32 %v644_v60, %v512_v4  ;;  %v970_v15 = vadd.f32 %v906_v34, %v838_v16  ;;  %v1301_v52 = vmul.f32 %v2837_v36, %v297_v33  ;;  %v4239_v46 = vadd.f32 %v1563_v14, %v1495_v27  ;;  %v441_v14 = vld [vmem:[#allocation2 + $0x2da] sm:$0xff] }
 0x17a   :  { %v513_v11 = vmul.f32 %v2820_v50, %v297_v33  ;;  %v1698_v55 = vadd.f32 %v5408_v3, %v1696_v9  ;;  %v1889_v10 = vadd.f32 %v5409_v17, %v1887_v39  ;;  %v4245_v28 = vsel %vm83_vm0, %v1823_v58, 0.0  ;;  %v5410_v34 = vld [vmem:[#allocation139_spill] sm:$0xff]  ;;  %v5411_v33 = vld [vmem:[#allocation132_spill] sm:$0xff]  ;;  %v5412_v17 = vld [vmem:[#allocation141_spill] sm:$0xff] }
 0x17b   :  { %5407 = vst [vmem:[#allocation95_spill] sm:$0xff] %v4239_v46  ;;  %v1496_v57 = vadd.f32 %v1432_v1, %v1364_v47  ;;  %v645_v53 = vmul.f32 %v2822_v51, %v369_v2  ;;  %v1039_v4 = vmul.f32 %v2835_v37, %v369_v2  ;;  %v971_v16 = vadd.f32 %v907_v6, %v839_v62  ;;  %v5413_v6 = vld [vmem:[#allocation136_spill] sm:$0xff] }
 0x17c   :  { %v1564_v60 = vmul.f32 %v3960_v20, %v440_v43  ;;  %v1700_v27 = vadd.f32 %v5410_v34, %v1698_v55  ;;  %v1891_v7 = vadd.f32 %v5411_v33, %v1889_v10  ;;  %v1102_v9 = vadd.f32 %v1038_v45, %v970_v15  ;;  %v370_v34 = vld [vmem:[#allocation2 + $0x2e9] sm:$0xff]  ;;  %v5415_v33 = vld [vmem:[#allocation146_spill] sm:$0xff] }
 0x17d   :  { %v1170_v39 = vmul.f32 %v2848_v30, %v440_v43  ;;  %v1365_v3 = vadd.f32 %v1301_v52, %v1233_v41  ;;  %v1433_v58 = vmul.f32 %v2839_v35, %v369_v2  ;;  %v1824_v47 = vmul.f32 %v4239_v46, %v4239_v46  ;;  %v298_v52 = vld [vmem:[#allocation2 + $0x2e8] sm:$0xff] }
 0x17e   :  { %v776_v1 = vmul.f32 %v2831_v42, %v440_v43  ;;  %v1702_v62 = vadd.f32 %v5412_v17, %v1700_v27  ;;  %v1893_v24 = vadd.f32 %v5413_v6, %v1891_v7  ;;  %v4261_v55 = vsel %vm83_vm0, %v4239_v46, 0.0 }
 0x17f   :  { %v709_v10 = vadd.f32 %v645_v53, %v513_v11  ;;  %v777_v45 = vmul.f32 %v2831_v42, %v441_v14  ;;  %v1171_v41 = vmul.f32 %v2848_v30, %v441_v14  ;;  %v1103_v15 = vadd.f32 %v1039_v4, %v971_v16 }
 0x180   :  { %v4265_v2 = vadd.f32 %v1564_v60, %v1496_v57  ;;  %v1704_v43 = vadd.f32 %v5415_v33, %v1702_v62  ;;  %v1895_v27 = vadd.f32 %v5416_v23, %v1893_v24  ;;  %v1234_v17 = vadd.f32 %v1170_v39, %v1102_v9  ;;  %v5419_v57 = vld [vmem:[#allocation143_spill] sm:$0xff]  ;;  %v299_v9 = vld [vmem:[#allocation2 + $0x2f0] sm:$0xff] }
 0x181   :  { %v1497_v7 = vadd.f32 %v1433_v58, %v1365_v3  ;;  %v1565_v6 = vmul.f32 %v3960_v20, %v441_v14  ;;  %v1302_v46 = vmul.f32 %v2837_v36, %v298_v52  ;;  %v4272_v11 = vsel %vm83_vm0, %v1824_v47, 0.0  ;;  %v371_v39 = vld [vmem:[#allocation2 + $0x2f1] sm:$0xff]  ;;  %v5420_v3 = vld [vmem:[#allocation151_spill] sm:$0xff] }
 0x182   :  { %5414 = vst [vmem:[#allocation98_spill] sm:$0xff] %v4265_v2  ;;  %5417 = vst [vmem:[#allocation90_spill] sm:$0xff] %v4272_v11  ;;  %v840_v53 = vadd.f32 %v776_v1, %v708_v12  ;;  %v1706_v4 = vadd.f32 %v5418_v18, %v1704_v43  ;;  %v1897_v16 = vadd.f32 %v5419_v57, %v1895_v27  ;;  %v5421_v12 = vld [vmem:[#allocation144_spill] sm:$0xff]  ;;  %v5424_v27 = vld [vmem:[#allocation147_spill] sm:$0xff] }
 0x183   :  { %v841_v60 = vadd.f32 %v777_v45, %v709_v10  ;;  %v514_v49 = vmul.f32 %v2820_v50, %v298_v52  ;;  %v646_v62 = vmul.f32 %v2822_v51, %v370_v34  ;;  %v908_v23 = vmul.f32 %v2833_v38, %v298_v52  ;;  %v442_v33 = vld [vmem:[#allocation2 + $0x2ea] sm:$0xff] }
 0x184   :  { %v1825_v24 = vmul.f32 %v4265_v2, %v4265_v2  ;;  %v1235_v14 = vadd.f32 %v1171_v41, %v1103_v15  ;;  %v1708_v58 = vadd.f32 %v5420_v3, %v1706_v4  ;;  %v1899_v47 = vadd.f32 %v5421_v12, %v1897_v16  ;;  %v5423_v15 = vld [vmem:[#allocation155_spill] sm:$0xff]  ;;  %v5427_v12 = vld [vmem:[#allocation150_spill] sm:$0xff] }
 0x185   :  { %v4283_v18 = vadd.f32 %v1565_v6, %v1497_v7  ;;  %v1040_v1 = vmul.f32 %v2835_v37, %v370_v34  ;;  %v1366_v10 = vadd.f32 %v1302_v46, %v1234_v17  ;;  %v1434_v45 = vmul.f32 %v2839_v35, %v370_v34  ;;  %v5426_v17 = vld [vmem:[#allocation158_spill] sm:$0xff] }
 0x186   :  { %v4289_v52 = vsel %vm83_vm0, %v4265_v2, 0.0  ;;  %v1303_v41 = vmul.f32 %v2837_v36, %v299_v9  ;;  %v1710_v43 = vadd.f32 %v5423_v15, %v1708_v58  ;;  %v1901_v4 = vadd.f32 %v5424_v27, %v1899_v47  ;;  %v5428_v15 = vld [vmem:[#allocation161_spill] sm:$0xff] }
 0x187   :  { %5422 = vst [vmem:[#allocation93_spill] sm:$0xff] %v4283_v18  ;;  %v710_v57 = vadd.f32 %v646_v62, %v514_v49  ;;  %v972_v16 = vadd.f32 %v908_v23, %v840_v53  ;;  %v515_v7 = vmul.f32 %v2820_v50, %v299_v9  ;;  %v647_v6 = vmul.f32 %v2822_v51, %v371_v39 }
 0x188   :  { %v4297_v46 = vsel %vm83_vm0, %v1825_v24, 0.0  ;;  %v778_v34 = vmul.f32 %v2831_v42, %v442_v33  ;;  %v1712_v3 = vadd.f32 %v5426_v17, %v1710_v43  ;;  %v1903_v2 = vadd.f32 %v5427_v12, %v1901_v4  ;;  %v443_v24 = vld [vmem:[#allocation2 + $0x2f2] sm:$0xff] }
 0x189   :  { %5425 = vst [vmem:[#allocation97_spill] sm:$0xff] %v4297_v46  ;;  %v4304_v58 = vsel %vm83_vm0, %v4283_v18, 0.0  ;;  %v1498_v47 = vadd.f32 %v1434_v45, %v1366_v10  ;;  %v909_v49 = vmul.f32 %v2833_v38, %v299_v9  ;;  %v1566_v53 = vmul.f32 %v3960_v20, %v442_v33  ;;  %v300_v10 = vld [vmem:[#allocation2 + $0x300] sm:$0xff]  ;;  %v5448_v46 = vld [vmem:[#allocation177_spill] sm:$0xff] }
 0x18a   :  { %v1367_v62 = vadd.f32 %v1303_v41, %v1235_v14  ;;  %v1435_v23 = vmul.f32 %v2839_v35, %v371_v39  ;;  %v1714_v27 = vadd.f32 %v5428_v15, %v1712_v3  ;;  %v1905_v56 = vadd.f32 %v5429_v54, %v1903_v2  ;;  %v5431_v41 = vld [vmem:[#allocation156_spill] sm:$0xff]  ;;  %v5437_v15 = vld [vmem:[#allocation162_spill] sm:$0xff] }
 0x18b   :  { %v1826_v43 = vmul.f32 %v4283_v18, %v4283_v18  ;;  %v1104_v4 = vadd.f32 %v1040_v1, %v972_v16  ;;  %v711_v17 = vadd.f32 %v647_v6, %v515_v7  ;;  %v1172_v12 = vmul.f32 %v2848_v30, %v442_v33  ;;  %v372_v3 = vld [vmem:[#allocation2 + $0x301] sm:$0xff]  ;;  %v5433_v33 = vld [vmem:[#allocation169_spill] sm:$0xff] }
 0x18c   :  { %v842_v45 = vadd.f32 %v778_v34, %v710_v57  ;;  %v1041_v9 = vmul.f32 %v2835_v37, %v371_v39  ;;  %v1716_v14 = vadd.f32 %v5430_v61, %v1714_v27  ;;  %v1907_v0 = vadd.f32 %v5431_v41, %v1905_v56  ;;  %v5434_v57 = vld [vmem:[#allocation159_spill] sm:$0xff] }
 0x18d   :  { %v973_v25 = vadd.f32 %v909_v49, %v841_v60  ;;  %v4317_v8 = vadd.f32 %v1566_v53, %v1498_v47  ;;  %v779_v54 = vmul.f32 %v2831_v42, %v443_v24  ;;  %v1567_v2 = vmul.f32 %v3960_v20, %v443_v24  ;;  %v301_v49 = vld [vmem:[#allocation2 + $0x308] sm:$0xff] }
 0x18e   :  { %v1499_v1 = vadd.f32 %v1435_v23, %v1367_v62  ;;  %v910_v16 = vmul.f32 %v2833_v38, %v300_v10  ;;  %v1718_v7 = vadd.f32 %v5433_v33, %v1716_v14  ;;  %v1909_v6 = vadd.f32 %v5434_v57, %v1907_v0  ;;  %v373_v53 = vld [vmem:[#allocation2 + $0x309] sm:$0xff]  ;;  %v5436_v62 = vld [vmem:[#allocation171_spill] sm:$0xff] }
 0x18f   :  { %5432 = vst [vmem:[#allocation105_spill] sm:$0xff] %v4317_v8  ;;  %v4325_v39 = vsel %vm83_vm0, %v1826_v43, 0.0  ;;  %v1236_v61 = vadd.f32 %v1172_v12, %v1104_v4  ;;  %v1173_v56 = vmul.f32 %v2848_v30, %v443_v24  ;;  %v1304_v60 = vmul.f32 %v2837_v36, %v300_v10  ;;  %v444_v24 = vld [vmem:[#allocation2 + $0x302] sm:$0xff] }
 0x190   :  { %5435 = vst [vmem:[#allocation100_spill] sm:$0xff] %v4325_v39  ;;  %v516_v34 = vmul.f32 %v2820_v50, %v300_v10  ;;  %v648_v47 = vmul.f32 %v2822_v51, %v372_v3  ;;  %v1720_v23 = vadd.f32 %v5436_v62, %v1718_v7  ;;  %v1911_v27 = vadd.f32 %v5437_v15, %v1909_v6  ;;  %v5439_v10 = vld [vmem:[#allocation173_spill] sm:$0xff]  ;;  %v5440_v57 = vld [vmem:[#allocation167_spill] sm:$0xff] }
 0x191   :  { %v1105_v14 = vadd.f32 %v1041_v9, %v973_v25  ;;  %v1827_v0 = vmul.f32 %v4317_v8, %v4317_v8  ;;  %v843_v43 = vadd.f32 %v779_v54, %v711_v17  ;;  %v1042_v4 = vmul.f32 %v2835_v37, %v372_v3  ;;  %v4344_v54 = vld [vmem:[#allocation2 + $0x318] sm:$0xff]  ;;  %v445_v15 = vld [vmem:[#allocation2 + $0x30a] sm:$0xff] }
 0x192   :  { %v4336_v12 = vadd.f32 %v1567_v2, %v1499_v1  ;;  %v974_v41 = vadd.f32 %v910_v16, %v842_v45  ;;  %v1722_v33 = vadd.f32 %v5439_v10, %v1720_v23  ;;  %v1913_v18 = vadd.f32 %v5440_v57, %v1911_v27  ;;  %v4346_v62 = vld [vmem:[#allocation2 + $0x319] sm:$0xff]  ;;  %v5441_v2 = vld [vmem:[#allocation176_spill] sm:$0xff] }
 0x193   :  { %v1368_v39 = vadd.f32 %v1304_v60, %v1236_v61  ;;  %v1436_v7 = vmul.f32 %v2839_v35, %v372_v3  ;;  %v517_v6 = vmul.f32 %v2820_v50, %v301_v49  ;;  %v649_v25 = vmul.f32 %v2822_v51, %v373_v53  ;;  %v5442_v1 = vld [vmem:[#allocation170_spill] sm:$0xff]  ;;  %v4362_v27 = vld [vmem:[#allocation2 + $0x321] sm:$0xff] }
 0x194   :  { %5438 = vst [vmem:[#allocation110_spill] sm:$0xff] %v4336_v12  ;;  %v712_v9 = vadd.f32 %v648_v47, %v516_v34  ;;  %v780_v17 = vmul.f32 %v2831_v42, %v444_v24  ;;  %v1724_v45 = vadd.f32 %v5441_v2, %v1722_v33  ;;  %v1915_v16 = vadd.f32 %v5442_v1, %v1913_v18  ;;  %v5445_v10 = vld [vmem:[#allocation178_spill] sm:$0xff]  ;;  %v5446_v33 = vld [vmem:[#allocation172_spill] sm:$0xff] }
 0x195   :  { %v4352_v61 = vsel %vm83_vm0, %v4317_v8, 0.0  ;;  %v4355_v3 = vsel %vm83_vm0, %v1827_v0, 0.0  ;;  %v1237_v60 = vadd.f32 %v1173_v56, %v1105_v14  ;;  %v911_v34 = vmul.f32 %v2833_v38, %v301_v49 }
 0x196   :  { %5443 = vst [vmem:[#allocation102_spill] sm:$0xff] %v4355_v3  ;;  %v4360_v47 = vsel %vm83_vm0, %v4336_v12, 0.0  ;;  %v1106_v23 = vadd.f32 %v1042_v4, %v974_v41  ;;  %v1726_v18 = vadd.f32 %v5445_v10, %v1724_v45  ;;  %v1917_v57 = vadd.f32 %v5446_v33, %v1915_v16  ;;  %v303_v4 = vld [vmem:[#allocation2 + $0x320] sm:$0xff]  ;;  %v5447_v45 = vld [vmem:[#allocation174_spill] sm:$0xff] }
 0x197   :  { %5444 = vst [vmem:[#allocation113_spill] sm:$0xff] %v4360_v47  ;;  %v4366_v2 = vadd.f32 %v1436_v7, %v1368_v39  ;;  %v713_v1 = vadd.f32 %v649_v25, %v517_v6  ;;  %v518_v56 = vmul.f32 %v2820_v50, %v4344_v54  ;;  %v650_v14 = vmul.f32 %v2822_v51, %v4346_v62  ;;  %v4373_v41 = vld [vmem:[#allocation2 + $0x31a] sm:$0xff] }
 0x198   :  { %v844_v0 = vadd.f32 %v780_v17, %v712_v9  ;;  %v1043_v8 = vmul.f32 %v2835_v37, %v373_v53  ;;  %v1728_v3 = vadd.f32 %v4016_v29, %v1726_v18  ;;  %v1919_v10 = vadd.f32 %v5447_v45, %v1917_v57  ;;  %v4383_v17 = vld [vmem:[#allocation2 + $0x322] sm:$0xff]  ;;  %v305_v47 = vld [vmem:[#allocation2 + $0x338] sm:$0xff] }
 0x199   :  { %v975_v16 = vadd.f32 %v911_v34, %v843_v43  ;;  %v781_v39 = vmul.f32 %v2831_v42, %v445_v15  ;;  %v519_v7 = vmul.f32 %v2820_v50, %v303_v4  ;;  %v651_v6 = vmul.f32 %v2822_v51, %v4362_v27 }
 0x19a   :  { %v1174_v25 = vmul.f32 %v2848_v30, %v444_v24  ;;  %v1305_v9 = vmul.f32 %v2837_v36, %v301_v49  ;;  %v1730_v33 = vadd.f32 %v4069_v5, %v1728_v3  ;;  %v1921_v29 = vadd.f32 %v5448_v46, %v1919_v10  ;;  %v304_v49 = vld [vmem:[#allocation2 + $0x330] sm:$0xff] }
 0x19b   :  { %v1437_v18 = vmul.f32 %v2839_v35, %v373_v53  ;;  %v714_v43 = vadd.f32 %v650_v14, %v518_v56  ;;  %v912_v34 = vmul.f32 %v2833_v38, %v4344_v54  ;;  %v782_v50 = vmul.f32 %v2831_v42, %v4373_v41 }
 0x19c   :  { %v1568_v51 = vmul.f32 %v3960_v20, %v444_v24  ;;  %v1175_v57 = vmul.f32 %v2848_v30, %v445_v15  ;;  %v1732_v45 = vadd.f32 %v4129_v19, %v1730_v33  ;;  %v1923_v5 = vadd.f32 %v3869_v44, %v1921_v29 }
 0x19d   :  { %v845_v3 = vadd.f32 %v781_v39, %v713_v1  ;;  %v715_v46 = vadd.f32 %v651_v6, %v519_v7  ;;  %v913_v53 = vmul.f32 %v2833_v38, %v303_v4  ;;  %v783_v56 = vmul.f32 %v2831_v42, %v4383_v17  ;;  %v376_v7 = vld [vmem:[#allocation2 + $0x331] sm:$0xff] }
 0x19e   :  { %v1107_v14 = vadd.f32 %v1043_v8, %v975_v16  ;;  %v1369_v10 = vadd.f32 %v1305_v9, %v1237_v60  ;;  %v1734_v12 = vadd.f32 %v4144_v48, %v1732_v45  ;;  %v1925_v24 = vadd.f32 %v4058_v59, %v1923_v5  ;;  %v377_v9 = vld [vmem:[#allocation2 + $0x339] sm:$0xff] }
 0x19f   :  { %v976_v11 = vadd.f32 %v912_v34, %v844_v0  ;;  %v1044_v19 = vmul.f32 %v2835_v37, %v4346_v62  ;;  %v846_v33 = vadd.f32 %v782_v50, %v714_v43  ;;  %v914_v44 = vmul.f32 %v2833_v38, %v304_v49  ;;  %v449_v5 = vld [vmem:[#allocation2 + $0x33a] sm:$0xff] }
 0x1a0   :  { %v1238_v1 = vadd.f32 %v1174_v25, %v1106_v23  ;;  %v1569_v39 = vmul.f32 %v3960_v20, %v445_v15  ;;  %v1736_v42 = vadd.f32 %v4181_v63, %v1734_v12  ;;  %v1927_v8 = vadd.f32 %v4112_v21, %v1925_v24 }
 0x1a1   :  { %v977_v60 = vadd.f32 %v913_v53, %v845_v3  ;;  %v1045_v48 = vmul.f32 %v2835_v37, %v4362_v27  ;;  %v847_v59 = vadd.f32 %v783_v56, %v715_v46  ;;  %v915_v0 = vmul.f32 %v2833_v38, %v305_v47  ;;  %v448_v38 = vld [vmem:[#allocation2 + $0x332] sm:$0xff] }
 0x1a2   :  { %v1501_v16 = vadd.f32 %v1437_v18, %v1369_v10  ;;  %v1306_v6 = vmul.f32 %v2837_v36, %v4344_v54  ;;  %v1738_v23 = vadd.f32 %v4206_v22, %v1736_v42  ;;  %v1929_v15 = vadd.f32 %v4137_v32, %v1927_v8  ;;  %v5450_v8 = vld [vmem:[#allocation110_spill] sm:$0xff] }
 0x1a3   :  { %v1108_v25 = vadd.f32 %v1044_v19, %v976_v11  ;;  %v1176_v21 = vmul.f32 %v2848_v30, %v4373_v41  ;;  %v978_v63 = vadd.f32 %v914_v44, %v846_v33  ;;  %v1046_v12 = vmul.f32 %v2835_v37, %v376_v7 }
 0x1a4   :  { %v1239_v29 = vadd.f32 %v1175_v57, %v1107_v14  ;;  %v1307_v43 = vmul.f32 %v2837_v36, %v303_v4  ;;  %v1740_v18 = vadd.f32 %v4236_v40, %v1738_v23  ;;  %v1931_v54 = vadd.f32 %v4171_v13, %v1929_v15 }
 0x1a5   :  { %v1109_v34 = vadd.f32 %v1045_v48, %v977_v60  ;;  %v1177_v22 = vmul.f32 %v2848_v30, %v4383_v17  ;;  %v979_v32 = vadd.f32 %v915_v0, %v847_v59  ;;  %v1047_v11 = vmul.f32 %v2835_v37, %v377_v9  ;;  %v5452_v48 = vld [vmem:[#allocation97_spill] sm:$0xff] }
 0x1a6   :  { %v1370_v50 = vadd.f32 %v1306_v6, %v1238_v1  ;;  %v1438_v45 = vmul.f32 %v2839_v35, %v4346_v62  ;;  %v1742_v57 = vadd.f32 %v4261_v55, %v1740_v18  ;;  %v1933_v4 = vadd.f32 %v4189_v31, %v1931_v54  ;;  %v5453_v6 = vld [vmem:[#allocation59_spill] sm:$0xff] }
 0x1a7   :  { %v1240_v3 = vadd.f32 %v1176_v21, %v1108_v25  ;;  %v1110_v40 = vadd.f32 %v1046_v12, %v978_v63  ;;  %v1308_v13 = vmul.f32 %v2837_v36, %v304_v49  ;;  %v1178_v46 = vmul.f32 %v2848_v30, %v448_v38  ;;  %v5454_v25 = vld [vmem:[#allocation100_spill] sm:$0xff]  ;;  %v451_v63 = vld [vmem:[#allocation2 + $0x352] sm:$0xff] }
 0x1a8   :  { %v1371_v53 = vadd.f32 %v1307_v43, %v1239_v29  ;;  %v1439_v56 = vmul.f32 %v2839_v35, %v4362_v27  ;;  %v1744_v37 = vadd.f32 %v4289_v52, %v1742_v57  ;;  %v1935_v14 = vadd.f32 %v4217_v26, %v1933_v4  ;;  %v5455_v43 = vld [vmem:[#allocation56_spill] sm:$0xff]  ;;  %v5457_v4 = vld [vmem:[#allocation58_spill] sm:$0xff] }
 0x1a9   :  { %v1241_v62 = vadd.f32 %v1177_v22, %v1109_v34  ;;  %v1111_v10 = vadd.f32 %v1047_v11, %v979_v32  ;;  %v1309_v55 = vmul.f32 %v2837_v36, %v305_v47  ;;  %v1179_v31 = vmul.f32 %v2848_v30, %v449_v5  ;;  %v5449_v47 = vld [vmem:[#allocation90_spill] sm:$0xff] }
 0x1aa   :  { %v4436_v24 = vadd.f32 %v1568_v51, %v4366_v2  ;;  %v1502_v49 = vadd.f32 %v1438_v45, %v1370_v50  ;;  %v1746_v19 = vadd.f32 %v4304_v58, %v1744_v37  ;;  %v1937_v33 = vadd.f32 %v4245_v28, %v1935_v14  ;;  %v5456_v32 = vld [vmem:[#allocation102_spill] sm:$0xff]  ;;  %v5458_v37 = vld [vmem:[#allocation61_spill] sm:$0xff] }
 0x1ab   :  { %v1570_v27 = vmul.f32 %v3960_v20, %v4373_v41  ;;  %v1372_v52 = vadd.f32 %v1308_v13, %v1240_v3  ;;  %v1440_v26 = vmul.f32 %v2839_v35, %v376_v7  ;;  %v1242_v44 = vadd.f32 %v1178_v46, %v1110_v40 }
 0x1ac   :  { %v4443_v1 = vadd.f32 %v1569_v39, %v1501_v16  ;;  %v1571_v30 = vmul.f32 %v3960_v20, %v4383_v17  ;;  %v1748_v36 = vadd.f32 %v4352_v61, %v1746_v19  ;;  %v1939_v2 = vadd.f32 %v5449_v47, %v1937_v33  ;;  %v5451_v39 = vld [vmem:[#allocation113_spill] sm:$0xff] }
 0x1ad   :  { %v1503_v51 = vadd.f32 %v1439_v56, %v1371_v53  ;;  %v1373_v58 = vadd.f32 %v1309_v55, %v1241_v62  ;;  %v1441_v28 = vmul.f32 %v2839_v35, %v377_v9  ;;  %v1243_v42 = vadd.f32 %v1179_v31, %v1111_v10  ;;  %v450_v17 = vld [vmem:[#allocation2 + $0x34a] sm:$0xff] }
 0x1ae   :  { %v1828_v41 = vmul.f32 %v5450_v8, %v5450_v8  ;;  %v1751_v7 = vsel %vm83_vm0, %v4436_v24, 0.0  ;;  %v1750_v60 = vadd.f32 %v5451_v39, %v1748_v36  ;;  %v1941_v59 = vadd.f32 %v5452_v48, %v1939_v2 }
 0x1af   :  { %v4456_v0 = vadd.f32 %v1570_v27, %v1502_v49  ;;  %v1504_v61 = vadd.f32 %v1440_v26, %v1372_v52  ;;  %v1572_v16 = vmul.f32 %v3960_v20, %v448_v38  ;;  %v1374_v23 = vadd.f32 %v5453_v6, %v1242_v44  ;;  %v2266_v20 = vld [vmem:[%s5042_s1 + $0x8] ss:$0 sm:$0xff] }
 0x1b0   :  { %v1829_v35 = vmul.f32 %v4436_v24, %v4436_v24  ;;  %v1753_v9 = vsel %vm83_vm0, %v4443_v1, 0.0  ;;  %v1752_v15 = vadd.f32 %v1751_v7, %v1750_v60  ;;  %v1943_v21 = vadd.f32 %v5454_v25, %v1941_v59 }
 0x1b1   :  { %v4465_v12 = vadd.f32 %v1571_v30, %v1503_v51  ;;  %v1505_v29 = vadd.f32 %v1441_v28, %v1373_v58  ;;  %v1375_v18 = vadd.f32 %v5455_v43, %v1243_v42  ;;  %v1573_v38 = vmul.f32 %v2266_v20, %v449_v5 }
 0x1b2   :  { %v1574_v54 = vmul.f32 %v2266_v20, %v450_v17  ;;  %v1946_v34 = vsel %vm83_vm0, %v1828_v41, 0.0  ;;  %v1754_v22 = vadd.f32 %v1753_v9, %v1752_v15  ;;  %v1945_v11 = vadd.f32 %v5456_v32, %v1943_v21 }
 0x1b3   :  { %v1830_v50 = vmul.f32 %v4443_v1, %v4443_v1  ;;  %v1755_v45 = vsel %vm83_vm0, %v4456_v0, 0.0  ;;  %v4477_v57 = vadd.f32 %v1572_v16, %v1504_v61  ;;  %v1506_v3 = vadd.f32 %v5457_v4, %v1374_v23 }
 0x1b4   :  { %v1575_v40 = vmul.f32 %v2266_v20, %v451_v63  ;;  %v1948_v13 = vsel %vm83_vm0, %v1829_v35, 0.0  ;;  %v1756_v5 = vadd.f32 %v1755_v45, %v1754_v22  ;;  %v1947_v46 = vadd.f32 %v1946_v34, %v1945_v11 }
 0x1b5   :  { %v1831_v53 = vmul.f32 %v4456_v0, %v4456_v0  ;;  %v1757_v56 = vsel %vm83_vm0, %v4465_v12, 0.0  ;;  %v1507_v14 = vadd.f32 %v5458_v37, %v1375_v18  ;;  %v4486_v62 = vadd.f32 %v1573_v38, %v1505_v29 }
 0x1b6   :  { %v1758_v10 = vadd.f32 %v1757_v56, %v1756_v5  ;;  %v1949_v55 = vadd.f32 %v1948_v13, %v1947_v46  ;;  %v1950_v31 = vsel %vm83_vm0, %v1830_v50, 0.0  ;;  %v1832_v49 = vmul.f32 %v4465_v12, %v4465_v12  ;;  %v1975_v5 = vld [vmem:[%s5044_s3] sm:$0x1] }
 0x1b7   :  { %v1759_v19 = vsel %vm83_vm0, %v4477_v57, 0.0  ;;  %v4493_v33 = vadd.f32 %v1574_v54, %v1506_v3  ;;  %v1952_v26 = vsel %vm83_vm0, %v1831_v53, 0.0  ;;  %v1833_v44 = vmul.f32 %v4477_v57, %v4477_v57  ;;  %v1974_v3 = vld [vmem:[%s5043_s2] sm:$0x1]  ;;  %v5459_v53 = vld [vmem:[#allocation54_spill] sm:$0xff] }
 0x1b8   :  { %v1760_v27 = vadd.f32 %v1759_v19, %v1758_v10  ;;  %v1951_v52 = vadd.f32 %v1950_v31, %v1949_v55  ;;  %v4498_v30 = vadd.f32 %v1575_v40, %v1507_v14  ;;  %v1761_v36 = vsel %vm83_vm0, %v4486_v62, 0.0  ;;  %v5460_v14 = vld [vmem:[#allocation62_spill] sm:$0xff]  ;;  %v5461_v55 = vld [vmem:[#allocation65_spill] sm:$0xff] }
 0x1b9   :  { %v1954_v51 = vsel %vm83_vm0, %v1832_v49, 0.0  ;;  %v1763_v58 = vsel %vm83_vm0, %v4493_v33, 0.0  ;;  %v1834_v28 = vmul.f32 %v4486_v62, %v4486_v62  ;;  %v1956_v7 = vsel %vm83_vm0, %v1833_v44, 0.0  ;;  %v5462_v49 = vld [vmem:[#allocation66_spill] sm:$0xff] }
 0x1ba   :  { %v1762_v47 = vadd.f32 %v1761_v36, %v1760_v27  ;;  %v1953_v2 = vadd.f32 %v1952_v26, %v1951_v52  ;;  %v1765_v39 = vsel %vm83_vm0, %v4498_v30, 0.0  ;;  %v1835_v60 = vmul.f32 %v4493_v33, %v4493_v33  ;;  %v5463_v27 = vld [vmem:[#allocation67_spill] sm:$0xff]  ;;  %v5464_v26 = vld [vmem:[#allocation68_spill] sm:$0xff] }
 0x1bb   :  { %v1836_v17 = vmul.f32 %v4498_v30, %v4498_v30  ;;  %v1958_v61 = vsel %vm83_vm0, %v1834_v28, 0.0  ;;  %v5465_v36 = vld [vmem:[#allocation71_spill] sm:$0xff] }
 0x1bc   :  { %v1764_v42 = vadd.f32 %v1763_v58, %v1762_v47  ;;  %v1955_v41 = vadd.f32 %v1954_v51, %v1953_v2  ;;  %v1960_v23 = vsel %vm83_vm0, %v1835_v60, 0.0  ;;  %v5466_v2 = vld [vmem:[#allocation70_spill] sm:$0xff]  ;;  %v5467_v28 = vld [vmem:[#allocation75_spill] sm:$0xff] }
 0x1bd   :  { %v1962_v15 = vsel %vm83_vm0, %v1836_v17, 0.0  ;;  %v5471_v17 = vld [vmem:[#allocation83_spill] sm:$0xff] }
 0x1be   :  { %v1766_v48 = vadd.f32 %v1765_v39, %v1764_v42  ;;  %v1957_v59 = vadd.f32 %v1956_v7, %v1955_v41  ;;  %v5468_v41 = vld [vmem:[#allocation82_spill] sm:$0xff]  ;;  %v5469_v39 = vld [vmem:[#allocation84_spill] sm:$0xff] }
 0x1c0   :  { %v1767_v16 = vrot.slane %v1766_v48, 4  ;;  %v1959_v6 = vadd.f32 %v1958_v61, %v1957_v59 }
 0x1c2   :  { %v1768_v35 = vadd.f32 %v1767_v16, %v1766_v48  ;;  %v1961_v9 = vadd.f32 %v1960_v23, %v1959_v6  ;;  %v5470_v48 = vld [vmem:[#allocation79_spill] sm:$0xff]  ;;  %v5472_v16 = vld [vmem:[#allocation80_spill] sm:$0xff]  ;;  %v5473_v23 = vld [vmem:[#allocation86_spill] sm:$0xff] }
 0x1c4   :  { %v1769_v25 = vrot.slane %v1768_v35, 2  ;;  %v1963_v21 = vadd.f32 %v1962_v15, %v1961_v9 }
 0x1c6   :  { %v1770_v63 = vadd.f32 %v1769_v25, %v1768_v35  ;;  %v1964_v29 = vrot.slane %v1963_v21, 4 }
 0x1c8   :  { %v1771_v43 = vrot.slane %v1770_v63, 1  ;;  %v1965_v18 = vadd.f32 %v1964_v29, %v1963_v21 }
 0x1ca   :  { %v1772_v20 = vadd.f32 %v1771_v43, %v1770_v63  ;;  %v1966_v38 = vrot.slane %v1965_v18, 2 }
 0x1cc   :  { %v1967_v54 = vadd.f32 %v1966_v38, %v1965_v18  ;;  %v1970_v34 = vmul.f32 0.001953125, %v1772_v20  ;;  %v5474_v20 = vld [vmem:[#allocation3_spill] sm:$0xff] }
 0x1ce   :  { %v1968_v22 = vrot.slane %v1967_v54, 1  ;;  %v1972_v11 = vmul.f32 %v1970_v34, %v1970_v34 }
 0x1d0   :  { %v1969_v32 = vadd.f32 %v1968_v22, %v1967_v54  ;;  %v5475_v54 = vld [vmem:[#allocation4_spill] sm:$0xff]  ;;  %v5476_v22 = vld [vmem:[#allocation5_spill] sm:$0xff] }
 0x1d2   :  { %v1971_v50 = vmul.f32 0.001953125, %v1969_v32 }
 0x1d4   :  { %v1973_v45 = vsub.f32 %v1971_v50, %v1972_v11  ;;  %v5477_v11 = vld [vmem:[#allocation6_spill] sm:$0xff] }
 0x1d6   :  { %v1976_v4 = vadd.f32 1e-05, %v1973_v45  ;;  %v5478_v45 = vld [vmem:[#allocation7_spill] sm:$0xff] }
 0x1d8   :  { %2253 = vrsqrt.f32 %v1976_v4 }
 0x1e2   :  { %v2254_v40 = vpop.eup %2253 }
 0x1e3   :  { %v1978_v13 = vmul.f32 %v2254_v40, %v1974_v3  ;;  %v5479_v3 = vld [vmem:[#allocation8_spill] sm:$0xff] }
 0x1e5   :  { %v1979_v46 = vmul.f32 %v1978_v13, %v1970_v34  ;;  %v4524_v56 = vrot.slane %v1978_v13, %v5459_v53  ;;  %v5480_v13 = vld [vmem:[#allocation9_spill] sm:$0xff] }
 0x1e7   :  { %v1980_v37 = vsub.f32 %v1975_v5, %v1979_v46  ;;  %v1985_v10 = vmul.f32 %v4524_v56, %v5460_v14  ;;  %v1986_v31 = vmul.f32 %v4524_v56, %v5461_v55  ;;  %v1987_v19 = vmul.f32 %v4524_v56, %v5462_v49  ;;  %v5481_v46 = vld [vmem:[#allocation10_spill] sm:$0xff] }
 0x1e8   :  { %v1988_v52 = vmul.f32 %v4524_v56, %v5463_v27  ;;  %v1989_v44 = vmul.f32 %v4524_v56, %v5464_v26  ;;  %v1990_v47 = vmul.f32 %v4524_v56, %v5465_v36  ;;  %v1991_v51 = vmul.f32 %v4524_v56, %v5466_v2 }
 0x1e9   :  { %v4541_v58 = vrot.slane %v1980_v37, %v5459_v53  ;;  %v1992_v42 = vmul.f32 %v4524_v56, %v5467_v28  ;;  %v1993_v7 = vmul.f32 %v4524_v56, %v5468_v41  ;;  %v1994_v60 = vmul.f32 %v4524_v56, %v5469_v39 }
 0x1ea   :  { %v1995_v59 = vmul.f32 %v4524_v56, %v5470_v48  ;;  %v1996_v61 = vmul.f32 %v4524_v56, %v5471_v17  ;;  %v1997_v6 = vmul.f32 %v4524_v56, %v5472_v16  ;;  %v1998_v35 = vmul.f32 %v4524_v56, %v5473_v23 }
 0x1eb   :  { %v2055_v9 = vadd.f32 %v4541_v58, %v1985_v10  ;;  %v2056_v15 = vadd.f32 %v4541_v58, %v1986_v31  ;;  %v2057_v25 = vadd.f32 %v4541_v58, %v1987_v19  ;;  %v2058_v21 = vadd.f32 %v4541_v58, %v1988_v52  ;;  %v5482_v19 = vld [vmem:[#allocation94_spill] sm:$0xff]  ;;  %v5483_v52 = vld [vmem:[#allocation96_spill] sm:$0xff] }
 0x1ec   :  { %v2059_v63 = vadd.f32 %v4541_v58, %v1989_v44  ;;  %v2060_v29 = vadd.f32 %v4541_v58, %v1990_v47  ;;  %v2061_v43 = vadd.f32 %v4541_v58, %v1991_v51  ;;  %v2062_v18 = vadd.f32 %v4541_v58, %v1992_v42  ;;  %v5484_v44 = vld [vmem:[#allocation11_spill] sm:$0xff]  ;;  %v5485_v47 = vld [vmem:[#allocation12_spill] sm:$0xff]  ;;  %v5486_v51 = vld [vmem:[#allocation13_spill] sm:$0xff] }
 0x1ed   :  { %v2119_v38 = vmax.f32 %v5474_v20, %v2055_v9  ;;  %v2120_v34 = vmax.f32 %v5475_v54, %v2056_v15  ;;  %v2121_v32 = vmax.f32 %v5476_v22, %v2057_v25  ;;  %v2122_v50 = vmax.f32 %v5477_v11, %v2058_v21  ;;  %v5487_v42 = vld [vmem:[#allocation14_spill] sm:$0xff]  ;;  %v5494_v21 = vld [vmem:[#allocation17_spill] sm:$0xff] }
 0x1ee   :  { %v2123_v4 = vmax.f32 %v5478_v45, %v2059_v63  ;;  %v2124_v40 = vmax.f32 %v5479_v3, %v2060_v29  ;;  %v2125_v5 = vmax.f32 %v5480_v13, %v2061_v43  ;;  %v2126_v53 = vmax.f32 %v5481_v46, %v2062_v18  ;;  %v5493_v15 = vld [vmem:[#allocation106_spill] sm:$0xff]  ;;  %v5496_v18 = vld [vmem:[#allocation107_spill] sm:$0xff] }
 0x1ef   :  { %2183 = vst.msk [vmem:[%s5045_s4] sm:$0xff] %vm83_vm0, %v2119_v38  ;;  %2184 = vst.msk [vmem:[%s5045_s4 + $0x8] sm:$0xff] %vm83_vm0, %v2120_v34  ;;  %v2063_v37 = vadd.f32 %v4541_v58, %v1993_v7  ;;  %v2064_v14 = vadd.f32 %v4541_v58, %v1994_v60  ;;  %v2065_v10 = vadd.f32 %v4541_v58, %v1995_v59  ;;  %v5488_v7 = vld [vmem:[#allocation15_spill] sm:$0xff]  ;;  %v5489_v60 = vld [vmem:[#allocation16_spill] sm:$0xff] }
 0x1f0   :  { %2185 = vst.msk [vmem:[%s5045_s4 + $0x10] sm:$0xff] %vm83_vm0, %v2121_v32  ;;  %2186 = vst.msk [vmem:[%s5045_s4 + $0x18] sm:$0xff] %vm83_vm0, %v2122_v50  ;;  %v2066_v55 = vadd.f32 %v4541_v58, %v1996_v61  ;;  %v2067_v31 = vadd.f32 %v4541_v58, %v1997_v6  ;;  %v2068_v49 = vadd.f32 %v4541_v58, %v1998_v35  ;;  %v5490_v61 = vld [vmem:[#allocation99_spill] sm:$0xff]  ;;  %v5491_v6 = vld [vmem:[#allocation101_spill] sm:$0xff] }
 0x1f1   :  { %2187 = vst.msk [vmem:[%s5045_s4 + $0x20] sm:$0xff] %vm83_vm0, %v2123_v4  ;;  %2188 = vst.msk [vmem:[%s5045_s4 + $0x28] sm:$0xff] %vm83_vm0, %v2124_v40  ;;  %v1999_v27 = vmul.f32 %v4524_v56, %v5482_v19  ;;  %v2000_v26 = vmul.f32 %v4524_v56, %v5483_v52  ;;  %v2127_v36 = vmax.f32 %v5484_v44, %v2063_v37  ;;  %v5492_v35 = vld [vmem:[#allocation103_spill] sm:$0xff]  ;;  %v5495_v29 = vld [vmem:[#allocation18_spill] sm:$0xff] }
 0x1f2   :  { %2189 = vst.msk [vmem:[%s5045_s4 + $0x30] sm:$0xff] %vm83_vm0, %v2125_v5  ;;  %2190 = vst.msk [vmem:[%s5045_s4 + $0x38] sm:$0xff] %vm83_vm0, %v2126_v53  ;;  %v2128_v2 = vmax.f32 %v5485_v47, %v2064_v14  ;;  %v2129_v28 = vmax.f32 %v5486_v51, %v2065_v10  ;;  %v2130_v41 = vmax.f32 %v5487_v42, %v2066_v55  ;;  %v5497_v38 = vld [vmem:[#allocation108_spill] sm:$0xff]  ;;  %v5498_v4 = vld [vmem:[#allocation111_spill] sm:$0xff] }
 0x1f3   :  { %v2131_v39 = vmax.f32 %v5488_v7, %v2067_v31  ;;  %v2132_v48 = vmax.f32 %v5489_v60, %v2068_v49  ;;  %v2069_v59 = vadd.f32 %v4541_v58, %v1999_v27  ;;  %v2070_v17 = vadd.f32 %v4541_v58, %v2000_v26  ;;  %2191 = vst.msk [vmem:[%s5045_s4 + $0x40] sm:$0xff] %vm83_vm0, %v2127_v36  ;;  %v5499_v40 = vld [vmem:[#allocation116_spill] sm:$0xff]  ;;  %v5500_v5 = vld [vmem:[#allocation19_spill] sm:$0xff]  ;;  %v5502_v14 = vld [vmem:[#allocation21_spill] sm:$0xff] }
 0x1f4   :  { %2192 = vst.msk [vmem:[%s5045_s4 + $0x48] sm:$0xff] %vm83_vm0, %v2128_v2  ;;  %2193 = vst.msk [vmem:[%s5045_s4 + $0x50] sm:$0xff] %vm83_vm0, %v2129_v28  ;;  %v2001_v16 = vmul.f32 %v4524_v56, %v5490_v61  ;;  %v2002_v23 = vmul.f32 %v4524_v56, %v5491_v6  ;;  %v2003_v9 = vmul.f32 %v4524_v56, %v5492_v35  ;;  %v5501_v53 = vld [vmem:[#allocation20_spill] sm:$0xff]  ;;  %v5503_v55 = vld [vmem:[#allocation22_spill] sm:$0xff] }
 0x1f5   :  { %2194 = vst.msk [vmem:[%s5045_s4 + $0x58] sm:$0xff] %vm83_vm0, %v2130_v41  ;;  %v2004_v25 = vmul.f32 %v4524_v56, %v5493_v15  ;;  %2195 = vst.msk [vmem:[%s5045_s4 + $0x60] sm:$0xff] %vm83_vm0, %v2131_v39  ;;  %v2133_v63 = vmax.f32 %v5494_v21, %v2069_v59  ;;  %v2134_v43 = vmax.f32 %v5495_v29, %v2070_v17  ;;  %v5504_v49 = vld [vmem:[#allocation23_spill] sm:$0xff]  ;;  %v5505_v27 = vld [vmem:[#allocation24_spill] sm:$0xff] }
 0x1f6   :  { %2196 = vst.msk [vmem:[%s5045_s4 + $0x68] sm:$0xff] %vm83_vm0, %v2132_v48  ;;  %v2005_v20 = vmul.f32 %v4524_v56, %v5496_v18  ;;  %v2006_v54 = vmul.f32 %v4524_v56, %v5497_v38  ;;  %v2071_v34 = vadd.f32 %v4541_v58, %v2001_v16  ;;  %v2072_v22 = vadd.f32 %v4541_v58, %v2002_v23  ;;  %v5506_v36 = vld [vmem:[#allocation121_spill] sm:$0xff]  ;;  %v5507_v2 = vld [vmem:[#allocation124_spill] sm:$0xff]  ;;  %v5511_v48 = vld [vmem:[#allocation26_spill] sm:$0xff] }
 0x1f7   :  { %v2073_v32 = vadd.f32 %v4541_v58, %v2003_v9  ;;  %v2074_v11 = vadd.f32 %v4541_v58, %v2004_v25  ;;  %2197 = vst.msk [vmem:[%s5045_s4 + $0x70] sm:$0xff] %vm83_vm0, %v2133_v63  ;;  %2198 = vst.msk [vmem:[%s5045_s4 + $0x78] sm:$0xff] %vm83_vm0, %v2134_v43  ;;  %v2007_v3 = vmul.f32 %v4524_v56, %v5498_v4  ;;  %v5508_v28 = vld [vmem:[#allocation125_spill] sm:$0xff]  ;;  %v5509_v41 = vld [vmem:[#allocation128_spill] sm:$0xff] }
 0x1f8   :  { %v2075_v50 = vadd.f32 %v4541_v58, %v2005_v20  ;;  %v2076_v45 = vadd.f32 %v4541_v58, %v2006_v54  ;;  %v2008_v13 = vmul.f32 %v4524_v56, %v5499_v40  ;;  %v2135_v46 = vmax.f32 %v5500_v5, %v2071_v34  ;;  %v5510_v39 = vld [vmem:[#allocation25_spill] sm:$0xff]  ;;  %v5512_v17 = vld [vmem:[#allocation131_spill] sm:$0xff]  ;;  %v5513_v16 = vld [vmem:[#allocation134_spill] sm:$0xff] }
 0x1f9   :  { %v2136_v37 = vmax.f32 %v5501_v53, %v2072_v22  ;;  %v2137_v10 = vmax.f32 %v5502_v14, %v2073_v32  ;;  %v2138_v31 = vmax.f32 %v5503_v55, %v2074_v11  ;;  %v2077_v26 = vadd.f32 %v4541_v58, %v2007_v3  ;;  %v5514_v63 = vld [vmem:[#allocation135_spill] sm:$0xff]  ;;  %v5515_v43 = vld [vmem:[#allocation137_spill] sm:$0xff]  ;;  %v5517_v54 = vld [vmem:[#allocation28_spill] sm:$0xff] }
 0x1fa   :  { %v2139_v19 = vmax.f32 %v5504_v49, %v2075_v50  ;;  %v2140_v52 = vmax.f32 %v5505_v27, %v2076_v45  ;;  %v2078_v44 = vadd.f32 %v4541_v58, %v2008_v13  ;;  %2199 = vst.msk [vmem:[%s5045_s4 + $0x80] sm:$0xff] %vm83_vm0, %v2135_v46  ;;  %v2009_v47 = vmul.f32 %v4524_v56, %v5506_v36  ;;  %v5516_v20 = vld [vmem:[#allocation27_spill] sm:$0xff]  ;;  %v5518_v22 = vld [vmem:[#allocation29_spill] sm:$0xff]  ;;  %v5519_v11 = vld [vmem:[#allocation30_spill] sm:$0xff] }
 0x1fb   :  { %2200 = vst.msk [vmem:[%s5045_s4 + $0x88] sm:$0xff] %vm83_vm0, %v2136_v37  ;;  %2201 = vst.msk [vmem:[%s5045_s4 + $0x90] sm:$0xff] %vm83_vm0, %v2137_v10  ;;  %v2010_v51 = vmul.f32 %v4524_v56, %v5507_v2  ;;  %v2011_v42 = vmul.f32 %v4524_v56, %v5508_v28  ;;  %v2012_v7 = vmul.f32 %v4524_v56, %v5509_v41  ;;  %v5520_v45 = vld [vmem:[#allocation31_spill] sm:$0xff]  ;;  %v5521_v3 = vld [vmem:[#allocation32_spill] sm:$0xff] }
 0x1fc   :  { %2202 = vst.msk [vmem:[%s5045_s4 + $0x98] sm:$0xff] %vm83_vm0, %v2138_v31  ;;  %2203 = vst.msk [vmem:[%s5045_s4 + $0xa0] sm:$0xff] %vm83_vm0, %v2139_v19  ;;  %v2141_v60 = vmax.f32 %v5510_v39, %v2077_v26  ;;  %v2142_v59 = vmax.f32 %v5511_v48, %v2078_v44  ;;  %v2013_v61 = vmul.f32 %v4524_v56, %v5512_v17  ;;  %v5522_v46 = vld [vmem:[#allocation140_spill] sm:$0xff]  ;;  %v5523_v37 = vld [vmem:[#allocation145_spill] sm:$0xff] }
 0x1fd   :  { %2204 = vst.msk [vmem:[%s5045_s4 + $0xa8] sm:$0xff] %vm83_vm0, %v2140_v52  ;;  %v2014_v6 = vmul.f32 %v4524_v56, %v5513_v16  ;;  %v2079_v23 = vadd.f32 %v4541_v58, %v2009_v47  ;;  %v2080_v35 = vadd.f32 %v4541_v58, %v2010_v51  ;;  %v2081_v9 = vadd.f32 %v4541_v58, %v2011_v42  ;;  %v5524_v10 = vld [vmem:[#allocation148_spill] sm:$0xff]  ;;  %v5525_v31 = vld [vmem:[#allocation153_spill] sm:$0xff]  ;;  %v5527_v52 = vld [vmem:[#allocation34_spill] sm:$0xff] }
 0x1fe   :  { %v2082_v15 = vadd.f32 %v4541_v58, %v2012_v7  ;;  %2205 = vst.msk [vmem:[%s5045_s4 + $0xb0] sm:$0xff] %vm83_vm0, %v2141_v60  ;;  %2206 = vst.msk [vmem:[%s5045_s4 + $0xb8] sm:$0xff] %vm83_vm0, %v2142_v59  ;;  %v2083_v25 = vadd.f32 %v4541_v58, %v2013_v61  ;;  %v2015_v29 = vmul.f32 %v4524_v56, %v5514_v63  ;;  %v5526_v19 = vld [vmem:[#allocation33_spill] sm:$0xff]  ;;  %v5528_v44 = vld [vmem:[#allocation154_spill] sm:$0xff] }
 0x1ff   :  { %v2084_v21 = vadd.f32 %v4541_v58, %v2014_v6  ;;  %v2016_v18 = vmul.f32 %v4524_v56, %v5515_v43  ;;  %v2143_v38 = vmax.f32 %v5516_v20, %v2079_v23  ;;  %v2144_v34 = vmax.f32 %v5517_v54, %v2080_v35  ;;  %v5529_v47 = vld [vmem:[#allocation157_spill] sm:$0xff]  ;;  %v5530_v60 = vld [vmem:[#allocation160_spill] sm:$0xff]  ;;  %v5531_v59 = vld [vmem:[#allocation163_spill] sm:$0xff] }
 0x200   :  { %v2145_v32 = vmax.f32 %v5518_v22, %v2081_v9  ;;  %v2146_v50 = vmax.f32 %v5519_v11, %v2082_v15  ;;  %v2147_v4 = vmax.f32 %v5520_v45, %v2083_v25  ;;  %v2085_v13 = vadd.f32 %v4541_v58, %v2015_v29  ;;  %v5532_v61 = vld [vmem:[#allocation35_spill] sm:$0xff]  ;;  %v5533_v6 = vld [vmem:[#allocation36_spill] sm:$0xff]  ;;  %v5534_v35 = vld [vmem:[#allocation37_spill] sm:$0xff] }
 0x201   :  { %v2148_v40 = vmax.f32 %v5521_v3, %v2084_v21  ;;  %v2086_v5 = vadd.f32 %v4541_v58, %v2016_v18  ;;  %2207 = vst.msk [vmem:[%s5045_s4 + $0xc0] sm:$0xff] %vm83_vm0, %v2143_v38  ;;  %2208 = vst.msk [vmem:[%s5045_s4 + $0xc8] sm:$0xff] %vm83_vm0, %v2144_v34  ;;  %v2017_v53 = vmul.f32 %v4524_v56, %v5522_v46  ;;  %v5535_v15 = vld [vmem:[#allocation38_spill] sm:$0xff]  ;;  %v5536_v21 = vld [vmem:[#allocation39_spill] sm:$0xff] }
 0x202   :  { %2209 = vst.msk [vmem:[%s5045_s4 + $0xd0] sm:$0xff] %vm83_vm0, %v2145_v32  ;;  %2210 = vst.msk [vmem:[%s5045_s4 + $0xd8] sm:$0xff] %vm83_vm0, %v2146_v50  ;;  %v2018_v14 = vmul.f32 %v4524_v56, %v5523_v37  ;;  %v2019_v55 = vmul.f32 %v4524_v56, %v5524_v10  ;;  %v2020_v49 = vmul.f32 %v4524_v56, %v5525_v31  ;;  %v5537_v29 = vld [vmem:[#allocation40_spill] sm:$0xff]  ;;  %v5539_v34 = vld [vmem:[#allocation165_spill] sm:$0xff] }
 0x203   :  { %2211 = vst.msk [vmem:[%s5045_s4 + $0xe0] sm:$0xff] %vm83_vm0, %v2147_v4  ;;  %2212 = vst.msk [vmem:[%s5045_s4 + $0xe8] sm:$0xff] %vm83_vm0, %v2148_v40  ;;  %v2149_v27 = vmax.f32 %v5526_v19, %v2085_v13  ;;  %v2150_v26 = vmax.f32 %v5527_v52, %v2086_v5  ;;  %v2021_v36 = vmul.f32 %v4524_v56, %v5528_v44  ;;  %v5538_v38 = vld [vmem:[#allocation164_spill] sm:$0xff]  ;;  %v5541_v50 = vld [vmem:[#allocation175_spill] sm:$0xff] }
 0x204   :  { %v2022_v2 = vmul.f32 %v4524_v56, %v5529_v47  ;;  %v2087_v51 = vadd.f32 %v4541_v58, %v2017_v53  ;;  %v2088_v28 = vadd.f32 %v4541_v58, %v2018_v14  ;;  %v2089_v42 = vadd.f32 %v4541_v58, %v2019_v55  ;;  %v5540_v32 = vld [vmem:[#allocation168_spill] sm:$0xff]  ;;  %v5542_v4 = vld [vmem:[#allocation41_spill] sm:$0xff]  ;;  %v5543_v40 = vld [vmem:[#allocation42_spill] sm:$0xff] }
 0x205   :  { %v2090_v41 = vadd.f32 %v4541_v58, %v2020_v49  ;;  %2213 = vst.msk [vmem:[%s5045_s4 + $0xf0] sm:$0xff] %vm83_vm0, %v2149_v27  ;;  %2214 = vst.msk [vmem:[%s5045_s4 + $0xf8] sm:$0xff] %vm83_vm0, %v2150_v26  ;;  %v2091_v7 = vadd.f32 %v4541_v58, %v2021_v36  ;;  %v2023_v48 = vmul.f32 %v4524_v56, %v5530_v60  ;;  %v5544_v5 = vld [vmem:[#allocation64_spill] sm:$0xff]  ;;  %v5545_v53 = vld [vmem:[#allocation73_spill] sm:$0xff] }
 0x206   :  { %v2092_v39 = vadd.f32 %v4541_v58, %v2022_v2  ;;  %v2024_v17 = vmul.f32 %v4524_v56, %v5531_v59  ;;  %v2151_v16 = vmax.f32 %v5532_v61, %v2087_v51  ;;  %v2152_v23 = vmax.f32 %v5533_v6, %v2088_v28  ;;  %v5546_v27 = vld [vmem:[#allocation179_spill] sm:$0xff]  ;;  %v5547_v26 = vld [vmem:[#allocation89_spill] sm:$0xff]  ;;  %v5549_v2 = vld [vmem:[#allocation44_spill] sm:$0xff] }
 0x207   :  { %v2153_v9 = vmax.f32 %v5534_v35, %v2089_v42  ;;  %v2154_v25 = vmax.f32 %v5535_v15, %v2090_v41  ;;  %v2155_v63 = vmax.f32 %v5536_v21, %v2091_v7  ;;  %v2093_v18 = vadd.f32 %v4541_v58, %v2023_v48  ;;  %v5548_v36 = vld [vmem:[#allocation43_spill] sm:$0xff]  ;;  %v5550_v28 = vld [vmem:[#allocation45_spill] sm:$0xff]  ;;  %v5551_v41 = vld [vmem:[#allocation46_spill] sm:$0xff] }
 0x208   :  { %v2156_v43 = vmax.f32 %v5537_v29, %v2092_v39  ;;  %v2094_v20 = vadd.f32 %v4541_v58, %v2024_v17  ;;  %2215 = vst.msk [vmem:[%s5045_s4 + $0x100] sm:$0xff] %vm83_vm0, %v2151_v16  ;;  %2216 = vst.msk [vmem:[%s5045_s4 + $0x108] sm:$0xff] %vm83_vm0, %v2152_v23  ;;  %v2025_v54 = vmul.f32 %v4524_v56, %v5538_v38  ;;  %v5552_v39 = vld [vmem:[#allocation47_spill] sm:$0xff]  ;;  %v5553_v48 = vld [vmem:[#allocation48_spill] sm:$0xff] }
 0x209   :  { %2217 = vst.msk [vmem:[%s5045_s4 + $0x110] sm:$0xff] %vm83_vm0, %v2153_v9  ;;  %2218 = vst.msk [vmem:[%s5045_s4 + $0x118] sm:$0xff] %vm83_vm0, %v2154_v25  ;;  %v2026_v22 = vmul.f32 %v4524_v56, %v5539_v34  ;;  %v2027_v11 = vmul.f32 %v4524_v56, %v5540_v32  ;;  %v2028_v45 = vmul.f32 %v4524_v56, %v5541_v50  ;;  %v5554_v16 = vld [vmem:[#allocation85_spill] sm:$0xff]  ;;  %v5555_v23 = vld [vmem:[#allocation92_spill] sm:$0xff] }
 0x20a   :  { %2219 = vst.msk [vmem:[%s5045_s4 + $0x120] sm:$0xff] %vm83_vm0, %v2155_v63  ;;  %2220 = vst.msk [vmem:[%s5045_s4 + $0x128] sm:$0xff] %vm83_vm0, %v2156_v43  ;;  %v2157_v3 = vmax.f32 %v5542_v4, %v2093_v18  ;;  %v2158_v13 = vmax.f32 %v5543_v40, %v2094_v20  ;;  %v2029_v46 = vmul.f32 %v4524_v56, %v5544_v5  ;;  %v5556_v9 = vld [vmem:[#allocation88_spill] sm:$0xff]  ;;  %v5557_v25 = vld [vmem:[#allocation95_spill] sm:$0xff] }
 0x20b   :  { %v2030_v37 = vmul.f32 %v4524_v56, %v5545_v53  ;;  %v2095_v14 = vadd.f32 %v4541_v58, %v2025_v54  ;;  %v2096_v10 = vadd.f32 %v4541_v58, %v2026_v22  ;;  %v2097_v55 = vadd.f32 %v4541_v58, %v2027_v11  ;;  %v5558_v63 = vld [vmem:[#allocation49_spill] sm:$0xff]  ;;  %v5559_v43 = vld [vmem:[#allocation50_spill] sm:$0xff]  ;;  %v5563_v5 = vld [vmem:[#allocation51_spill] sm:$0xff] }
 0x20c   :  { %v2098_v31 = vadd.f32 %v4541_v58, %v2028_v45  ;;  %2221 = vst.msk [vmem:[%s5045_s4 + $0x130] sm:$0xff] %vm83_vm0, %v2157_v3  ;;  %2222 = vst.msk [vmem:[%s5045_s4 + $0x138] sm:$0xff] %vm83_vm0, %v2158_v13  ;;  %v2099_v49 = vadd.f32 %v4541_v58, %v2029_v46  ;;  %v2031_v52 = vmul.f32 %v4524_v56, %v5546_v27  ;;  %v5560_v20 = vld [vmem:[#allocation98_spill] sm:$0xff]  ;;  %v5561_v54 = vld [vmem:[#allocation93_spill] sm:$0xff] }
 0x20d   :  { %v2100_v19 = vadd.f32 %v4541_v58, %v2030_v37  ;;  %v2032_v44 = vmul.f32 %v4524_v56, %v5547_v26  ;;  %v2159_v47 = vmax.f32 %v5548_v36, %v2095_v14  ;;  %v2160_v51 = vmax.f32 %v5549_v2, %v2096_v10  ;;  %v5562_v3 = vld [vmem:[#allocation105_spill] sm:$0xff]  ;;  %v5564_v53 = vld [vmem:[#allocation52_spill] sm:$0xff] }
 0x20e   :  { %v2161_v42 = vmax.f32 %v5550_v28, %v2097_v55  ;;  %v2162_v7 = vmax.f32 %v5551_v41, %v2098_v31  ;;  %v2163_v60 = vmax.f32 %v5552_v39, %v2099_v49  ;;  %v2101_v17 = vadd.f32 %v4541_v58, %v2031_v52  ;;  %v5565_v14 = vld [vmem:[#allocation53_spill] sm:$0xff]  ;;  %v5566_v55 = vld [vmem:[#allocation55_spill] sm:$0xff]  ;;  %v5568_v27 = vld [vmem:[#allocation60_spill] sm:$0xff] }
 0x20f   :  { %v2164_v59 = vmax.f32 %v5553_v48, %v2100_v19  ;;  %v2102_v61 = vadd.f32 %v4541_v58, %v2032_v44  ;;  %2223 = vst.msk [vmem:[%s5045_s4 + $0x140] sm:$0xff] %vm83_vm0, %v2159_v47  ;;  %2224 = vst.msk [vmem:[%s5045_s4 + $0x148] sm:$0xff] %vm83_vm0, %v2160_v51  ;;  %v2033_v6 = vmul.f32 %v4524_v56, %v5554_v16  ;;  %v5567_v49 = vld [vmem:[#allocation57_spill] sm:$0xff] }
 0x210   :  { %2225 = vst.msk [vmem:[%s5045_s4 + $0x150] sm:$0xff] %vm83_vm0, %v2161_v42  ;;  %2226 = vst.msk [vmem:[%s5045_s4 + $0x158] sm:$0xff] %vm83_vm0, %v2162_v7  ;;  %v2034_v35 = vmul.f32 %v4524_v56, %v5555_v23  ;;  %v2035_v15 = vmul.f32 %v4524_v56, %v5556_v9  ;;  %v2036_v21 = vmul.f32 %v4524_v56, %v5557_v25  ;;  %v5570_v28 = vld [vmem:[#allocation69_spill] sm:$0xff] }
 0x211   :  { %2227 = vst.msk [vmem:[%s5045_s4 + $0x160] sm:$0xff] %vm83_vm0, %v2163_v60  ;;  %2228 = vst.msk [vmem:[%s5045_s4 + $0x168] sm:$0xff] %vm83_vm0, %v2164_v59  ;;  %v2165_v29 = vmax.f32 %v5558_v63, %v2101_v17  ;;  %v2166_v18 = vmax.f32 %v5559_v43, %v2102_v61  ;;  %v2037_v38 = vmul.f32 %v4524_v56, %v5560_v20  ;;  %v5571_v59 = vld [vmem:[#allocation72_spill] sm:$0xff]  ;;  %v5572_v61 = vld [vmem:[#allocation74_spill] sm:$0xff] }
 0x212   :  { %v2038_v34 = vmul.f32 %v4524_v56, %v5561_v54  ;;  %v2103_v22 = vadd.f32 %v4541_v58, %v2033_v6  ;;  %v2104_v32 = vadd.f32 %v4541_v58, %v2034_v35  ;;  %v2105_v11 = vadd.f32 %v4541_v58, %v2035_v15  ;;  %v5573_v6 = vld [vmem:[#allocation76_spill] sm:$0xff]  ;;  %v5574_v35 = vld [vmem:[#allocation77_spill] sm:$0xff]  ;;  %v5575_v15 = vld [vmem:[#allocation78_spill] sm:$0xff] }
 0x213   :  { %v2106_v50 = vadd.f32 %v4541_v58, %v2036_v21  ;;  %2229 = vst.msk [vmem:[%s5045_s4 + $0x170] sm:$0xff] %vm83_vm0, %v2165_v29  ;;  %2230 = vst.msk [vmem:[%s5045_s4 + $0x178] sm:$0xff] %vm83_vm0, %v2166_v18  ;;  %v2107_v45 = vadd.f32 %v4541_v58, %v2037_v38  ;;  %v2039_v40 = vmul.f32 %v4524_v56, %v5562_v3  ;;  %v5576_v21 = vld [vmem:[#allocation81_spill] sm:$0xff] }
 0x214   :  { %v2108_v4 = vadd.f32 %v4541_v58, %v2038_v34  ;;  %v2040_v13 = vmul.f32 %v4524_v56, %v5450_v8  ;;  %v2167_v46 = vmax.f32 %v5563_v5, %v2103_v22  ;;  %v2168_v37 = vmax.f32 %v5564_v53, %v2104_v32 }
 0x215   :  { %v2169_v10 = vmax.f32 %v5565_v14, %v2105_v11  ;;  %v2170_v31 = vmax.f32 %v5566_v55, %v2106_v50  ;;  %v2171_v19 = vmax.f32 %v5567_v49, %v2107_v45  ;;  %v2109_v26 = vadd.f32 %v4541_v58, %v2039_v40 }
 0x216   :  { %v2172_v52 = vmax.f32 %v5568_v27, %v2108_v4  ;;  %v2110_v44 = vadd.f32 %v4541_v58, %v2040_v13  ;;  %2231 = vst.msk [vmem:[%s5045_s4 + $0x180] sm:$0xff] %vm83_vm0, %v2167_v46  ;;  %2232 = vst.msk [vmem:[%s5045_s4 + $0x188] sm:$0xff] %vm83_vm0, %v2168_v37  ;;  %v2041_v8 = vmul.f32 %v4524_v56, %v4436_v24  ;;  %v5569_v24 = vld [vmem:[#allocation63_spill] sm:$0xff] }
 0x217   :  { %2233 = vst.msk [vmem:[%s5045_s4 + $0x190] sm:$0xff] %vm83_vm0, %v2169_v10  ;;  %2234 = vst.msk [vmem:[%s5045_s4 + $0x198] sm:$0xff] %vm83_vm0, %v2170_v31  ;;  %v2042_v36 = vmul.f32 %v4524_v56, %v4443_v1  ;;  %v2043_v47 = vmul.f32 %v4524_v56, %v4456_v0  ;;  %v2044_v2 = vmul.f32 %v4524_v56, %v4465_v12 }
 0x218   :  { %2235 = vst.msk [vmem:[%s5045_s4 + $0x1a0] sm:$0xff] %vm83_vm0, %v2171_v19  ;;  %2236 = vst.msk [vmem:[%s5045_s4 + $0x1a8] sm:$0xff] %vm83_vm0, %v2172_v52  ;;  %v2173_v51 = vmax.f32 %v5569_v24, %v2109_v26  ;;  %v2174_v1 = vmax.f32 %v5570_v28, %v2110_v44  ;;  %v2045_v0 = vmul.f32 %v4524_v56, %v4477_v57 }
 0x219   :  { %v2046_v12 = vmul.f32 %v4524_v56, %v4486_v62  ;;  %v2111_v42 = vadd.f32 %v4541_v58, %v2041_v8  ;;  %v2112_v41 = vadd.f32 %v4541_v58, %v2042_v36  ;;  %v2113_v7 = vadd.f32 %v4541_v58, %v2043_v47 }
 0x21a   :  { %v2114_v39 = vadd.f32 %v4541_v58, %v2044_v2  ;;  %2237 = vst.msk [vmem:[%s5045_s4 + $0x1b0] sm:$0xff] %vm83_vm0, %v2173_v51  ;;  %2238 = vst.msk [vmem:[%s5045_s4 + $0x1b8] sm:$0xff] %vm83_vm0, %v2174_v1  ;;  %v2115_v57 = vadd.f32 %v4541_v58, %v2045_v0  ;;  %v2047_v60 = vmul.f32 %v4524_v56, %v4493_v33  ;;  %v5577_v33 = vld [vmem:[#allocation87_spill] sm:$0xff] }
 0x21b   :  { %v2116_v62 = vadd.f32 %v4541_v58, %v2046_v12  ;;  %v2048_v48 = vmul.f32 %v4524_v56, %v4498_v30  ;;  %v2175_v17 = vmax.f32 %v5571_v59, %v2111_v42  ;;  %v2176_v16 = vmax.f32 %v5572_v61, %v2112_v41  ;;  %v5578_v56 = vld [vmem:[#allocation91_spill] sm:$0xff] }
 0x21c   :  { %v2177_v23 = vmax.f32 %v5573_v6, %v2113_v7  ;;  %v2178_v9 = vmax.f32 %v5574_v35, %v2114_v39  ;;  %v2179_v25 = vmax.f32 %v5575_v15, %v2115_v57  ;;  %v2117_v29 = vadd.f32 %v4541_v58, %v2047_v60 }
 0x21d   :  { %v2180_v63 = vmax.f32 %v5576_v21, %v2116_v62  ;;  %v2118_v43 = vadd.f32 %v4541_v58, %v2048_v48  ;;  %2239 = vst.msk [vmem:[%s5045_s4 + $0x1c0] sm:$0xff] %vm83_vm0, %v2175_v17  ;;  %2240 = vst.msk [vmem:[%s5045_s4 + $0x1c8] sm:$0xff] %vm83_vm0, %v2176_v16 }
 0x21e   :  { %2241 = vst.msk [vmem:[%s5045_s4 + $0x1d0] sm:$0xff] %vm83_vm0, %v2177_v23  ;;  %2242 = vst.msk [vmem:[%s5045_s4 + $0x1d8] sm:$0xff] %vm83_vm0, %v2178_v9  ;;  %v2181_v30 = vmax.f32 %v5577_v33, %v2117_v29 }
 0x21f   :  { %2243 = vst.msk [vmem:[%s5045_s4 + $0x1e0] sm:$0xff] %vm83_vm0, %v2179_v25  ;;  %2244 = vst.msk [vmem:[%s5045_s4 + $0x1e8] sm:$0xff] %vm83_vm0, %v2180_v63  ;;  %v2182_v58 = vmax.f32 %v5578_v56, %v2118_v43 }
 0x220   :  { %2245 = vst.msk [vmem:[%s5045_s4 + $0x1f0] sm:$0xff] %vm83_vm0, %v2181_v30 }
 0x221   :  { %2246 = vst.msk [vmem:[%s5045_s4 + $0x1f8] sm:$0xff] %vm83_vm0, %v2182_v58 }

</bundles_post_ra>
